<compile_context>
chip_gen: v6e
topology: v6e:2x2x1
jax: 0.10.0
libtpu: 0.0.40
codegen_flags: <defaults>
</compile_context>

<pallas_src>
import functools

import jax
import jax.numpy as jnp
import numpy as np
from jax.experimental import pallas as pl
from jax.experimental.pallas import tpu as pltpu

EPS = 1e-5
LANE = 128


def _round_up(x, m):
    return (x + m - 1) // m * m


def _pick_row_block(rows, target=512, cap=1024):
    """Largest divisor of `rows` that is <= cap and a multiple of 8."""
    if rows <= target:
        return rows
    for rb in range(min(rows, cap), 7, -1):
        if rows % rb == 0 and rb % 8 == 0:
            return rb
    return rows


def _col_stats(z):
    """Per-channel [sum; sum of squares] of a (rows, C) f32 matrix -> (2, C)."""
    # TODO(synk): E[x^2]-E[x]^2 in f32 can cancel when |mean| >> std; a
    # shifted / Welford-style accumulation would be more robust.
    return jnp.concatenate([jnp.sum(z, axis=0, keepdims=True),
                            jnp.sum(z * z, axis=0, keepdims=True)], axis=0)


def _bn_affine(stats_ref, g_ref, b_ref, inv_n):
    """Fold global batch stats + (gamma, beta) into y = x*scale + shift."""
    mean = stats_ref[0:1, :] * inv_n
    var = stats_ref[1:2, :] * inv_n - mean * mean       # biased, like torch
    scale = g_ref[...] * jax.lax.rsqrt(var + EPS)
    shift = b_ref[...] - mean * scale
    return scale, shift


# --------------------- kernel 1: conv1 (+ 1x1 shortcut conv) -----------------
def _conv1_kernel(*refs, ho, wo, cinp, stride, hop, has_proj):
    if has_proj:
        (xph_ref, xs_ref, w1_ref, wsc_ref,
         z1_ref, zsc_ref, s1_ref, ssc_ref) = refs
    else:
        xph_ref, w1_ref, z1_ref, s1_ref = refs

    r = ho * wo
    coutp = w1_ref.shape[2]
    # 3x3 conv = 9 accumulating K=Cinp MXU dots; taps are dense slices of the
    # stride-phase-split, spatially padded input (no im2col LHS copy).
    acc = jnp.zeros((r, coutp), jnp.float32)
    for kh in range(3):
        for kw in range(3):
            p, q = kh % stride, kw % stride
            dh, dw = kh // stride, kw // stride
            base = (p * stride + q) * hop
            tap = xph_ref[base + dh:base + dh + ho, dw:dw + wo, :]
            acc = acc + jnp.dot(tap.reshape(r, cinp), w1_ref[3 * kh + kw],
                                preferred_element_type=jnp.float32)
    z1_ref[...] = acc.astype(z1_ref.dtype)
    s1_ref[...] = _col_stats(acc)          # per-grid-step partial stats

    if has_proj:
        zsc = jnp.dot(xs_ref[...], wsc_ref[...],
                      preferred_element_type=jnp.float32)
        zsc_ref[...] = zsc.astype(zsc_ref.dtype)
        ssc_ref[...] = _col_stats(zsc)


# ------------------ kernel 2: bn1 + relu + conv2 (3x3, stride 1) -------------
def _conv2_kernel(z1_ref, s1_ref, g1_ref, b1_ref, w2_ref,
                  z2_ref, s2_ref, ypad_ref, *, ho, wo, coutp, inv_rows):
    r = ho * wo
    scale, shift = _bn_affine(s1_ref, g1_ref, b1_ref, inv_rows)
    y1 = jnp.maximum(z1_ref[...].astype(jnp.float32) * scale + shift, 0.0)

    # Zero the halo scratch, then store relu(bn1(z1)) at a sublane-aligned
    # interior offset (W starts at 8 -> unmasked aligned store).
    ypad_ref[...] = jnp.zeros_like(ypad_ref)
    ypad_ref[1:ho + 1, 8:8 + wo, :] = (
        y1.astype(jnp.bfloat16).reshape(ho, wo, coutp))

    acc = jnp.zeros((r, coutp), jnp.float32)
    for kh in range(3):
        for kw in range(3):
            tap = ypad_ref[kh:kh + ho, 7 + kw:7 + kw + wo, :]
            acc = acc + jnp.dot(tap.reshape(r, coutp), w2_ref[3 * kh + kw],
                                preferred_element_type=jnp.float32)
    z2_ref[...] = acc.astype(z2_ref.dtype)
    s2_ref[...] = _col_stats(acc)


# -------------- kernel 3: bn2 + shortcut bn + add + relu (epilogue) ----------
def _epilogue_kernel(*refs, inv_rows, has_proj):
    if has_proj:
        (z2_ref, s2_ref, g2_ref, b2_ref,
         zsc_ref, ssc_ref, gsc_ref, bsc_ref, out_ref) = refs
    else:
        z2_ref, s2_ref, g2_ref, b2_ref, xs_ref, out_ref = refs

    sc2, sh2 = _bn_affine(s2_ref, g2_ref, b2_ref, inv_rows)
    y = z2_ref[...].astype(jnp.float32) * sc2 + sh2
    if has_proj:
        scs, shs = _bn_affine(ssc_ref, gsc_ref, bsc_ref, inv_rows)
        y = y + (zsc_ref[...].astype(jnp.float32) * scs + shs)
    else:
        y = y + xs_ref[...].astype(jnp.float32)
    out_ref[...] = jnp.maximum(y, 0.0).astype(out_ref.dtype)


# ----------------------------------- wrapper ---------------------------------
def resblk_pallas(x_nchw, params, stride=1):
    n, cin, h, w = x_nchw.shape
    cout = params["w1"].shape[0]
    has_proj = cin != cout
    if not has_proj and stride != 1:
        raise ValueError("identity shortcut requires stride == 1")
    ho = (h - 1) // stride + 1
    wo = (w - 1) // stride + 1
    r = ho * wo
    rows = n * r
    cinp = _round_up(cin, LANE)
    coutp = _round_up(cout, LANE)
    inv_rows = 1.0 / rows

    # ---- layout plumbing: bf16 first, fused spatial+channel pad -------------
    x = jnp.transpose(x_nchw.astype(jnp.bfloat16), (0, 2, 3, 1))      # NHWC
    xpad = jnp.pad(x, ((0, 0), (1, 1), (1, 1), (0, cinp - cin)))      # one pad

    # Stride-phase split: phase (p, q) holds xpad[:, p::s, q::s, :] so every
    # in-kernel tap slice is dense.  stride==1 -> single phase = padded input.
    hop = ho + 2 // stride
    wop = _round_up(wo + 2 // stride, 8)
    phs = []
    for p in range(stride):
        for q in range(stride):
            ph = xpad[:, p::stride, q::stride, :]
            ph = ph[:, :hop, :wop, :]
            ph = jnp.pad(ph, ((0, 0), (0, hop - ph.shape[1]),
                              (0, wop - ph.shape[2]), (0, 0)))
            phs.append(ph)
    xph = phs[0] if len(phs) == 1 else jnp.concatenate(phs, axis=1)
    # xph: (n, stride*stride*hop, wop, cinp) bf16

    def fuse_w3x3(wt, cip, cop):                # (Co,Ci,3,3) -> (9, cip, cop)
        co, ci = wt.shape[0], wt.shape[1]
        wt = jnp.transpose(wt, (2, 3, 1, 0))
        wt = jnp.pad(wt, ((0, 0), (0, 0), (0, cip - ci), (0, cop - co)))
        return wt.reshape(9, cip, cop).astype(jnp.bfloat16)

    def rowvec(v, cop):
        return jnp.pad(v.astype(jnp.float32).reshape(1, -1),
                       ((0, 0), (0, cop - v.shape[0])))

    w1 = fuse_w3x3(params["w1"], cinp, coutp)
    w2 = fuse_w3x3(params["w2"], coutp, coutp)
    g1, be1 = rowvec(params["g1"], coutp), rowvec(params["be1"], coutp)
    g2, be2 = rowvec(params["g2"], coutp), rowvec(params["be2"], coutp)
    # NOTE: conv biases b1/b2/bsc are unused — they cancel exactly under
    # batch-statistic BatchNorm.

    vmem_lim = 64 * 1024 * 1024
    cp_par = pltpu.CompilerParams(dimension_semantics=("parallel",),
                                  vmem_limit_bytes=vmem_lim)

    row_bf16 = jax.ShapeDtypeStruct((rows, coutp), jnp.bfloat16)
    pstat_f32 = jax.ShapeDtypeStruct((n, 2, coutp), jnp.float32)

    xph_spec = pl.BlockSpec((None, stride * stride * hop, wop, cinp),
                            lambda i: (i, 0, 0, 0))
    zrow_spec = pl.BlockSpec((r, coutp), lambda i: (i, 0))
    xsrow_spec = pl.BlockSpec((r, cinp), lambda i: (i, 0))
    pstat_spec = pl.BlockSpec((None, 2, coutp), lambda i: (i, 0, 0))
    stat_spec = pl.BlockSpec((2, coutp), lambda i: (0, 0))
    vec_spec = pl.BlockSpec((1, coutp), lambda i: (0, 0))

    def resident(shape):                        # weights stay VMEM-resident
        return pl.BlockSpec(shape, lambda i: (0,) * len(shape))

    # -------- stage 1: conv1 (3x3, stride) [+ 1x1 shortcut conv] -------------
    k1 = functools.partial(_conv1_kernel, ho=ho, wo=wo, cinp=cinp,
                           stride=stride, hop=hop, has_proj=has_proj)
    if has_proj:
        xs2d = jnp.pad(x[:, ::stride, ::stride, :],
                       ((0, 0), (0, 0), (0, 0), (0, cinp - cin))
                       ).reshape(rows, cinp)
        wsc = jnp.pad(jnp.transpose(params["wsc"][:, :, 0, 0], (1, 0)),
                      ((0, cinp - cin), (0, coutp - cout))).astype(jnp.bfloat16)
        z1, zsc, s1p, sscp = pl.pallas_call(
            k1, grid=(n,),
            in_specs=[xph_spec, xsrow_spec,
                      resident((9, cinp, coutp)), resident((cinp, coutp))],
            out_specs=(zrow_spec, zrow_spec, pstat_spec, pstat_spec),
            out_shape=(row_bf16, row_bf16, pstat_f32, pstat_f32),
            compiler_params=cp_par,
        )(xph, xs2d, w1, wsc)
        statssc = jnp.sum(sscp, axis=0)                     # (2, coutp) f32
    else:
        z1, s1p = pl.pallas_call(
            k1, grid=(n,),
            in_specs=[xph_spec, resident((9, cinp, coutp))],
            out_specs=(zrow_spec, pstat_spec),
            out_shape=(row_bf16, pstat_f32),
            compiler_params=cp_par,
        )(xph, w1)
    stats1 = jnp.sum(s1p, axis=0)                           # (2, coutp) f32

    # -------- stage 2: bn1 + relu + conv2 (3x3, stride 1) --------------------
    wpad2 = _round_up(8 + wo + 1, 8)            # aligned interior + zero halo
    k2 = functools.partial(_conv2_kernel, ho=ho, wo=wo, coutp=coutp,
                           inv_rows=inv_rows)
    z2, s2p = pl.pallas_call(
        k2, grid=(n,),
        in_specs=[zrow_spec, stat_spec, vec_spec, vec_spec,
                  resident((9, coutp, coutp))],
        out_specs=(zrow_spec, pstat_spec),
        out_shape=(row_bf16, pstat_f32),
        scratch_shapes=[pltpu.VMEM((ho + 2, wpad2, coutp), jnp.bfloat16)],
        compiler_params=cp_par,
    )(z1, stats1, g1, be1, w2)
    stats2 = jnp.sum(s2p, axis=0)

    # -------- stage 3: bn2 + shortcut bn + add + relu -------------------------
    rb = _pick_row_block(rows)
    rrow_spec = pl.BlockSpec((rb, coutp), lambda i: (i, 0))
    k3 = functools.partial(_epilogue_kernel, inv_rows=inv_rows,
                           has_proj=has_proj)
    if has_proj:
        gsc, besc = rowvec(params["gsc"], coutp), rowvec(params["besc"], coutp)
        args = (z2, stats2, g2, be2, zsc, statssc, gsc, besc)
        in_specs = [rrow_spec, stat_spec, vec_spec, vec_spec,
                    rrow_spec, stat_spec, vec_spec, vec_spec]
    else:
        xs_id = jnp.pad(x, ((0, 0), (0, 0), (0, 0), (0, coutp - cin))
                        ).reshape(rows, coutp)
        args = (z2, stats2, g2, be2, xs_id)
        in_specs = [rrow_spec, stat_spec, vec_spec, vec_spec, rrow_spec]
    out2d = pl.pallas_call(
        k3, grid=(rows // rb,),
        in_specs=in_specs,
        out_specs=rrow_spec,
        out_shape=row_bf16,
        compiler_params=cp_par,
    )(*args)

    out = out2d.reshape(n, ho, wo, coutp)[:, :, :, :cout]
    return jnp.transpose(out, (0, 3, 1, 2)).astype(jnp.float32)      # NCHW


# ----------------------------------- reference -------------------------------
def resblk_ref(x, params, stride=1):
    def conv(xx, wt, b, s, p):
        y = jax.lax.conv_general_dilated(
            xx, wt, (s, s), [(p, p), (p, p)],
            dimension_numbers=("NCHW", "OIHW", "NCHW"),
            precision=jax.lax.Precision.HIGHEST)
        return y + b.reshape(1, -1, 1, 1)

    def bn(xx, g, b):
        mean = jnp.mean(xx, axis=(0, 2, 3), keepdims=True)
        var = jnp.mean((xx - mean) ** 2, axis=(0, 2, 3), keepdims=True)
        return (xx - mean) / jnp.sqrt(var + EPS) * g.reshape(1, -1, 1, 1) \
            + b.reshape(1, -1, 1, 1)

    y = jax.nn.relu(bn(conv(x, params["w1"], params["b1"], stride, 1),
                       params["g1"], params["be1"]))
    y = bn(conv(y, params["w2"], params["b2"], 1, 1),
           params["g2"], params["be2"])
    if x.shape[1] != params["w1"].shape[0]:
        sc = bn(conv(x, params["wsc"], params["bsc"], stride, 0),
                params["gsc"], params["besc"])
    else:
        sc = x
    return jax.nn.relu(y + sc)


def init_params(key, cin, cout):
    ks = jax.random.split(key, 12)
    s1 = 1.0 / np.sqrt(cin * 9)
    s2 = 1.0 / np.sqrt(cout * 9)
    ss = 1.0 / np.sqrt(cin)
    return {
        "w1":  s1 * jax.random.normal(ks[0], (cout, cin, 3, 3), jnp.float32),
        "b1":  s1 * jax.random.normal(ks[1], (cout,), jnp.float32),
        "g1":  1.0 + 0.1 * jax.random.normal(ks[2], (cout,), jnp.float32),
        "be1": 0.1 * jax.random.normal(ks[3], (cout,), jnp.float32),
        "w2":  s2 * jax.random.normal(ks[4], (cout, cout, 3, 3), jnp.float32),
        "b2":  s2 * jax.random.normal(ks[5], (cout,), jnp.float32),
        "g2":  1.0 + 0.1 * jax.random.normal(ks[6], (cout,), jnp.float32),
        "be2": 0.1 * jax.random.normal(ks[7], (cout,), jnp.float32),
        "wsc": ss * jax.random.normal(ks[8], (cout, cin, 1, 1), jnp.float32),
        "bsc": ss * jax.random.normal(ks[9], (cout,), jnp.float32),
        "gsc": 1.0 + 0.1 * jax.random.normal(ks[10], (cout,), jnp.float32),
        "besc": 0.1 * jax.random.normal(ks[11], (cout,), jnp.float32),
    }


if __name__ == "__main__":
    key = jax.random.PRNGKey(0)
    kx1, kp1, kx2, kp2 = jax.random.split(key, 4)

    # -- projection-shortcut case (cin != cout) -------------------------------
    N, CIN, COUT, H, W, STRIDE = 2, 4, 8, 16, 16, 1
    x1 = jax.random.normal(kx1, (N, CIN, H, W), jnp.float32)
    p1 = init_params(kp1, CIN, COUT)
    out1 = jax.block_until_ready(resblk_pallas(x1, p1, stride=STRIDE))
    assert out1.shape == (N, COUT, H // STRIDE, W // STRIDE)
    ref1 = resblk_ref(x1, p1, stride=STRIDE)
    np.testing.assert_allclose(np.asarray(out1), np.asarray(ref1),
                               atol=5e-2, rtol=5e-2)

    # -- identity-shortcut case (cin == cout, stride 1) ------------------------
    x2 = jax.random.normal(kx2, (N, COUT, H, W), jnp.float32)
    p2 = init_params(kp2, COUT, COUT)
    out2 = jax.block_until_ready(resblk_pallas(x2, p2, stride=1))
    assert out2.shape == (N, COUT, H, W)
    ref2 = resblk_ref(x2, p2, stride=1)
    np.testing.assert_allclose(np.asarray(out2), np.asarray(ref2),
                               atol=5e-2, rtol=5e-2)

    print("KERNEL_OK")
</pallas_src>

<mosaic_0001>
module attributes {stable_mosaic.version = 11 : i64} {
  func.func @_conv1_kernel(%arg0: i32, %arg1: memref<1x18x24x128xbf16, #tpu.memory_space<vmem>>, %arg2: memref<256x128xbf16, #tpu.memory_space<vmem>>, %arg3: memref<9x128x128xbf16, #tpu.memory_space<vmem>>, %arg4: memref<128x128xbf16, #tpu.memory_space<vmem>>, %arg5: memref<256x128xbf16, #tpu.memory_space<vmem>>, %arg6: memref<256x128xbf16, #tpu.memory_space<vmem>>, %arg7: memref<1x2x128xf32, #tpu.memory_space<vmem>>, %arg8: memref<1x2x128xf32, #tpu.memory_space<vmem>>) attributes {dimension_semantics = [#tpu.dimension_semantics<parallel>], iteration_bounds = array<i64: 2>, scalar_prefetch = 0 : i64, scratch_operands = 0 : i64, tpu.core_type = #tpu.core_type<tc>, window_params = [{transform_indices = @transform_0, window_bounds = array<i64: 1, 18, 24, 128>}, {transform_indices = @transform_1, window_bounds = array<i64: 256, 128>}, {pipeline_mode = #tpu.pipeline_mode<synchronous>, transform_indices = @transform_2, window_bounds = array<i64: 9, 128, 128>}, {pipeline_mode = #tpu.pipeline_mode<synchronous>, transform_indices = @transform_3, window_bounds = array<i64: 128, 128>}, {transform_indices = @transform_4, window_bounds = array<i64: 256, 128>}, {transform_indices = @transform_5, window_bounds = array<i64: 256, 128>}, {transform_indices = @transform_6, window_bounds = array<i64: 1, 2, 128>}, {transform_indices = @transform_7, window_bounds = array<i64: 1, 2, 128>}]} {
    %cst = arith.constant 0.000000e+00 : f32
    %0 = vector.broadcast %cst : f32 to vector<256x128xf32>
    %c0 = arith.constant 0 : index
    %c0_0 = arith.constant 0 : index
    %c0_1 = arith.constant 0 : index
    %c0_2 = arith.constant 0 : index
    %1 = vector.load %arg1[%c0, %c0_0, %c0_1, %c0_2] : memref<1x18x24x128xbf16, #tpu.memory_space<vmem>>, vector<1x16x16x128xbf16>
    %2 = vector.shape_cast %1 : vector<1x16x16x128xbf16> to vector<16x16x128xbf16>
    %3 = vector.shape_cast %2 : vector<16x16x128xbf16> to vector<256x128xbf16>
    %c0_3 = arith.constant 0 : index
    %c0_4 = arith.constant 0 : index
    %c0_5 = arith.constant 0 : index
    %4 = vector.load %arg3[%c0_3, %c0_4, %c0_5] : memref<9x128x128xbf16, #tpu.memory_space<vmem>>, vector<1x128x128xbf16>
    %5 = vector.shape_cast %4 : vector<1x128x128xbf16> to vector<128x128xbf16>
    %cst_6 = arith.constant dense<0.000000e+00> : vector<256x128xf32>
    %6 = tpu.matmul %3, %5, %cst_6 {dimension_numbers = #tpu.dot_dimension_numbers<[1], [0], [0], [1], [0, 0, 1, 1], [], []>} : vector<256x128xbf16>, vector<128x128xbf16>, vector<256x128xf32> -> vector<256x128xf32>
    %7 = arith.addf %0, %6 : vector<256x128xf32>
    %c0_7 = arith.constant 0 : index
    %c0_8 = arith.constant 0 : index
    %c1 = arith.constant 1 : index
    %c0_9 = arith.constant 0 : index
    %8 = vector.load %arg1[%c0_7, %c0_8, %c1, %c0_9] : memref<1x18x24x128xbf16, #tpu.memory_space<vmem>>, vector<1x16x16x128xbf16>
    %9 = vector.shape_cast %8 : vector<1x16x16x128xbf16> to vector<16x16x128xbf16>
    %10 = vector.shape_cast %9 : vector<16x16x128xbf16> to vector<256x128xbf16>
    %c1_10 = arith.constant 1 : index
    %c0_11 = arith.constant 0 : index
    %c0_12 = arith.constant 0 : index
    %11 = vector.load %arg3[%c1_10, %c0_11, %c0_12] : memref<9x128x128xbf16, #tpu.memory_space<vmem>>, vector<1x128x128xbf16>
    %12 = vector.shape_cast %11 : vector<1x128x128xbf16> to vector<128x128xbf16>
    %cst_13 = arith.constant dense<0.000000e+00> : vector<256x128xf32>
    %13 = tpu.matmul %10, %12, %cst_13 {dimension_numbers = #tpu.dot_dimension_numbers<[1], [0], [0], [1], [0, 0, 1, 1], [], []>} : vector<256x128xbf16>, vector<128x128xbf16>, vector<256x128xf32> -> vector<256x128xf32>
    %14 = arith.addf %7, %13 : vector<256x128xf32>
    %c0_14 = arith.constant 0 : index
    %c0_15 = arith.constant 0 : index
    %c2 = arith.constant 2 : index
    %c0_16 = arith.constant 0 : index
    %15 = vector.load %arg1[%c0_14, %c0_15, %c2, %c0_16] : memref<1x18x24x128xbf16, #tpu.memory_space<vmem>>, vector<1x16x16x128xbf16>
    %16 = vector.shape_cast %15 : vector<1x16x16x128xbf16> to vector<16x16x128xbf16>
    %17 = vector.shape_cast %16 : vector<16x16x128xbf16> to vector<256x128xbf16>
    %c2_17 = arith.constant 2 : index
    %c0_18 = arith.constant 0 : index
    %c0_19 = arith.constant 0 : index
    %18 = vector.load %arg3[%c2_17, %c0_18, %c0_19] : memref<9x128x128xbf16, #tpu.memory_space<vmem>>, vector<1x128x128xbf16>
    %19 = vector.shape_cast %18 : vector<1x128x128xbf16> to vector<128x128xbf16>
    %cst_20 = arith.constant dense<0.000000e+00> : vector<256x128xf32>
    %20 = tpu.matmul %17, %19, %cst_20 {dimension_numbers = #tpu.dot_dimension_numbers<[1], [0], [0], [1], [0, 0, 1, 1], [], []>} : vector<256x128xbf16>, vector<128x128xbf16>, vector<256x128xf32> -> vector<256x128xf32>
    %21 = arith.addf %14, %20 : vector<256x128xf32>
    %c0_21 = arith.constant 0 : index
    %c1_22 = arith.constant 1 : index
    %c0_23 = arith.constant 0 : index
    %c0_24 = arith.constant 0 : index
    %22 = vector.load %arg1[%c0_21, %c1_22, %c0_23, %c0_24] : memref<1x18x24x128xbf16, #tpu.memory_space<vmem>>, vector<1x16x16x128xbf16>
    %23 = vector.shape_cast %22 : vector<1x16x16x128xbf16> to vector<16x16x128xbf16>
    %24 = vector.shape_cast %23 : vector<16x16x128xbf16> to vector<256x128xbf16>
    %c3 = arith.constant 3 : index
    %c0_25 = arith.constant 0 : index
    %c0_26 = arith.constant 0 : index
    %25 = vector.load %arg3[%c3, %c0_25, %c0_26] : memref<9x128x128xbf16, #tpu.memory_space<vmem>>, vector<1x128x128xbf16>
    %26 = vector.shape_cast %25 : vector<1x128x128xbf16> to vector<128x128xbf16>
    %cst_27 = arith.constant dense<0.000000e+00> : vector<256x128xf32>
    %27 = tpu.matmul %24, %26, %cst_27 {dimension_numbers = #tpu.dot_dimension_numbers<[1], [0], [0], [1], [0, 0, 1, 1], [], []>} : vector<256x128xbf16>, vector<128x128xbf16>, vector<256x128xf32> -> vector<256x128xf32>
    %28 = arith.addf %21, %27 : vector<256x128xf32>
    %c0_28 = arith.constant 0 : index
    %c1_29 = arith.constant 1 : index
    %c1_30 = arith.constant 1 : index
    %c0_31 = arith.constant 0 : index
    %29 = vector.load %arg1[%c0_28, %c1_29, %c1_30, %c0_31] : memref<1x18x24x128xbf16, #tpu.memory_space<vmem>>, vector<1x16x16x128xbf16>
    %30 = vector.shape_cast %29 : vector<1x16x16x128xbf16> to vector<16x16x128xbf16>
    %31 = vector.shape_cast %30 : vector<16x16x128xbf16> to vector<256x128xbf16>
    %c4 = arith.constant 4 : index
    %c0_32 = arith.constant 0 : index
    %c0_33 = arith.constant 0 : index
    %32 = vector.load %arg3[%c4, %c0_32, %c0_33] : memref<9x128x128xbf16, #tpu.memory_space<vmem>>, vector<1x128x128xbf16>
    %33 = vector.shape_cast %32 : vector<1x128x128xbf16> to vector<128x128xbf16>
    %cst_34 = arith.constant dense<0.000000e+00> : vector<256x128xf32>
    %34 = tpu.matmul %31, %33, %cst_34 {dimension_numbers = #tpu.dot_dimension_numbers<[1], [0], [0], [1], [0, 0, 1, 1], [], []>} : vector<256x128xbf16>, vector<128x128xbf16>, vector<256x128xf32> -> vector<256x128xf32>
    %35 = arith.addf %28, %34 : vector<256x128xf32>
    %c0_35 = arith.constant 0 : index
    %c1_36 = arith.constant 1 : index
    %c2_37 = arith.constant 2 : index
    %c0_38 = arith.constant 0 : index
    %36 = vector.load %arg1[%c0_35, %c1_36, %c2_37, %c0_38] : memref<1x18x24x128xbf16, #tpu.memory_space<vmem>>, vector<1x16x16x128xbf16>
    %37 = vector.shape_cast %36 : vector<1x16x16x128xbf16> to vector<16x16x128xbf16>
    %38 = vector.shape_cast %37 : vector<16x16x128xbf16> to vector<256x128xbf16>
    %c5 = arith.constant 5 : index
    %c0_39 = arith.constant 0 : index
    %c0_40 = arith.constant 0 : index
    %39 = vector.load %arg3[%c5, %c0_39, %c0_40] : memref<9x128x128xbf16, #tpu.memory_space<vmem>>, vector<1x128x128xbf16>
    %40 = vector.shape_cast %39 : vector<1x128x128xbf16> to vector<128x128xbf16>
    %cst_41 = arith.constant dense<0.000000e+00> : vector<256x128xf32>
    %41 = tpu.matmul %38, %40, %cst_41 {dimension_numbers = #tpu.dot_dimension_numbers<[1], [0], [0], [1], [0, 0, 1, 1], [], []>} : vector<256x128xbf16>, vector<128x128xbf16>, vector<256x128xf32> -> vector<256x128xf32>
    %42 = arith.addf %35, %41 : vector<256x128xf32>
    %c0_42 = arith.constant 0 : index
    %c2_43 = arith.constant 2 : index
    %c0_44 = arith.constant 0 : index
    %c0_45 = arith.constant 0 : index
    %43 = vector.load %arg1[%c0_42, %c2_43, %c0_44, %c0_45] : memref<1x18x24x128xbf16, #tpu.memory_space<vmem>>, vector<1x16x16x128xbf16>
    %44 = vector.shape_cast %43 : vector<1x16x16x128xbf16> to vector<16x16x128xbf16>
    %45 = vector.shape_cast %44 : vector<16x16x128xbf16> to vector<256x128xbf16>
    %c6 = arith.constant 6 : index
    %c0_46 = arith.constant 0 : index
    %c0_47 = arith.constant 0 : index
    %46 = vector.load %arg3[%c6, %c0_46, %c0_47] : memref<9x128x128xbf16, #tpu.memory_space<vmem>>, vector<1x128x128xbf16>
    %47 = vector.shape_cast %46 : vector<1x128x128xbf16> to vector<128x128xbf16>
    %cst_48 = arith.constant dense<0.000000e+00> : vector<256x128xf32>
    %48 = tpu.matmul %45, %47, %cst_48 {dimension_numbers = #tpu.dot_dimension_numbers<[1], [0], [0], [1], [0, 0, 1, 1], [], []>} : vector<256x128xbf16>, vector<128x128xbf16>, vector<256x128xf32> -> vector<256x128xf32>
    %49 = arith.addf %42, %48 : vector<256x128xf32>
    %c0_49 = arith.constant 0 : index
    %c2_50 = arith.constant 2 : index
    %c1_51 = arith.constant 1 : index
    %c0_52 = arith.constant 0 : index
    %50 = vector.load %arg1[%c0_49, %c2_50, %c1_51, %c0_52] : memref<1x18x24x128xbf16, #tpu.memory_space<vmem>>, vector<1x16x16x128xbf16>
    %51 = vector.shape_cast %50 : vector<1x16x16x128xbf16> to vector<16x16x128xbf16>
    %52 = vector.shape_cast %51 : vector<16x16x128xbf16> to vector<256x128xbf16>
    %c7 = arith.constant 7 : index
    %c0_53 = arith.constant 0 : index
    %c0_54 = arith.constant 0 : index
    %53 = vector.load %arg3[%c7, %c0_53, %c0_54] : memref<9x128x128xbf16, #tpu.memory_space<vmem>>, vector<1x128x128xbf16>
    %54 = vector.shape_cast %53 : vector<1x128x128xbf16> to vector<128x128xbf16>
    %cst_55 = arith.constant dense<0.000000e+00> : vector<256x128xf32>
    %55 = tpu.matmul %52, %54, %cst_55 {dimension_numbers = #tpu.dot_dimension_numbers<[1], [0], [0], [1], [0, 0, 1, 1], [], []>} : vector<256x128xbf16>, vector<128x128xbf16>, vector<256x128xf32> -> vector<256x128xf32>
    %56 = arith.addf %49, %55 : vector<256x128xf32>
    %c0_56 = arith.constant 0 : index
    %c2_57 = arith.constant 2 : index
    %c2_58 = arith.constant 2 : index
    %c0_59 = arith.constant 0 : index
    %57 = vector.load %arg1[%c0_56, %c2_57, %c2_58, %c0_59] : memref<1x18x24x128xbf16, #tpu.memory_space<vmem>>, vector<1x16x16x128xbf16>
    %58 = vector.shape_cast %57 : vector<1x16x16x128xbf16> to vector<16x16x128xbf16>
    %59 = vector.shape_cast %58 : vector<16x16x128xbf16> to vector<256x128xbf16>
    %c8 = arith.constant 8 : index
    %c0_60 = arith.constant 0 : index
    %c0_61 = arith.constant 0 : index
    %60 = vector.load %arg3[%c8, %c0_60, %c0_61] : memref<9x128x128xbf16, #tpu.memory_space<vmem>>, vector<1x128x128xbf16>
    %61 = vector.shape_cast %60 : vector<1x128x128xbf16> to vector<128x128xbf16>
    %cst_62 = arith.constant dense<0.000000e+00> : vector<256x128xf32>
    %62 = tpu.matmul %59, %61, %cst_62 {dimension_numbers = #tpu.dot_dimension_numbers<[1], [0], [0], [1], [0, 0, 1, 1], [], []>} : vector<256x128xbf16>, vector<128x128xbf16>, vector<256x128xf32> -> vector<256x128xf32>
    %63 = arith.addf %56, %62 : vector<256x128xf32>
    %64 = arith.truncf %63 : vector<256x128xf32> to vector<256x128xbf16>
    %c0_63 = arith.constant 0 : index
    %c0_64 = arith.constant 0 : index
    %65 = vector.load %arg5[%c0_63, %c0_64] : memref<256x128xbf16, #tpu.memory_space<vmem>>, vector<256x128xbf16>
    tpu.vector_store %arg5[%c0_63, %c0_64], %64 {strides = array<i32>} : memref<256x128xbf16, #tpu.memory_space<vmem>>, vector<256x128xbf16>,
    %cst_65 = arith.constant dense<0.000000e+00> : vector<128xf32>
    %66 = vector.multi_reduction <add>, %63, %cst_65 [0] : vector<256x128xf32> to vector<128xf32>
    %67 = vector.shape_cast %66 : vector<128xf32> to vector<1x128xf32>
    %68 = arith.mulf %63, %63 : vector<256x128xf32>
    %cst_66 = arith.constant dense<0.000000e+00> : vector<128xf32>
    %69 = vector.multi_reduction <add>, %68, %cst_66 [0] : vector<256x128xf32> to vector<128xf32>
    %70 = vector.shape_cast %69 : vector<128xf32> to vector<1x128xf32>
    %71 = tpu.concatenate %67, %70 in 0 : vector<1x128xf32>, vector<1x128xf32> -> vector<2x128xf32>
    %c0_67 = arith.constant 0 : index
    %c0_68 = arith.constant 0 : index
    %c0_69 = arith.constant 0 : index
    %72 = vector.load %arg7[%c0_67, %c0_68, %c0_69] : memref<1x2x128xf32, #tpu.memory_space<vmem>>, vector<1x2x128xf32>
    %73 = vector.shape_cast %72 : vector<1x2x128xf32> to vector<2x128xf32>
    %74 = vector.shape_cast %71 : vector<2x128xf32> to vector<1x2x128xf32>
    tpu.vector_store %arg7[%c0_67, %c0_68, %c0_69], %74 {strides = array<i32>} : memref<1x2x128xf32, #tpu.memory_space<vmem>>, vector<1x2x128xf32>,
    %c0_70 = arith.constant 0 : index
    %c0_71 = arith.constant 0 : index
    %75 = vector.load %arg2[%c0_70, %c0_71] : memref<256x128xbf16, #tpu.memory_space<vmem>>, vector<256x128xbf16>
    %c0_72 = arith.constant 0 : index
    %c0_73 = arith.constant 0 : index
    %76 = vector.load %arg4[%c0_72, %c0_73] : memref<128x128xbf16, #tpu.memory_space<vmem>>, vector<128x128xbf16>
    %cst_74 = arith.constant dense<0.000000e+00> : vector<256x128xf32>
    %77 = tpu.matmul %75, %76, %cst_74 {dimension_numbers = #tpu.dot_dimension_numbers<[1], [0], [0], [1], [0, 0, 1, 1], [], []>} : vector<256x128xbf16>, vector<128x128xbf16>, vector<256x128xf32> -> vector<256x128xf32>
    %78 = arith.truncf %77 : vector<256x128xf32> to vector<256x128xbf16>
    %c0_75 = arith.constant 0 : index
    %c0_76 = arith.constant 0 : index
    %79 = vector.load %arg6[%c0_75, %c0_76] : memref<256x128xbf16, #tpu.memory_space<vmem>>, vector<256x128xbf16>
    tpu.vector_store %arg6[%c0_75, %c0_76], %78 {strides = array<i32>} : memref<256x128xbf16, #tpu.memory_space<vmem>>, vector<256x128xbf16>,
    %cst_77 = arith.constant dense<0.000000e+00> : vector<128xf32>
    %80 = vector.multi_reduction <add>, %77, %cst_77 [0] : vector<256x128xf32> to vector<128xf32>
    %81 = vector.shape_cast %80 : vector<128xf32> to vector<1x128xf32>
    %82 = arith.mulf %77, %77 : vector<256x128xf32>
    %cst_78 = arith.constant dense<0.000000e+00> : vector<128xf32>
    %83 = vector.multi_reduction <add>, %82, %cst_78 [0] : vector<256x128xf32> to vector<128xf32>
    %84 = vector.shape_cast %83 : vector<128xf32> to vector<1x128xf32>
    %85 = tpu.concatenate %81, %84 in 0 : vector<1x128xf32>, vector<1x128xf32> -> vector<2x128xf32>
    %c0_79 = arith.constant 0 : index
    %c0_80 = arith.constant 0 : index
    %c0_81 = arith.constant 0 : index
    %86 = vector.load %arg8[%c0_79, %c0_80, %c0_81] : memref<1x2x128xf32, #tpu.memory_space<vmem>>, vector<1x2x128xf32>
    %87 = vector.shape_cast %86 : vector<1x2x128xf32> to vector<2x128xf32>
    %88 = vector.shape_cast %85 : vector<2x128xf32> to vector<1x2x128xf32>
    tpu.vector_store %arg8[%c0_79, %c0_80, %c0_81], %88 {strides = array<i32>} : memref<1x2x128xf32, #tpu.memory_space<vmem>>, vector<1x2x128xf32>,
    return
  }
  func.func @transform_0(%arg0: i32) -> (i32, i32, i32, i32) {
    %c0_i32 = arith.constant 0 : i32
    %c0_i32_0 = arith.constant 0 : i32
    %c0_i32_1 = arith.constant 0 : i32
    %c0_i32_2 = arith.constant 0 : i32
    return %arg0, %c0_i32, %c0_i32_0, %c0_i32_1 : i32, i32, i32, i32
  }
  func.func @transform_1(%arg0: i32) -> (i32, i32) {
    %c0_i32 = arith.constant 0 : i32
    %c0_i32_0 = arith.constant 0 : i32
    return %arg0, %c0_i32 : i32, i32
  }
  func.func @transform_2(%arg0: i32) -> (i32, i32, i32) {
    %c0_i32 = arith.constant 0 : i32
    %c0_i32_0 = arith.constant 0 : i32
    %c0_i32_1 = arith.constant 0 : i32
    %c0_i32_2 = arith.constant 0 : i32
    return %c0_i32, %c0_i32_0, %c0_i32_1 : i32, i32, i32
  }
  func.func @transform_3(%arg0: i32) -> (i32, i32) {
    %c0_i32 = arith.constant 0 : i32
    %c0_i32_0 = arith.constant 0 : i32
    %c0_i32_1 = arith.constant 0 : i32
    return %c0_i32, %c0_i32_0 : i32, i32
  }
  func.func @transform_4(%arg0: i32) -> (i32, i32) {
    %c0_i32 = arith.constant 0 : i32
    %c0_i32_0 = arith.constant 0 : i32
    return %arg0, %c0_i32 : i32, i32
  }
  func.func @transform_5(%arg0: i32) -> (i32, i32) {
    %c0_i32 = arith.constant 0 : i32
    %c0_i32_0 = arith.constant 0 : i32
    return %arg0, %c0_i32 : i32, i32
  }
  func.func @transform_6(%arg0: i32) -> (i32, i32, i32) {
    %c0_i32 = arith.constant 0 : i32
    %c0_i32_0 = arith.constant 0 : i32
    %c0_i32_1 = arith.constant 0 : i32
    return %arg0, %c0_i32, %c0_i32_0 : i32, i32, i32
  }
  func.func @transform_7(%arg0: i32) -> (i32, i32, i32) {
    %c0_i32 = arith.constant 0 : i32
    %c0_i32_0 = arith.constant 0 : i32
    %c0_i32_1 = arith.constant 0 : i32
    return %arg0, %c0_i32, %c0_i32_0 : i32, i32, i32
  }
}

</mosaic_0001>

<bundles_post_ra>
// kernel: tpu_custom_call.1
= control target key start
LH: loop header
LB: loop body
LE: loop exit
PB: predicated region body
PF: predicated region fallthrough
CT: control target
= control target key end

     0   :  { %s10800_s0 = inlined_call_operand.hbm [shape: bf16[2,18,24,128], index: 0, kind: input, shape index: {}]   ;;  %s10801_s1 = inlined_call_operand.hbm [shape: bf16[512,128], index: 1, kind: input, shape index: {}]   ;;  %s10802_s2 = inlined_call_operand.hbm [shape: bf16[9,128,128], index: 2, kind: input, shape index: {}]   ;;  %s10803_s3 = inlined_call_operand.hbm [shape: bf16[128,128], index: 3, kind: input, shape index: {}]   ;;  %s10804_s4 = inlined_call_operand.hbm [shape: bf16[512,128], index: 4, kind: output, shape index: {0}]   ;;  %s10805_s5 = inlined_call_operand.hbm [shape: bf16[512,128], index: 5, kind: output, shape index: {1}]   ;;  %s10806_s6 = inlined_call_operand.hbm [shape: f32[2,2,128], index: 6, kind: output, shape index: {2}]   ;;  %s10807_s7 = inlined_call_operand.hbm [shape: f32[2,2,128], index: 7, kind: output, shape index: {3}]  }
   0x1   :  { %10824 = sst [smem:[#allocation45_spill]] %s10800_s0 }
   0x2   :  { %10825 = sst [smem:[#allocation46_spill]] %s10802_s2 }
   0x3   :  { %10826 = sst [smem:[#allocation47_spill]] %s10803_s3 }
   0x4   :  { %13 = vsyncpa [#allocation3], 0 }
   0x5   :  { %15 = vsyncpa [#allocation3 + $0x1], 0 }
   0x6   :  { %16 = vsyncpa [#allocation6], 0 }
   0x7   :  { %18 = vsyncpa [#allocation6 + $0x1], 0 }
   0x8   :  { %19 = vsyncpa [#allocation9], 0 }
   0x9   :  { %20 = vsyncpa [#allocation4], 0 }
   0xa   :  { %22 = vsyncpa [#allocation4 + $0x1], 0 }
   0xb   :  { %23 = vsyncpa [#allocation12], 0 }
   0xc   :  { %25 = vsyncpa [#allocation12 + $0x1], 0 }
   0xd   :  { %26 = vsyncpa [#allocation15], 0 }
   0xe   :  { %28 = vsyncpa [#allocation15 + $0x1], 0  ;;  %s8496_s24 = smov 0   ;;  %s8498_s25 = smov 0  }
   0xf   :  { %s8500_s26 = smov 0   ;;  %s8502_s27 = smov 0  }
  0x10 LB: > { %10827 = sst [smem:[#allocation23_spill]] %s8438_s26  ;;  %s8517_s28 = sadd.s32 4294967295, %s8442_s27   ;;  %s8442_s27 = sphi %s8502_s27, %s10942_s27   ;;  %s8438_s26 = sphi %s8500_s26, %s10939_s26   ;;  %s8434_s25 = sphi %s8498_s25, %s10941_s25   ;;  %s8430_s24 = sphi %s8496_s24, %s10940_s24  }
  0x11   : > { %s10808_s29 = sadd.s32 4294967294, %s8442_s27   ;;  %p54_p0 = scmp.ne.s32.totalorder %s8434_s25, %s8430_s24 }
  0x12   : > { %p10813_p1 = scmp.eq.s32.totalorder %s8517_s28, 0  ;;  %p146_p2 = scmp.eq.s32.totalorder %s8517_s28, 1 }
  0x13   : > { %p152_p3 = scmp.eq.s32.totalorder %s10808_s29, 1  ;;  %p6377_p5 = scmp.ge.s32.totalorder %s8442_s27, 1 }
  0x14   : > { %p8528_p4 = por %p10813_p1, %p54_p0  ;;  %p237_p7 = scmp.lt.s32.totalorder %s8442_s27, 3 }
  0x15   : > { %p8533_p6 = por %p152_p3, %p54_p0  ;;  %s8444_s10 = smov [#allocation7]  }
  0x16   : > { %s10828_s30 = scalar_select %p8528_p4, 1, 0 }
  0x17   : > { %s10829_s8 = scalar_select %p8533_p6, 1, 0 }
  0x18   : > { %p8538_p8 = pnand %p6377_p5, %p237_p7  ;;  %s249_s11 = sshll.u32 %s8444_s10, 4  ;;  %s250_s11 = int_to_ptr.vmem [resolvable:$true] %s249_s11 }
  0x19   : > { %s8445_s13 = smov [#allocation8]   ;;  %s8183_s15 = scalar_lea.vmem %s250_s11, 9216 }
  0x1a   : > { %p7949_p9 = pneg %p8538_p8  ;;  %s262_s14 = sshll.u32 %s8445_s13, 4  ;;  %s263_s14 = int_to_ptr.vmem [resolvable:$true] %s262_s14 }
  0x1b   : > { %p8184_p13 = scmp.ne.s32.totalorder %s250_s11, %s8183_s15  ;;  %p8191_p5 = scmp.lt.s32.totalorder %s250_s11, %s250_s11 }
  0x1c   : > { %p8547_p11 = pnand %p7949_p9, %p10813_p1  ;;  %p8192_p7 = scmp.lt.s32.totalorder %s8183_s15, %s8183_s15 }
  0x1e   : > { %p8174_p12 = pneg %p8547_p11  ;;  %p8193_p10 = por %p8192_p7, %p8191_p5 }
  0x20   : > { %p8186_p0 = pnand %p8184_p13, %p8174_p12 }
  0x22   : > { %p8187_p3 = pneg %p8186_p0 }
  0x24   : > { %p8194_p9 = pnand %p8193_p10, %p8187_p3 }
  0x26   : > { %8197 = shalt.err (!%p8194_p9)
}
  0x27   : > { %s10809_s16 = smov 64   ;;  %s10811_s17 = smov 4  }
  0x28   : > { %s10832_s2 = sld [smem:[#allocation46_spill]]  ;;  %s8209_s20 = scalar_lea.vmem %s263_s14, 1024 }
  0x29   : > { %p8210_p13 = scmp.ne.s32.totalorder %s263_s14, %s8209_s20  ;;  %p8217_p10 = scmp.lt.s32.totalorder %s263_s14, %s263_s14 }
  0x2a   : > { %p8218_p3 = scmp.lt.s32.totalorder %s8209_s20, %s8209_s20 }
  0x2b   : > { %p8212_p0 = pnand %p8210_p13, %p8174_p12 }
  0x2c   : > { %p8219_p7 = por %p8218_p3, %p8217_p10 }
  0x2d   : > { %p8213_p5 = pneg %p8212_p0 }
  0x2e   : > { %7952 = dma.hbm_to_vmem [thread:$0]  (!%p8547_p11), %s10832_s2, 9216, %s250_s11, [#allocation6], %s10809_s16, %s10809_s16, %s10811_s17  }
  0x2f   : > { %p8220_p9 = pnand %p8219_p7, %p8213_p5 }
  0x31   : > { %8223 = shalt.err (!%p8220_p9)
}
  0x32   : > { %s10833_s3 = sld [smem:[#allocation47_spill]]  ;;  %s8576_s23 = sadd.s32 1, %s8442_s27  }
  0x33   : > { %s41_s10 = sadd.s32 1, %s8438_s26  ;;  %s38_s11 = ssub.s32 %s8442_s27, %s8576_s23 }
  0x34   : > { %p48_p12 = scmp.ne.s32.totalorder %s8438_s26, %s8434_s25  ;;  %p39_p13 = scmp.eq.s32.totalorder %s38_s11, 0 }
  0x35   : > { %p49_p0 = scmp.eq.s32.totalorder %s8442_s27, 0  ;;  %p7978_p10 = scmp.lt.s32.totalorder %s8442_s27, 2 }
  0x36   : > { %p8586_p5 = por %p146_p2, %p48_p12  ;;  %s8595_s15 = sand.u32 1, %s8438_s26  }
  0x37   : > { %s8592_s13 = scalar_select %p39_p13, %s8438_s26, %s41_s10  }
  0x38   : > { %7955 = dma.hbm_to_vmem [thread:$0]  (!%p8547_p11), %s10833_s3, 1024, %s263_s14, [#allocation9], %s10809_s16, %s10809_s16, %s10811_s17  }
  0x39   : > { %s10834_s12 = scalar_select %p8586_p5, 1, 0 }
  0x3a   : > { %10835 = sst [smem:[#allocation24_spill]] %s8592_s13  ;;  %p50_p3 = por %p49_p0, %p48_p12 }
  0x3b   : > { %s7926_s14 = smul.u32 216, %s8595_s15  ;;  %s10837_s0 = sld [smem:[#allocation45_spill]] }
  0x3c   : > { %s7927_s18 = smul.u32 3456, %s8442_s27  ;;  %p8599_p11 = pnand %p7978_p10, %p50_p3 }
  0x3d   : > { %s280_s10 = scalar_lea.vmem [#allocation2], %s7926_s14  ;;  %s277_s16 = scalar_lea.sflag [#allocation3], %s8595_s15 }
  0x3e   : > { %s287_s29 = sshll.u32 %s280_s10, 4  ;;  %p8226_p7 = pneg %p8599_p11  ;;  %s8609_s29 = int_to_ptr.vmem [resolvable:$true] %s287_s29 }
  0x41   : > { %s8607_s11 = scalar_lea.hbm %s10837_s0, %s7927_s18  ;;  %s8229_s18 = scalar_lea.hbm %s10837_s0, 6912 }
  0x42   : > { %s8224_s17 = scalar_lea.hbm %s8607_s11, 3456  ;;  %p8230_p13 = scmp.lt.s32.totalorder %s8607_s11, %s10837_s0 }
  0x43   : > { %p8225_p2 = scmp.ne.s32.totalorder %s8607_s11, %s8224_s17  ;;  %p8231_p0 = scmp.lt.s32.totalorder %s8229_s18, %s8224_s17 }
  0x45   : > { %p8227_p9 = pnand %p8226_p7, %p8225_p2  ;;  %p8232_p10 = por %p8231_p0, %p8230_p13 }
  0x47   : > { %p8228_p12 = pneg %p8227_p9 }
  0x49   : > { %p8233_p3 = pnand %p8232_p10, %p8228_p12 }
  0x4b   : > { %8236 = shalt.err (!%p8233_p3)
}
  0x4c   : > { %s8237_s14 = scalar_lea.vmem %s8609_s29, 3456  ;;  %s8448_s20 = smov [#allocation2]  }
  0x4d   : > { %p8238_p1 = scmp.ne.s32.totalorder %s8609_s29, %s8237_s14  ;;  %s8242_s10 = sshll.u32 %s8448_s20, 4  ;;  %s8243_s10 = int_to_ptr.vmem [resolvable:$false] %s8242_s10 }
  0x4e   : > { %s8244_s21 = scalar_lea.vmem %s8243_s10, 6912  ;;  %p8245_p6 = scmp.lt.s32.totalorder %s8609_s29, %s8243_s10 }
  0x4f   : > { %p8240_p2 = pnand %p8238_p1, %p8226_p7  ;;  %p8246_p5 = scmp.lt.s32.totalorder %s8244_s21, %s8237_s14 }
  0x51   : > { %p8241_p9 = pneg %p8240_p2  ;;  %p8247_p4 = por %p8246_p5, %p8245_p6 }
  0x53   : > { %p8248_p13 = pnand %p8247_p4, %p8241_p9 }
  0x55   : > { %8251 = shalt.err (!%p8248_p13)
}
  0x56   : > { %s10838_s2 = smov 4   ;;  %s10839_s17 = smov 64  }
  0x57   : > { %7959 = dma.hbm_to_vmem [thread:$0]  (!%p8599_p11), %s8607_s11, 3456, %s8609_s29, %s277_s16, %s10839_s17, %s10839_s17, %s10838_s2  }
  0x58   : > { %s6382_s18 = sshll.u32 %s8595_s15, 7  ;;  %s6949_s22 = sshll.u32 %s8442_s27, 11 }
  0x59   : > { %s8646_s10 = scalar_lea.hbm %s10801_s1, %s6949_s22  ;;  %s301_s21 = scalar_lea.vmem [#allocation5], %s6382_s18 }
  0x5a   : > { %s308_s0 = sshll.u32 %s301_s21, 4  ;;  %s10840_s3 = sand.u32 1, %s8442_s27   ;;  %s8648_s0 = int_to_ptr.vmem [resolvable:$true] %s308_s0 }
  0x5b   : > { %s298_s13 = scalar_lea.sflag [#allocation6], %s10840_s3  ;;  %s8252_s26 = scalar_lea.hbm %s8646_s10, 2048 }
  0x5c   : > { %p8253_p1 = scmp.ne.s32.totalorder %s8646_s10, %s8252_s26  ;;  %s8257_s15 = scalar_lea.hbm %s10801_s1, 4096 }
  0x5d   : > { %p8258_p5 = scmp.lt.s32.totalorder %s8646_s10, %s10801_s1  ;;  %p8259_p12 = scmp.lt.s32.totalorder %s8257_s15, %s8252_s26 }
  0x5e   : > { %p8255_p4 = pnand %p8253_p1, %p8226_p7 }
  0x5f   : > { %p8260_p0 = por %p8259_p12, %p8258_p5 }
  0x60   : > { %p8256_p6 = pneg %p8255_p4 }
  0x62   : > { %p8261_p10 = pnand %p8260_p0, %p8256_p6 }
  0x64   : > { %8264 = shalt.err (!%p8261_p10)
}
  0x65   : > { %s8265_s3 = scalar_lea.vmem %s8648_s0, 2048  ;;  %s8449_s18 = smov [#allocation5]  }
  0x66   : > { %p8266_p3 = scmp.ne.s32.totalorder %s8648_s0, %s8265_s3  ;;  %s8270_s14 = sshll.u32 %s8449_s18, 4  ;;  %s8271_s14 = int_to_ptr.vmem [resolvable:$false] %s8270_s14 }
  0x67   : > { %s8272_s20 = scalar_lea.vmem %s8271_s14, 4096  ;;  %p8273_p13 = scmp.lt.s32.totalorder %s8648_s0, %s8271_s14 }
  0x68   : > { %p8268_p2 = pnand %p8266_p3, %p8226_p7  ;;  %p8274_p1 = scmp.lt.s32.totalorder %s8272_s20, %s8265_s3 }
  0x6a   : > { %p8269_p9 = pneg %p8268_p2  ;;  %p8275_p4 = por %p8274_p1, %p8273_p13 }
  0x6c   : > { %p8276_p5 = pnand %p8275_p4, %p8269_p9 }
  0x6e   : > { %8279 = shalt.err (!%p8276_p5)
}
  0x6f   : > { %7962 = dma.hbm_to_vmem [thread:$0]  (!%p8599_p11), %s8646_s10, 2048, %s8648_s0, %s298_s13, %s10839_s17, %s10839_s17, %s10838_s2  }
  0x70   : > { %320 = sbr.rel (%p8538_p8) target bundleno = 772 (0x304), region = 36 }
  0x75   : > { %s8680_s26 = sand.u32 1, %s8434_s25   ;;  %p10841_p7 = scmp.ne.s32.totalorder %s10828_s30, 0 }
  0x76   : > { %s7928_s21 = smul.u32 216, %s8680_s26  ;;  %s323_s29 = scalar_lea.sflag [#allocation3], %s8680_s26 }
  0x78   : > { %s8684_s16 = scalar_lea.vmem [#allocation2], %s7928_s21 }
  0x79   : > { %8401 = dma.done.wait (%p10841_p7), %s323_s29, 3456  }
  0x7a   : > { %8403 = vsyncadd (%p10841_p7), %s323_s29, 4294963840  ;;  %s331_s0 = sand.u32 1, %s8517_s28   ;;  %s8692_s9 = sshll.u32 %s8680_s26, 7 }
  0x7b   : > { %s332_s13 = scalar_lea.sflag [#allocation6], %s331_s0  ;;  %s8697_s19 = scalar_lea.vmem [#allocation5], %s8692_s9 }
  0x7c   : > { %8405 = dma.done.wait (%p10841_p7), %s332_s13, 2048  }
  0x7d   : > { %8407 = vsyncadd (%p10841_p7), %s332_s13, 4294965248  ;;  %p10842_p8 = scmp.eq.s32.totalorder %s8517_s28, 0 }
  0x7f   : > { %8409 = dma.done.wait (%p10842_p8), [#allocation6], 9216   ;;  %p10843_p11 = pmov %p10842_p8 }
  0x80   : > { %p10844_p6 = pmov %p10842_p8 }
  0x81   : > { %8411 = vsyncadd (%p10843_p11), [#allocation6], 4294958080 }
  0x82   : > { %8413 = dma.done.wait (%p10844_p6), [#allocation9], 1024   ;;  %p10845_p12 = pmov %p10844_p6 }
  0x83   : > { %v8020_v0 = vld [vmem:[#allocation7 + $0x78] sm:$0xff]   ;;  %v8022_v2 = vld [vmem:[#allocation7 + $0x70] sm:$0xff]   ;;  %v8024_v4 = vld [vmem:[#allocation7 + $0x68] sm:$0xff]   ;;  %vm462_vm0 = vsmask.f32 3328  ;;  %vm1492_vm3 = vcmask 1042432  }
  0x84   : > { %8415 = vsyncadd (%p10845_p12), [#allocation9], 4294966272  ;;  %v8021_v1 = vld [vmem:[#allocation7 + $0x38] sm:$0xff]   ;;  %7446 = vmatprep.subr.bf16.mxu0 %v8020_v0  ;;  %v8023_v3 = vld [vmem:[#allocation7 + $0x30] sm:$0xff]   ;;  %vm463_vm1 = vsmask.f32 7440 }
  0x85   : > { %7494 = vmatprep.subr.bf16.mxu1 %v8021_v1  ;;  %7447 = vmatpush3.bf16.msra.mxu0 %v8020_v0  ;;  %v8025_v5 = vld [vmem:[#allocation7 + $0x28] sm:$0xff]   ;;  %v8026_v6 = vld [vmem:[#allocation7 + $0x60] sm:$0xff]   ;;  %v8028_v8 = vld [vmem:[#allocation7 + $0x58] sm:$0xff]   ;;  %vm1493_vm4 = vcmask 1046532   ;;  %s10522_s30 = scalar_lea.vmem [#allocation10], %s8692_s9  ;;  %s10549_s2 = scalar_lea.vmem [#allocation11], %s8692_s9 }
  0x86   : > { %7495 = vmatpush3.bf16.msra.mxu1 %v8021_v1  ;;  %7448 = vmatprep.subr.bf16.mxu0 %v8022_v2  ;;  %v8027_v7 = vld [vmem:[#allocation7 + $0x20] sm:$0xff]   ;;  %v8029_v9 = vld [vmem:[#allocation7 + $0x18] sm:$0xff]   ;;  %v8030_v10 = vld [vmem:[#allocation7 + $0x50] sm:$0xff]   ;;  %s7014_s17 = sshll.u32 %s8517_s28, 11  ;;  %s6126_s10 = sshll.u32 %s10522_s30, 4  ;;  %s10631_s10 = int_to_ptr.vmem [resolvable:$true] %s6126_s10 }
  0x87   : > { %7496 = vmatprep.subr.bf16.mxu1 %v8023_v3  ;;  %v8031_v11 = vld [vmem:[#allocation7 + $0x10] sm:$0xff]   ;;  %v8032_v20 = vld [vmem:[#allocation7 + $0x48] sm:$0xff]   ;;  %v8727_v24 = vld [vmem:[%s8684_s16 + $0x10] sm:$0xf]  ;;  %s10629_s22 = scalar_lea.hbm %s10804_s4, %s7014_s17  ;;  %s6142_s3 = sshll.u32 %s10549_s2, 4  ;;  %s10676_s3 = int_to_ptr.vmem [resolvable:$true] %s6142_s3 }
  0x88   : > { %v398_v12 = vld [vmem:[%s8684_s16] sm:$0xf]  ;;  %v8713_v13 = vld [vmem:[%s8684_s16 + $0x4] sm:$0xf]  ;;  %v8716_v14 = vld [vmem:[%s8684_s16 + $0x8] sm:$0x1] }
  0x89   : > { %7449 = vmatpush3.bf16.msra.mxu0 %v8022_v2  ;;  %v466_v15 = vshrl.u32 %v398_v12, 16  ;;  %v469_v16 = vshll.u32 %v398_v12, 16  ;;  %v475_v17 = vshll.u32 %v8713_v13, 16  ;;  %v479_v18 = vshrl.u32 %v8713_v13, 16  ;;  %v8721_v19 = vld [vmem:[%s8684_s16 + $0xc] sm:$0xf]  ;;  %vm8739_vm2 = vmor %vm462_vm0, %vm463_vm1 }
  0x8a   : > { %7497 = vmatpush3.bf16.msra.mxu1 %v8023_v3  ;;  %7450 = vmatprep.subr.bf16.mxu0 %v8024_v4  ;;  %v485_v21 = vshll.u32 %v8716_v14, 16  ;;  %v1500_v22 = vrot.slane %v8716_v14, 5  ;;  %v6417_v23 = vcombine.low %v398_v12, %v8713_v13  ;;  %v8730_v25 = vld [vmem:[%s8684_s16 + $0x14] sm:$0x1]  ;;  %v490_v31 = vshrl.u32 %v8721_v19, 16  ;;  %v8033_v34 = vld [vmem:[#allocation7 + $0x8] sm:$0xff]   ;;  %vm9040_vm5 = vmor %vm1492_vm3, %vm1493_vm4 }
  0x8b   : > { %7498 = vmatprep.subr.bf16.mxu1 %v8025_v5  ;;  %v468_v26 = vrot.slane %v466_v15, 4  ;;  %v471_v27 = vrot.slane %v469_v16, 5  ;;  %v477_v28 = vrot.slane %v475_v17, 5  ;;  %v481_v29 = vrot.slane %v479_v18, 4  ;;  %v8034_v39 = vld [vmem:[#allocation7 + $0x40] sm:$0xff]   ;;  %v8039_v16 = vld [vmem:[#allocation7 + $0xf8] sm:$0xff]  }
  0x8c   : > { %v487_v30 = vrot.slane %v485_v21, 5  ;;  %v493_v32 = vshll.u32 %v8721_v19, 16  ;;  %v499_v33 = vshll.u32 %v8727_v24, 16  ;;  %7510 = vmatprep.mubr.bf16.mxu1 %v6417_v23  ;;  %v503_v37 = vshrl.u32 %v8727_v24, 16  ;;  %v8745_v49 = vld [vmem:[%s8684_s16 + $0x18] sm:$0xf] }
  0x8d   : > { %7451 = vmatpush3.bf16.msra.mxu0 %v8024_v4  ;;  %v472_v35 = vor.u32 %v471_v27, %v468_v26  ;;  %v482_v36 = vor.u32 %v481_v29, %v477_v28  ;;  %v509_v38 = vshll.u32 %v8730_v25, 16  ;;  %v492_v41 = vrot.slane %v490_v31, 4  ;;  %v8750_v52 = vld [vmem:[%s8684_s16 + $0x1c] sm:$0xf]  ;;  %v8753_v53 = vld [vmem:[%s8684_s16 + $0x20] sm:$0x1] }
  0x8e   : > { %7499 = vmatpush3.bf16.msra.mxu1 %v8025_v5  ;;  %7452 = vmatprep.subr.bf16.mxu0 %v8026_v6  ;;  %v495_v42 = vrot.slane %v493_v32, 5  ;;  %v501_v43 = vrot.slane %v499_v33, 5  ;;  %v1507_v44 = vrot.slane %v8730_v25, 5  ;;  %v505_v47 = vrot.slane %v503_v37, 4  ;;  %v8035_v56 = vld [vmem:[#allocation7] sm:$0xff]   ;;  %v8042_v37 = vld [vmem:[#allocation7 + $0xb0] sm:$0xff]  }
  0x8f   : > { %7500 = vmatprep.subr.bf16.mxu1 %v8027_v7  ;;  %v473_v45 = vrot.slane %v472_v35, 4  ;;  %v483_v46 = vrot.slane %v482_v36, 4  ;;  %v511_v48 = vrot.slane %v509_v38, 5  ;;  %v6418_v51 = vcombine.low %v8721_v19, %v8727_v24  ;;  %v8763_v61 = vld [vmem:[%s8684_s16 + $0x24] sm:$0xf]  ;;  %s6098_s18 = scalar_lea.sflag [#allocation4], %s8680_s26 }
  0x90   : > { %v496_v50 = vor.u32 %v495_v42, %v492_v41  ;;  %v514_v54 = vshrl.u32 %v8745_v49, 16  ;;  %v517_v55 = vshll.u32 %v8745_v49, 16  ;;  %v506_v59 = vor.u32 %v505_v47, %v501_v43  ;;  %v8766_v62 = vld [vmem:[%s8684_s16 + $0x28] sm:$0xf]  ;;  %v8769_v3 = vld [vmem:[%s8684_s16 + $0x2c] sm:$0x1] }
  0x91   : > { %7453 = vmatpush3.bf16.msra.mxu0 %v8026_v6  ;;  %v478_v57 = vsel %vm8739_vm2, %v473_v45, %v477_v28  ;;  %v488_v58 = vsel %vm8739_vm2, %v483_v46, %v487_v30  ;;  %v523_v60 = vshll.u32 %v8750_v52, 16  ;;  %v527_v6 = vshrl.u32 %v8750_v52, 16  ;;  %v8783_v28 = vld [vmem:[%s8684_s16 + $0x30] sm:$0xf]  ;;  %v8788_v33 = vld [vmem:[%s8684_s16 + $0x34] sm:$0xf] }
  0x92   : > { %7501 = vmatpush3.bf16.msra.mxu1 %v8027_v7  ;;  %7454 = vmatprep.subr.bf16.mxu0 %v8028_v8  ;;  %v6393_v63 = vcombine.low %v478_v57, %v488_v58  ;;  %v497_v0 = vrot.slane %v496_v50, 4  ;;  %v516_v1 = vrot.slane %v514_v54, 4  ;;  %v519_v2 = vrot.slane %v517_v55, 5  ;;  %v8795_v38 = vld [vmem:[%s8684_s16 + $0x38] sm:$0x1]  ;;  %v8043_v46 = vld [vmem:[#allocation7 + $0xf0] sm:$0xff]  }
  0x93   : > { %7502 = vmatprep.subr.bf16.mxu1 %v8029_v9  ;;  %v507_v4 = vrot.slane %v506_v59, 4  ;;  %v525_v5 = vrot.slane %v523_v60, 5  ;;  %v533_v7 = vshll.u32 %v8753_v53, 16  ;;  %v538_v12 = vshrl.u32 %v8763_v61, 16  ;;  %v8799_v47 = vld [vmem:[%s8684_s16 + $0x3c] sm:$0xf] }
  0x94   : > { %7462 = vmatprep.mubr.bf16.mxu0 %v6393_v63  ;;  %v529_v17 = vrot.slane %v527_v6, 4  ;;  %v547_v27 = vshll.u32 %v8766_v62, 16  ;;  %v551_v31 = vshrl.u32 %v8766_v62, 16  ;;  %v557_v32 = vshll.u32 %v8769_v3, 16  ;;  %v8805_v55 = vld [vmem:[%s8684_s16 + $0x40] sm:$0xf] }
  0x95   : > { %7455 = vmatpush3.bf16.msra.mxu0 %v8028_v8  ;;  %v502_v8 = vsel %vm8739_vm2, %v497_v0, %v501_v43  ;;  %v512_v15 = vsel %vm8739_vm2, %v507_v4, %v511_v48  ;;  %v535_v18 = vrot.slane %v533_v7, 5  ;;  %v540_v26 = vrot.slane %v538_v12, 4  ;;  %v8046_v4 = vld [vmem:[#allocation7 + $0xa8] sm:$0xff]   ;;  %v8823_v12 = vld [vmem:[%s8684_s16 + $0x48] sm:$0xf]  ;;  %s8280_s14 = scalar_lea.vmem %s10631_s10, 2048 }
  0x96   : > { %7503 = vmatpush3.bf16.msra.mxu1 %v8029_v9  ;;  %7456 = vmatprep.subr.bf16.mxu0 %v8030_v10  ;;  %v8038_v9 = vld [vmem:[#allocation7 + $0xb8] sm:$0xff]   ;;  %v6394_v21 = vcombine.low %v502_v8, %v512_v15  ;;  %v530_v29 = vor.u32 %v529_v17, %v525_v5  ;;  %v549_v35 = vrot.slane %v547_v27, 5  ;;  %v6420_v36 = vcombine.low %v8763_v61, %v8766_v62  ;;  %v8047_v7 = vld [vmem:[#allocation7 + $0xe8] sm:$0xff]   ;;  %p8281_p0 = scmp.ne.s32.totalorder %s10631_s10, %s8280_s14  ;;  %p10934_p10 = scmp.ne.s32.totalorder %s10834_s12, 0 }
  0x97   : > { %7504 = vmatprep.subr.bf16.mxu1 %v8031_v11  ;;  %v553_v43 = vrot.slane %v551_v31, 4  ;;  %v559_v45 = vrot.slane %v557_v32, 5  ;;  %v571_v50 = vshll.u32 %v8788_v33, 16  ;;  %v575_v54 = vshrl.u32 %v8788_v33, 16  ;;  %v1450_v25 = vld [vmem:[%s8684_s16 + $0x48] sm:$0xe] }
  0x98   : > { %v531_v41 = vrot.slane %v530_v29, 4  ;;  %v581_v60 = vshll.u32 %v8795_v38, 16  ;;  %v6421_v6 = vcombine.low %v8783_v28, %v8788_v33  ;;  %v599_v17 = vshrl.u32 %v8805_v55, 16  ;;  %v8050_v29 = vld [vmem:[#allocation7 + $0xa0] sm:$0xff]   ;;  %p8282_p3 = pnand %p8281_p0, %p10934_p10  ;;  %s8450_s20 = smov [#allocation10]  }
  0x99   : > { %7457 = vmatpush3.bf16.msra.mxu0 %v8030_v10  ;;  %v520_v10 = vor.u32 %v519_v2, %v516_v1  ;;  %v554_v59 = vor.u32 %v553_v43, %v549_v35  ;;  %v573_v1 = vrot.slane %v571_v50, 5  ;;  %v577_v2 = vrot.slane %v575_v54, 4  ;;  %v8051_v43 = vld [vmem:[#allocation7 + $0xe0] sm:$0xff]   ;;  %s8284_s21 = sshll.u32 %s8450_s20, 4  ;;  %s8285_s21 = int_to_ptr.vmem [resolvable:$false] %s8284_s21 }
  0x9a   : > { %7505 = vmatpush3.bf16.msra.mxu1 %v8031_v11  ;;  %7458 = vmatprep.subr.bf16.mxu0 %v8032_v20  ;;  %v6419_v11 = vcombine.low %v8745_v49, %v8750_v52  ;;  %v565_v49 = vshll.u32 %v8783_v28, 16  ;;  %v536_v57 = vsel %vm8739_vm2, %v531_v41, %v535_v18  ;;  %v601_v32 = vrot.slane %v599_v17, 4  ;;  %p8283_p2 = pneg %p8282_p3  ;;  %s8286_s29 = scalar_lea.vmem %s8285_s21, 4096 }
  0x9b   : > { %7506 = vmatprep.subr.bf16.mxu1 %v8033_v34  ;;  %v521_v23 = vrot.slane %v520_v10, 4  ;;  %v586_v10 = vshrl.u32 %v8799_v47, 16  ;;  %v6422_v41 = vcombine.low %v8799_v47, %v8805_v55  ;;  %p8287_p9 = scmp.lt.s32.totalorder %s10631_s10, %s8285_s21  ;;  %p8288_p13 = scmp.lt.s32.totalorder %s8286_s29, %s8280_s14 }
  0x9c   : > { %v567_v0 = vrot.slane %v565_v49, 5  ;;  %v613_v49 = vshll.u32 %v8823_v12, 16 }
  0x9d   : > { %7459 = vmatpush3.bf16.msra.mxu0 %v8032_v20  ;;  %v541_v20 = vshll.u32 %v8763_v61, 16  ;;  %v588_v27 = vrot.slane %v586_v10, 4  ;;  %v8058_v10 = vld [vmem:[#allocation7 + $0x90] sm:$0xff]   ;;  %p8289_p1 = por %p8288_p13, %p8287_p9 }
  0x9e   : > { %7507 = vmatpush3.bf16.msra.mxu1 %v8033_v34  ;;  %7460 = vmatprep.subr.bf16.mxu0 %v8034_v39  ;;  %v526_v34 = vsel %vm8739_vm2, %v521_v23, %v525_v5  ;;  %v583_v5 = vrot.slane %v581_v60, 5 }
  0x9f   : > { %7508 = vmatprep.subr.bf16.mxu1 %v8035_v56  ;;  %v543_v30 = vrot.slane %v541_v20, 5  ;;  %v6395_v63 = vcombine.low %v526_v34, %v536_v57  ;;  %v8831_v20 = vld [vmem:[%s8684_s16 + $0x4c] sm:$0xf]  ;;  %p8290_p4 = pnand %p8289_p1, %p8283_p2 }
  0xa0   : > { %v623_v54 = vshrl.u32 %v8831_v20, 16  ;;  %v6423_v60 = vcombine.low %v8823_v12, %v8831_v20 }
  0xa1   : > { %7461 = vmatpush3.bf16.msra.mxu0 %v8034_v39  ;;  %v562_v39 = vshrl.u32 %v8783_v28, 16  ;;  %v544_v42 = vor.u32 %v543_v30, %v540_v26  ;;  %v8834_v28 = vld [vmem:[%s8684_s16 + $0x50] sm:$0x1] }
  0xa2   : > { %7509 = vmatpush3.bf16.msra.mxu1 %v8035_v56  ;;  %7542 = vmatprep.subr.bf16.mxu0 %v8038_v9  ;;  %v8808_v56 = vld [vmem:[%s8684_s16 + $0x44] sm:$0x1]  ;;  %v629_v57 = vshll.u32 %v8834_v28, 16 }
  0xa3   : > { %7590 = vmatprep.subr.bf16.mxu1 %v8039_v16  ;;  %v564_v48 = vrot.slane %v562_v39, 4  ;;  %v545_v58 = vrot.slane %v544_v42, 4  ;;  %v605_v18 = vshll.u32 %v8808_v56, 16  ;;  %v610_v42 = vshrl.u32 %v8823_v12, 16 }
  0xa4   : > { %7463 = vmatmul.mubr.bf16.vlgmr.msra.gmra.mxu0 %v6394_v21 }
  0xa5   : > { %7511 = vmatmul.mubr.bf16.vlgmr.msra.gmra.mxu1 %v6418_v51  ;;  %7543 = vmatpush3.bf16.msra.mxu0 %v8038_v9  ;;  %v550_v19 = vsel %vm8739_vm2, %v545_v58, %v549_v35  ;;  %v555_v51 = vrot.slane %v554_v59, 4  ;;  %v568_v8 = vor.u32 %v567_v0, %v564_v48  ;;  %v578_v9 = vor.u32 %v577_v2, %v573_v1  ;;  %v8837_v35 = vld [vmem:[%s8684_s16 + $0x54] sm:$0xf] }
  0xa6   : > { %7591 = vmatpush3.bf16.msra.mxu1 %v8039_v16  ;;  %7514 = vmatprep.mubr.bf16.mxu1 %v6419_v11  ;;  %v589_v11 = vshll.u32 %v8799_v47, 16  ;;  %v595_v16 = vshll.u32 %v8805_v55, 16  ;;  %v607_v34 = vrot.slane %v605_v18, 5  ;;  %v612_v50 = vrot.slane %v610_v42, 4  ;;  %v8054_v58 = vld [vmem:[#allocation7 + $0x98] sm:$0xff]  }
  0xa7   : > { %7544 = vmatprep.subr.bf16.mxu0 %v8042_v37  ;;  %7592 = vmatprep.subr.bf16.mxu1 %v8043_v46  ;;  %v560_v15 = vsel %vm8739_vm2, %v555_v51, %v559_v45  ;;  %v569_v23 = vrot.slane %v568_v8, 4  ;;  %v579_v26 = vrot.slane %v578_v9, 4  ;;  %v619_v47 = vshll.u32 %v8831_v20, 16  ;;  %v8055_v0 = vld [vmem:[#allocation7 + $0xd8] sm:$0xff]   ;;  %v8868_v9 = vld [vmem:[%s8684_s16 + $0x60] sm:$0xf] }
  0xa8   : > { %7466 = vmatprep.mubr.bf16.mxu0 %v6395_v63  ;;  %v6396_v21 = vcombine.low %v550_v19, %v560_v15  ;;  %v591_v30 = vrot.slane %v589_v11, 5  ;;  %v597_v31 = vrot.slane %v595_v16, 5  ;;  %v615_v59 = vrot.slane %v613_v49, 5  ;;  %v8856_v63 = vld [vmem:[%s8684_s16 + $0x58] sm:$0xf]  ;;  %v8059_v11 = vld [vmem:[#allocation7 + $0xd0] sm:$0xff]  }
  0xa9   : > { %7545 = vmatpush3.bf16.msra.mxu0 %v8042_v37  ;;  %v574_v37 = vsel %vm8739_vm2, %v569_v23, %v573_v1  ;;  %v584_v39 = vsel %vm8739_vm2, %v579_v26, %v583_v5  ;;  %v621_v1 = vrot.slane %v619_v47, 5  ;;  %v625_v2 = vrot.slane %v623_v54, 4  ;;  %v8859_v19 = vld [vmem:[%s8684_s16 + $0x5c] sm:$0x1]  ;;  %v8872_v18 = vld [vmem:[%s8684_s16 + $0x64] sm:$0xf] }
  0xaa   : > { %7593 = vmatpush3.bf16.msra.mxu1 %v8043_v46  ;;  %7546 = vmatprep.subr.bf16.mxu0 %v8046_v4  ;;  %v6397_v45 = vcombine.low %v574_v37, %v584_v39  ;;  %v592_v46 = vor.u32 %v591_v30, %v588_v27  ;;  %v602_v48 = vor.u32 %v601_v32, %v597_v31  ;;  %v634_v51 = vshrl.u32 %v8837_v35, 16  ;;  %v8062_v49 = vld [vmem:[#allocation7 + $0x88] sm:$0xff]  }
  0xab   : > { %7594 = vmatprep.subr.bf16.mxu1 %v8047_v7  ;;  %v637_v8 = vshll.u32 %v8837_v35, 16  ;;  %v626_v15 = vor.u32 %v625_v2, %v621_v1  ;;  %v643_v17 = vshll.u32 %v8856_v63, 16  ;;  %v647_v26 = vshrl.u32 %v8856_v63, 16 }
  0xac   : > { %7467 = vmatmul.mubr.bf16.gmra.mxu0 %v6396_v21  ;;  %v593_v61 = vrot.slane %v592_v46, 4  ;;  %v636_v16 = vrot.slane %v634_v51, 4  ;;  %v653_v27 = vshll.u32 %v8859_v19, 16  ;;  %v658_v32 = vshrl.u32 %v8868_v9, 16 }
  0xad   : > { %7515 = vmatmul.mubr.bf16.gmra.mxu1 %v6420_v36  ;;  %7547 = vmatpush3.bf16.msra.mxu0 %v8046_v4  ;;  %v603_v36 = vrot.slane %v602_v48, 4  ;;  %v631_v4 = vrot.slane %v629_v57, 5  ;;  %v639_v23 = vrot.slane %v637_v8, 5  ;;  %v645_v30 = vrot.slane %v643_v17, 5 }
  0xae   : > { %7518 = vmatprep.mubr.bf16.mxu1 %v6421_v6  ;;  %7595 = vmatpush3.bf16.msra.mxu1 %v8047_v7  ;;  %v598_v5 = vsel %vm8739_vm2, %v593_v61, %v597_v31  ;;  %v616_v7 = vor.u32 %v615_v59, %v612_v50  ;;  %v6424_v31 = vcombine.low %v8837_v35, %v8856_v63  ;;  %v649_v39 = vrot.slane %v647_v26, 4  ;;  %v8063_v61 = vld [vmem:[#allocation7 + $0xc8] sm:$0xff]  }
  0xaf   : > { %7470 = vmatprep.mubr.bf16.mxu0 %v6397_v45  ;;  %7548 = vmatprep.subr.bf16.mxu0 %v8050_v29  ;;  %v608_v6 = vsel %vm8739_vm2, %v603_v36, %v607_v34  ;;  %v640_v37 = vor.u32 %v639_v23, %v636_v16  ;;  %v655_v42 = vrot.slane %v653_v27, 5  ;;  %v660_v46 = vrot.slane %v658_v32, 4  ;;  %v8066_v16 = vld [vmem:[#allocation7 + $0x80] sm:$0xff]  }
  0xb0   : > { %7596 = vmatprep.subr.bf16.mxu1 %v8051_v43  ;;  %v6398_v12 = vcombine.low %v598_v5, %v608_v6  ;;  %v617_v21 = vrot.slane %v616_v7, 4  ;;  %v661_v35 = vshll.u32 %v8868_v9, 16  ;;  %v667_v48 = vshll.u32 %v8872_v18, 16  ;;  %v8905_v6 = vld [vmem:[%s8684_s16 + $0x78] sm:$0xf] }
  0xb1   : > { %7549 = vmatpush3.bf16.msra.mxu0 %v8050_v29  ;;  %v627_v29 = vrot.slane %v626_v15, 4  ;;  %v641_v47 = vrot.slane %v640_v37, 4  ;;  %v650_v54 = vor.u32 %v649_v39, %v645_v30  ;;  %v671_v57 = vshrl.u32 %v8872_v18, 16  ;;  %v8067_v32 = vld [vmem:[#allocation7 + $0xc0] sm:$0xff]  }
  0xb2   : > { %7597 = vmatpush3.bf16.msra.mxu1 %v8051_v43  ;;  %7550 = vmatprep.subr.bf16.mxu0 %v8054_v58  ;;  %v622_v34 = vsel %vm8739_vm2, %v617_v21, %v621_v1  ;;  %v8882_v43 = vld [vmem:[%s8684_s16 + $0x68] sm:$0x1]  ;;  %v663_v36 = vrot.slane %v661_v35, 5  ;;  %v669_v59 = vrot.slane %v667_v48, 5  ;;  %v8899_v1 = vld [vmem:[%s8684_s16 + $0x74] sm:$0x1] }
  0xb3   : > { %7598 = vmatprep.subr.bf16.mxu1 %v8055_v0  ;;  %v632_v45 = vsel %vm8739_vm2, %v627_v29, %v631_v4  ;;  %v646_v2 = vsel %vm8739_vm2, %v641_v47, %v645_v30  ;;  %v651_v4 = vrot.slane %v650_v54, 4  ;;  %v673_v51 = vrot.slane %v671_v57, 4  ;;  %v8925_v48 = vld [vmem:[#allocation7 + $0x138] sm:$0xff]   ;;  %v8931_v54 = vld [vmem:[%s8684_s16 + $0x84] sm:$0xf] }
  0xb4   : > { %7471 = vmatmul.mubr.bf16.gmra.mxu0 %v6398_v12  ;;  %v6399_v50 = vcombine.low %v622_v34, %v632_v45  ;;  %v664_v7 = vor.u32 %v663_v36, %v660_v46  ;;  %v8921_v46 = vld [vmem:[%s8684_s16 + $0x80] sm:$0x1]  ;;  %v709_v35 = vshll.u32 %v8905_v6, 16  ;;  %v8934_v57 = vld [vmem:[%s8684_s16 + $0x88] sm:$0xf] }
  0xb5   : > { %7519 = vmatmul.mubr.bf16.gmra.mxu1 %v6422_v41  ;;  %7551 = vmatpush3.bf16.msra.mxu0 %v8054_v58  ;;  %v8889_v41 = vld [vmem:[%s8684_s16 + $0x6c] sm:$0xf]  ;;  %v8893_v58 = vld [vmem:[%s8684_s16 + $0x70] sm:$0xf]  ;;  %v656_v17 = vsel %vm8739_vm2, %v651_v4, %v655_v42  ;;  %v674_v21 = vor.u32 %v673_v51, %v669_v59 }
  0xb6   : > { %7522 = vmatprep.mubr.bf16.mxu1 %v6423_v60  ;;  %7599 = vmatpush3.bf16.msra.mxu1 %v8055_v0  ;;  %v677_v60 = vshll.u32 %v8882_v43, 16  ;;  %v6425_v0 = vcombine.low %v8868_v9, %v8872_v18  ;;  %v682_v5 = vshrl.u32 %v8889_v41, 16  ;;  %v685_v12 = vshll.u32 %v8889_v41, 16  ;;  %v8910_v9 = vld [vmem:[%s8684_s16 + $0x7c] sm:$0xf]  ;;  %v8939_v4 = vld [vmem:[#allocation7 + $0x178] sm:$0xff]  }
  0xb7   : > { %7552 = vmatprep.subr.bf16.mxu0 %v8058_v10  ;;  %7600 = vmatprep.subr.bf16.mxu1 %v8059_v11  ;;  %v691_v15 = vshll.u32 %v8893_v58, 16  ;;  %v695_v26 = vshrl.u32 %v8893_v58, 16  ;;  %v665_v27 = vrot.slane %v664_v7, 4  ;;  %v675_v34 = vrot.slane %v674_v21, 4 }
  0xb8   : > { %7474 = vmatprep.mubr.bf16.mxu0 %v6399_v50  ;;  %v679_v8 = vrot.slane %v677_v60, 5  ;;  %v684_v23 = vrot.slane %v682_v5, 4  ;;  %v687_v29 = vrot.slane %v685_v12, 5  ;;  %v6426_v39 = vcombine.low %v8889_v41, %v8893_v58  ;;  %v8944_v12 = vld [vmem:[%s8684_s16 + $0x90] sm:$0xf] }
  0xb9   : > { %7553 = vmatpush3.bf16.msra.mxu0 %v8058_v10  ;;  %v6400_v10 = vcombine.low %v646_v2, %v656_v17  ;;  %v693_v30 = vrot.slane %v691_v15, 5  ;;  %v697_v37 = vrot.slane %v695_v26, 4  ;;  %v670_v42 = vsel %vm8739_vm2, %v665_v27, %v669_v59  ;;  %v8937_v2 = vld [vmem:[%s8684_s16 + $0x8c] sm:$0x1] }
  0xba   : > { %7601 = vmatpush3.bf16.msra.mxu1 %v8059_v11  ;;  %7554 = vmatprep.subr.bf16.mxu0 %v8062_v49  ;;  %v701_v11 = vshll.u32 %v8899_v1, 16  ;;  %v688_v45 = vor.u32 %v687_v29, %v684_v23  ;;  %v680_v50 = vsel %vm8739_vm2, %v675_v34, %v679_v8  ;;  %v715_v47 = vshll.u32 %v8910_v9, 16 }
  0xbb   : > { %7602 = vmatprep.subr.bf16.mxu1 %v8063_v61  ;;  %v698_v41 = vor.u32 %v697_v37, %v693_v30  ;;  %v6401_v36 = vcombine.low %v670_v42, %v680_v50  ;;  %v719_v7 = vshrl.u32 %v8910_v9, 16  ;;  %v725_v8 = vshll.u32 %v8921_v46, 16 }
  0xbc   : > { %7475 = vmatmul.mubr.bf16.gmra.mxu0 %v6400_v10  ;;  %v689_v59 = vrot.slane %v688_v45, 4  ;;  %v717_v5 = vrot.slane %v715_v47, 5  ;;  %v6427_v17 = vcombine.low %v8905_v6, %v8910_v9  ;;  %v730_v21 = vshrl.u32 %v8931_v54, 16  ;;  %v8960_v45 = vld [vmem:[%s8684_s16 + $0x94] sm:$0xf] }
  0xbd   : > { %7523 = vmatmul.mubr.bf16.gmra.mxu1 %v6424_v31  ;;  %7555 = vmatpush3.bf16.msra.mxu0 %v8062_v49  ;;  %v706_v31 = vshrl.u32 %v8905_v6, 16  ;;  %v703_v49 = vrot.slane %v701_v11, 5  ;;  %v699_v51 = vrot.slane %v698_v41, 4  ;;  %v721_v26 = vrot.slane %v719_v7, 4  ;;  %v8977_v7 = vld [vmem:[%s8684_s16 + $0xa0] sm:$0xf] }
  0xbe   : > { %7526 = vmatprep.mubr.bf16.mxu1 %v6425_v0  ;;  %7603 = vmatpush3.bf16.msra.mxu1 %v8063_v61  ;;  %v711_v0 = vrot.slane %v709_v35, 5  ;;  %v694_v61 = vsel %vm8739_vm2, %v689_v59, %v693_v30  ;;  %v727_v10 = vrot.slane %v725_v8, 5  ;;  %v732_v30 = vrot.slane %v730_v21, 4  ;;  %v8967_v35 = vld [vmem:[%s8684_s16 + $0x98] sm:$0x1] }
  0xbf   : > { %7556 = vmatprep.subr.bf16.mxu0 %v8066_v16  ;;  %v708_v60 = vrot.slane %v706_v31, 4  ;;  %7604 = vmatprep.subr.bf16.mxu1 %v8067_v32  ;;  %v704_v23 = vsel %vm8739_vm2, %v699_v51, %v703_v49  ;;  %v739_v34 = vshll.u32 %v8934_v57, 16  ;;  %v722_v6 = vor.u32 %v721_v26, %v717_v5  ;;  %v8971_v59 = vld [vmem:[%s8684_s16 + $0x9c] sm:$0xf] }
  0xc0   : > { %7478 = vmatprep.mubr.bf16.mxu0 %v6401_v36  ;;  %v6402_v27 = vcombine.low %v694_v61, %v704_v23  ;;  %v743_v11 = vshrl.u32 %v8934_v57, 16  ;;  %v749_v42 = vshll.u32 %v8937_v2, 16  ;;  %v754_v50 = vshrl.u32 %v8944_v12, 16 }
  0xc1   : > { %7557 = vmatpush3.bf16.msra.mxu0 %v8066_v16  ;;  %v712_v15 = vor.u32 %v711_v0, %v708_v60  ;;  %v733_v16 = vshll.u32 %v8931_v54, 16  ;;  %v741_v31 = vrot.slane %v739_v34, 5  ;;  %v723_v41 = vrot.slane %v722_v6, 4  ;;  %v426_v6 = vld [vmem:[%s8684_s16 + $0xa8] sm:$0xf] }
  0xc2   : > { %7638 = vmatprep.subr.bf16.mxu0 %v8925_v48  ;;  %7605 = vmatpush3.bf16.msra.mxu1 %v8067_v32  ;;  %v745_v47 = vrot.slane %v743_v11, 4  ;;  %v751_v36 = vrot.slane %v749_v42, 5  ;;  %v756_v60 = vrot.slane %v754_v50, 4  ;;  %v757_v0 = vshll.u32 %v8944_v12, 16 }
  0xc3   : > { %v713_v29 = vrot.slane %v712_v15, 4  ;;  %7686 = vmatprep.subr.bf16.mxu1 %v8939_v4  ;;  %v735_v37 = vrot.slane %v733_v16, 5  ;;  %v763_v51 = vshll.u32 %v8960_v45, 16  ;;  %v728_v8 = vsel %vm8739_vm2, %v723_v41, %v727_v10 }
  0xc4   : > { %7479 = vmatmul.mubr.bf16.gmra.mxu0 %v6402_v27  ;;  %v746_v15 = vor.u32 %v745_v47, %v741_v31  ;;  %v759_v23 = vrot.slane %v757_v0, 5  ;;  %v6429_v34 = vcombine.low %v8944_v12, %v8960_v45  ;;  %v778_v11 = vshrl.u32 %v8971_v59, 16  ;;  %v8998_v12 = vld [vmem:[%s8684_s16 + $0xac] sm:$0xf] }
  0xc5   : > { %7527 = vmatmul.mubr.bf16.gmra.mxu1 %v6426_v39  ;;  %v718_v32 = vsel %vm8739_vm2, %v713_v29, %v717_v5  ;;  %v6428_v39 = vcombine.low %v8931_v54, %v8934_v57  ;;  %v736_v49 = vor.u32 %v735_v37, %v732_v30  ;;  %v767_v5 = vshrl.u32 %v8960_v45, 16  ;;  %v8980_v54 = vld [vmem:[%s8684_s16 + $0xa4] sm:$0x1] }
  0xc6   : > { %7530 = vmatprep.mubr.bf16.mxu1 %v6427_v17  ;;  %v773_v17 = vshll.u32 %v8967_v35, 16  ;;  %v6403_v21 = vcombine.low %v718_v32, %v728_v8  ;;  %v765_v26 = vrot.slane %v763_v51, 5  ;;  %v747_v29 = vrot.slane %v746_v15, 4 }
  0xc7   : > { %v737_v61 = vrot.slane %v736_v49, 4  ;;  %v769_v16 = vrot.slane %v767_v5, 4  ;;  %v760_v10 = vor.u32 %v759_v23, %v756_v60  ;;  %v781_v42 = vshll.u32 %v8971_v59, 16  ;;  %v9001_v49 = vld [vmem:[%s8684_s16 + $0xb0] sm:$0x1] }
  0xc8   : > { %v775_v30 = vrot.slane %v773_v17, 5  ;;  %7482 = vmatprep.mubr.bf16.mxu0 %v6403_v21  ;;  %v752_v32 = vsel %vm8739_vm2, %v747_v29, %v751_v36  ;;  %v791_v50 = vshrl.u32 %v8977_v7, 16  ;;  %v797_v41 = vshll.u32 %v8980_v54, 16 }
  0xc9   : > { %v742_v27 = vsel %vm8739_vm2, %v737_v61, %v741_v31  ;;  %v770_v37 = vor.u32 %v769_v16, %v765_v26  ;;  %v787_v31 = vshll.u32 %v8977_v7, 16  ;;  %v761_v60 = vrot.slane %v760_v10, 4  ;;  %v9004_v61 = vld [vmem:[%s8684_s16 + $0xb4] sm:$0xf]  ;;  %v9013_v10 = vld [vmem:[%s8684_s16 + $0xb8] sm:$0xf] }
  0xca   : > { %v6404_v47 = vcombine.low %v742_v27, %v752_v32  ;;  %v780_v51 = vrot.slane %v778_v11, 4  ;;  %v793_v5 = vrot.slane %v791_v50, 4  ;;  %v799_v8 = vrot.slane %v797_v41, 5  ;;  %v9019_v32 = vld [vmem:[%s8684_s16 + $0xbc] sm:$0x1] }
  0xcb   : > { %v771_v0 = vrot.slane %v770_v37, 4  ;;  %v789_v36 = vrot.slane %v787_v31, 5  ;;  %v766_v15 = vsel %vm8739_vm2, %v761_v60, %v765_v26  ;;  %v6430_v21 = vcombine.low %v8971_v59, %v8977_v7  ;;  %v1444_v41 = vld [vmem:[%s8684_s16] sm:$0xe] }
  0xcc   : > { %7483 = vmatmul.mubr.bf16.gmra.mxu0 %v6404_v47  ;;  %v802_v23 = vshrl.u32 %v426_v6, 16  ;;  %v811_v11 = vshll.u32 %v8998_v12, 16  ;;  %v821_v26 = vshll.u32 %v9001_v49, 16  ;;  %v6431_v50 = vcombine.low %v426_v6, %v8998_v12 }
  0xcd   : > { %7531 = vmatmul.mubr.bf16.gmra.mxu1 %v6428_v39  ;;  %v783_v39 = vrot.slane %v781_v42, 5  ;;  %v776_v17 = vsel %vm8739_vm2, %v771_v0, %v775_v30  ;;  %v794_v29 = vor.u32 %v793_v5, %v789_v36  ;;  %v815_v42 = vshrl.u32 %v8998_v12, 16 }
  0xce   : > { %7534 = vmatprep.mubr.bf16.mxu1 %v6429_v34  ;;  %v6405_v16 = vcombine.low %v766_v15, %v776_v17  ;;  %v805_v34 = vshll.u32 %v426_v6, 16  ;;  %v804_v37 = vrot.slane %v802_v23, 4  ;;  %v813_v47 = vrot.slane %v811_v11, 5  ;;  %v1445_v23 = vld [vmem:[%s8684_s16 + $0xc] sm:$0xe] }
  0xcf   : > { %v784_v27 = vor.u32 %v783_v39, %v780_v51  ;;  %v795_v30 = vrot.slane %v794_v29, 4  ;;  %v817_v60 = vrot.slane %v815_v42, 4  ;;  %v823_v0 = vrot.slane %v821_v26, 5 }
  0xd0   : > { %7486 = vmatprep.mubr.bf16.mxu0 %v6405_v16  ;;  %v807_v31 = vrot.slane %v805_v34, 5  ;;  %v826_v51 = vshrl.u32 %v9004_v61, 16  ;;  %v829_v17 = vshll.u32 %v9004_v61, 16  ;;  %v835_v29 = vshll.u32 %v9013_v10, 16  ;;  %v1446_v34 = vld [vmem:[%s8684_s16 + $0x18] sm:$0xe] }
  0xd1   : > { %v785_v59 = vrot.slane %v784_v27, 4  ;;  %v800_v5 = vsel %vm8739_vm2, %v795_v30, %v799_v8  ;;  %v818_v6 = vor.u32 %v817_v60, %v813_v47  ;;  %v845_v26 = vshll.u32 %v9019_v32, 16 }
  0xd2   : > { %v808_v15 = vor.u32 %v807_v31, %v804_v37  ;;  %v828_v27 = vrot.slane %v826_v51, 4  ;;  %v831_v42 = vrot.slane %v829_v17, 5  ;;  %v6432_v37 = vcombine.low %v9004_v61, %v9013_v10 }
  0xd3   : > { %v790_v39 = vsel %vm8739_vm2, %v785_v59, %v789_v36  ;;  %v839_v36 = vshrl.u32 %v9013_v10, 16  ;;  %v819_v8 = vrot.slane %v818_v6, 4  ;;  %v6441_v59 = vrot.slane %v1444_v41, 9 }
  0xd4   : > { %v6406_v16 = vcombine.low %v790_v39, %v800_v5  ;;  %v809_v11 = vrot.slane %v808_v15, 4  ;;  %v832_v31 = vor.u32 %v831_v42, %v828_v27  ;;  %v847_v60 = vrot.slane %v845_v26, 5  ;;  %v8068_v5 = vld [vmem:[%s8684_s16 + $0xc] sm:$0xff]   ;;  %v1447_v27 = vld [vmem:[%s8684_s16 + $0x24] sm:$0xe] }
  0xd5   : > { %7535 = vmatmul.mubr.bf16.gmra.mxu1 %v6430_v21  ;;  %v837_v21 = vrot.slane %v835_v29, 5  ;;  %v824_v39 = vsel %vm8739_vm2, %v819_v8, %v823_v0  ;;  %v1497_v61 = vrot.slane %v8713_v13, 5  ;;  %v6442_v41 = vrot.slane %v1445_v23, 9  ;;  %v1448_v13 = vld [vmem:[%s8684_s16 + $0x30] sm:$0xe] }
  0xd6   : > { %7538 = vmatprep.mubr.bf16.mxu1 %v6431_v50  ;;  %7487 = vmatmul.mubr.bf16.gmra.mxu0 %v6406_v16  ;;  %v814_v30 = vsel %vm8739_vm2, %v809_v11, %v813_v47  ;;  %v841_v50 = vrot.slane %v839_v36, 4  ;;  %v1504_v15 = vrot.slane %v8727_v24, 5  ;;  %v833_v17 = vrot.slane %v832_v31, 4  ;;  %v1449_v26 = vld [vmem:[%s8684_s16 + $0x3c] sm:$0xe] }
  0xd7   : > { %v6407_v47 = vcombine.low %v814_v30, %v824_v39  ;;  %v6443_v6 = vrot.slane %v1446_v34, 9  ;;  %v1498_v29 = vsel %vm9040_vm5, %v6441_v59, %v1497_v61  ;;  %v1499_v11 = vrot.slane %v1497_v61, 4  ;;  %v8069_v30 = vld [vmem:[%s8684_s16 + $0x18] sm:$0xff]   ;;  %v1451_v39 = vld [vmem:[%s8684_s16 + $0x54] sm:$0xe] }
  0xd8   : > { %v842_v16 = vor.u32 %v841_v50, %v837_v21  ;;  %v9054_v42 = vsel %vm9040_vm5, %v6442_v41, %v1504_v15  ;;  %v1506_v0 = vrot.slane %v1504_v15, 4  ;;  %v838_v24 = vsel %vm8739_vm2, %v833_v17, %v837_v21 }
  0xd9   : > { %7490 = vmatprep.mubr.bf16.mxu0 %v6407_v47  ;;  %v1511_v34 = vrot.slane %v8750_v52, 5  ;;  %v1514_v36 = vrot.slane %v8753_v53, 5  ;;  %v1501_v8 = vsel %vm9040_vm5, %v1499_v11, %v1500_v22  ;;  %v6444_v59 = vrot.slane %v1447_v27, 9  ;;  %v8072_v47 = vld [vmem:[%s8684_s16 + $0x24] sm:$0xff]  }
  0xda   : > { %v843_v23 = vrot.slane %v842_v16, 4  ;;  %v9070_v21 = vsel %vm9040_vm5, %v1506_v0, %v1507_v44  ;;  %v6457_v53 = vcombine.low %v1498_v29, %v1501_v8  ;;  %v6445_v61 = vrot.slane %v1448_v13, 9 }
  0xdb   : > { %v6458_v14 = vcombine.low %v9054_v42, %v9070_v21  ;;  %v9080_v22 = vsel %vm9040_vm5, %v6443_v6, %v1511_v34  ;;  %v1513_v44 = vrot.slane %v1511_v34, 4  ;;  %v1528_v41 = vrot.slane %v8795_v38, 5  ;;  %v1452_v34 = vld [vmem:[%s8684_s16 + $0x60] sm:$0xe] }
  0xdc   : > { %v848_v52 = vsel %vm8739_vm2, %v843_v23, %v847_v60  ;;  %v1521_v60 = vrot.slane %v8769_v3, 5  ;;  %v6446_v17 = vrot.slane %v1449_v26, 9  ;;  %v1532_v16 = vrot.slane %v8805_v55, 5 }
  0xdd   : > { %7539 = vmatmul.mubr.bf16.gmra.mxu1 %v6432_v37  ;;  %v1518_v37 = vrot.slane %v8766_v62, 5  ;;  %v6408_v31 = vcombine.low %v838_v24, %v848_v52  ;;  %v1515_v15 = vsel %vm9040_vm5, %v1513_v44, %v1514_v36  ;;  %v1535_v6 = vrot.slane %v8808_v56, 5  ;;  %v8074_v36 = vld [vmem:[#allocation7 + $0x130] sm:$0xff]  }
  0xde   : > { %7606 = vmatprep.mubr.bf16.mxu1 %v8068_v5  ;;  %v1525_v5 = vrot.slane %v8788_v33, 5  ;;  %v6459_v27 = vcombine.low %v9080_v22, %v1515_v15  ;;  %v8075_v33 = vld [vmem:[#allocation7 + $0x170] sm:$0xff]   ;;  %v9109_v55 = vsel %vm9040_vm5, %v6446_v17, %v1532_v16  ;;  %v1534_v56 = vrot.slane %v1532_v16, 4 }
  0xdf   : > { %v9085_v50 = vsel %vm9040_vm5, %v6444_v59, %v1518_v37  ;;  %v1520_v62 = vrot.slane %v1518_v37, 4  ;;  %7491 = vmatmul.mubr.bf16.gmra.mxu0 %v6408_v31  ;;  %v6447_v42 = vrot.slane %v1450_v25, 9  ;;  %v1539_v13 = vrot.slane %v8831_v20, 5  ;;  %v8076_v31 = vld [vmem:[%s8684_s16 + $0x3c] sm:$0xff]  }
  0xe0   : > { %7558 = vmatprep.mubr.bf16.mxu0 %v6457_v53  ;;  %v9103_v38 = vsel %vm9040_vm5, %v6445_v61, %v1525_v5  ;;  %v1527_v29 = vrot.slane %v1525_v5, 4  ;;  %v1542_v24 = vrot.slane %v8834_v28, 5  ;;  %v6448_v23 = vrot.slane %v1451_v39, 9  ;;  %v8073_v28 = vld [vmem:[%s8684_s16 + $0x30] sm:$0xff]   ;;  %v1453_v53 = vld [vmem:[%s8684_s16 + $0x6c] sm:$0xe] }
  0xe1   : > { %v9099_v3 = vsel %vm9040_vm5, %v1520_v62, %v1521_v60  ;;  %v9123_v8 = vsel %vm9040_vm5, %v1534_v56, %v1535_v6  ;;  %v1546_v21 = vrot.slane %v8856_v63, 5  ;;  %v1549_v20 = vrot.slane %v8859_v19, 5  ;;  %v8078_v61 = vld [vmem:[#allocation7 + $0x128] sm:$0xff]  }
  0xe2   : > { %v6460_v11 = vcombine.low %v9085_v50, %v9099_v3  ;;  %v9113_v0 = vsel %vm9040_vm5, %v1527_v29, %v1528_v41  ;;  %v6462_v59 = vcombine.low %v9109_v55, %v9123_v8  ;;  %v1541_v37 = vrot.slane %v1539_v13, 4  ;;  %v6539_v55 = vld [vmem:[%s8684_s16 + $0x14] sm:$0x1] }
  0xe3   : > { %v6461_v26 = vcombine.low %v9103_v38, %v9113_v0  ;;  %v6449_v52 = vrot.slane %v1452_v34, 9  ;;  %v9137_v22 = vsel %vm9040_vm5, %v6448_v23, %v1546_v21  ;;  %v1548_v63 = vrot.slane %v1546_v21, 4  ;;  %v8077_v21 = vld [vmem:[%s8684_s16 + $0x48] sm:$0xff]  }
  0xe4   : > { %v1553_v19 = vrot.slane %v8872_v18, 5  ;;  %v1556_v25 = vrot.slane %v8882_v43, 5  ;;  %v9144_v44 = vsel %vm9040_vm5, %v1541_v37, %v1542_v24  ;;  %v6450_v62 = vrot.slane %v1453_v53, 9  ;;  %v8083_v43 = vld [vmem:[#allocation7 + $0x160] sm:$0xff]  }
  0xe5   : > { %7607 = vmatmul.mubr.bf16.vlgmr.msra.gmra.mxu1 %v8069_v30  ;;  %v8079_v30 = vld [vmem:[#allocation7 + $0x168] sm:$0xff]   ;;  %v1560_v39 = vrot.slane %v8893_v58, 5  ;;  %v1563_v60 = vrot.slane %v8899_v1, 5  ;;  %v9152_v18 = vsel %vm9040_vm5, %v1548_v63, %v1549_v20  ;;  %v1567_v17 = vrot.slane %v8910_v9, 5 }
  0xe6   : > { %7687 = vmatpush3.bf16.msra.mxu1 %v8939_v4  ;;  %7610 = vmatprep.mubr.bf16.mxu1 %v8072_v47  ;;  %v9132_v4 = vsel %vm9040_vm5, %v6447_v42, %v1539_v13  ;;  %v9156_v41 = vsel %vm9040_vm5, %v6449_v52, %v1553_v19  ;;  %v1555_v15 = vrot.slane %v1553_v19, 4  ;;  %v6464_v58 = vcombine.low %v9137_v22, %v9152_v18  ;;  %v1454_v47 = vld [vmem:[%s8684_s16 + $0x78] sm:$0xe]  ;;  %v1455_v9 = vld [vmem:[%s8684_s16 + $0x84] sm:$0xe]  ;;  %v8087_v13 = vld [vmem:[#allocation7 + $0x158] sm:$0xff]  }
  0xe7   : > { %7688 = vmatprep.subr.bf16.mxu1 %v8075_v33  ;;  %7559 = vmatmul.mubr.bf16.vlgmr.msra.gmra.mxu0 %v6458_v14  ;;  %v6463_v5 = vcombine.low %v9132_v4, %v9144_v44  ;;  %v9163_v1 = vsel %vm9040_vm5, %v6450_v62, %v1560_v39  ;;  %v1562_v14 = vrot.slane %v1560_v39, 4  ;;  %v1570_v6 = vrot.slane %v8921_v46, 5  ;;  %v8082_v42 = vld [vmem:[#allocation7 + $0x120] sm:$0xff]   ;;  %v6544_v22 = vld [vmem:[%s8684_s16 + $0x28] sm:$0xf] }
  0xe8   : > { %7639 = vmatpush3.bf16.msra.mxu0 %v8925_v48  ;;  %7562 = vmatprep.mubr.bf16.mxu0 %v6459_v27  ;;  %v9169_v16 = vsel %vm9040_vm5, %v1555_v15, %v1556_v25  ;;  %v6451_v48 = vrot.slane %v1454_v47, 9  ;;  %v1569_v29 = vrot.slane %v1567_v17, 4  ;;  %v1574_v56 = vrot.slane %v8934_v57, 5  ;;  %v8080_v37 = vld [vmem:[%s8684_s16 + $0x54] sm:$0xff]  }
  0xe9   : > { %7640 = vmatprep.subr.bf16.mxu0 %v8074_v36  ;;  %v6465_v27 = vcombine.low %v9156_v41, %v9169_v16  ;;  %v6452_v23 = vrot.slane %v1455_v9, 9  ;;  %v1577_v34 = vrot.slane %v8937_v2, 5  ;;  %v1456_v2 = vld [vmem:[%s8684_s16 + $0x90] sm:$0xe]  ;;  %v1459_v47 = vld [vmem:[%s8684_s16 + $0xb4] sm:$0xe] }
  0xea   : > { %7689 = vmatpush3.bf16.msra.mxu1 %v8075_v33  ;;  %v9176_v33 = vsel %vm9040_vm5, %v1562_v14, %v1563_v60  ;;  %v9184_v24 = vsel %vm9040_vm5, %v6451_v48, %v1567_v17  ;;  %v9190_v57 = vsel %vm9040_vm5, %v1569_v29, %v1570_v6  ;;  %v1576_v20 = vrot.slane %v1574_v56, 4  ;;  %v8081_v48 = vld [vmem:[%s8684_s16 + $0x60] sm:$0xff]   ;;  %v6545_v41 = vld [vmem:[%s8684_s16 + $0x2c] sm:$0x1] }
  0xeb   : > { %7690 = vmatprep.subr.bf16.mxu1 %v8079_v30  ;;  %v6466_v46 = vcombine.low %v9163_v1, %v9176_v33  ;;  %v6467_v52 = vcombine.low %v9184_v24, %v9190_v57  ;;  %v9198_v53 = vsel %vm9040_vm5, %v6452_v23, %v1574_v56  ;;  %v6453_v19 = vrot.slane %v1456_v2, 9  ;;  %v8095_v9 = vld [vmem:[#allocation7 + $0x148] sm:$0xff]  }
  0xec   : > { %7641 = vmatpush3.bf16.msra.mxu0 %v8074_v36  ;;  %v1584_v36 = vrot.slane %v8967_v35, 5  ;;  %v9205_v63 = vsel %vm9040_vm5, %v1576_v20, %v1577_v34  ;;  %v1457_v35 = vld [vmem:[%s8684_s16 + $0x9c] sm:$0xe]  ;;  %v1602_v17 = vrot.slane %v9013_v10, 5  ;;  %v1605_v29 = vrot.slane %v9019_v32, 5 }
  0xed   : > { %7611 = vmatmul.mubr.bf16.gmra.mxu1 %v8073_v28  ;;  %v1581_v28 = vrot.slane %v8960_v45, 5  ;;  %7642 = vmatprep.subr.bf16.mxu0 %v8078_v61  ;;  %v8091_v45 = vld [vmem:[#allocation7 + $0x150] sm:$0xff]   ;;  %v6468_v62 = vcombine.low %v9198_v53, %v9205_v63  ;;  %v6454_v3 = vrot.slane %v1457_v35, 9  ;;  %v8094_v32 = vld [vmem:[#allocation7 + $0x108] sm:$0xff]   ;;  %v6538_v20 = vld [vmem:[%s8684_s16 + $0x10] sm:$0xf] }
  0xee   : > { %7614 = vmatprep.mubr.bf16.mxu1 %v8076_v31  ;;  %7691 = vmatpush3.bf16.msra.mxu1 %v8079_v30  ;;  %v1588_v30 = vrot.slane %v8977_v7, 5  ;;  %v8086_v31 = vld [vmem:[#allocation7 + $0x118] sm:$0xff]   ;;  %v1591_v7 = vrot.slane %v8980_v54, 5  ;;  %v1604_v10 = vrot.slane %v1602_v17, 4  ;;  %v2374_v2 = vshll.u32 %v6538_v20, 16 }
  0xef   : > { %7692 = vmatprep.subr.bf16.mxu1 %v8083_v43  ;;  %v1583_v25 = vrot.slane %v1581_v28, 4  ;;  %7563 = vmatmul.mubr.bf16.gmra.mxu0 %v6460_v11  ;;  %v9219_v60 = vsel %vm9040_vm5, %v6453_v19, %v1581_v28  ;;  %v1595_v11 = vrot.slane %v8998_v12, 5  ;;  %v8090_v12 = vld [vmem:[#allocation7 + $0x110] sm:$0xff]   ;;  %v3136_v19 = vrot.slane %v6538_v20, 5  ;;  %v6540_v35 = vld [vmem:[%s8684_s16 + $0x18] sm:$0xf] }
  0xf0   : > { %v1590_v39 = vrot.slane %v1588_v30, 4  ;;  %7566 = vmatprep.mubr.bf16.mxu0 %v6461_v26  ;;  %7643 = vmatpush3.bf16.msra.mxu0 %v8078_v61  ;;  %v9234_v0 = vsel %vm9040_vm5, %v6454_v3, %v1588_v30  ;;  %v1458_v26 = vld [vmem:[%s8684_s16 + $0xa8] sm:$0xe]  ;;  %v9264_v34 = vsel %vm9040_vm5, %v1604_v10, %v1605_v29  ;;  %v2384_v30 = vshll.u32 %v6539_v55, 16  ;;  %v6610_v29 = vld [vmem:[%s8684_s16 + $0x18] sm:$0xe] }
  0xf1   : > { %v9223_v50 = vsel %vm9040_vm5, %v1583_v25, %v1584_v36  ;;  %7644 = vmatprep.subr.bf16.mxu0 %v8082_v42  ;;  %v1597_v61 = vrot.slane %v1595_v11, 4  ;;  %v6455_v14 = vrot.slane %v1458_v26, 9  ;;  %v2378_v36 = vshrl.u32 %v6538_v20, 16  ;;  %v6541_v26 = vld [vmem:[%s8684_s16 + $0x1c] sm:$0xf] }
  0xf2   : > { %7693 = vmatpush3.bf16.msra.mxu1 %v8083_v43  ;;  %v6469_v54 = vcombine.low %v9219_v60, %v9223_v50  ;;  %v9230_v38 = vsel %vm9040_vm5, %v1590_v39, %v1591_v7  ;;  %v1598_v43 = vrot.slane %v9001_v49, 5  ;;  %v6456_v49 = vrot.slane %v1459_v47, 9  ;;  %v8098_v39 = vld [vmem:[#allocation7 + $0x100] sm:$0xff]   ;;  %v6553_v50 = vld [vmem:[%s8684_s16 + $0x4c] sm:$0xf] }
  0xf3   : > { %7694 = vmatprep.subr.bf16.mxu1 %v8087_v13  ;;  %v6470_v15 = vcombine.low %v9234_v0, %v9230_v38  ;;  %v9250_v56 = vsel %vm9040_vm5, %v6455_v14, %v1595_v11  ;;  %v3139_v4 = vrot.slane %v6539_v55, 5  ;;  %v2376_v25 = vrot.slane %v2374_v2, 5  ;;  %v9291_v2 = vld [vmem:[#allocation7 + $0x1f8] sm:$0xff]  }
  0xf4   : > { %7645 = vmatpush3.bf16.msra.mxu0 %v8082_v42  ;;  %v9245_v6 = vsel %vm9040_vm5, %v1597_v61, %v1598_v43  ;;  %v9257_v23 = vsel %vm9040_vm5, %v6456_v49, %v1602_v17  ;;  %v2380_v7 = vrot.slane %v2378_v36, 4  ;;  %v2386_v3 = vrot.slane %v2384_v30, 5  ;;  %v8085_v43 = vld [vmem:[%s8684_s16 + $0x78] sm:$0xff]   ;;  %v6542_v17 = vld [vmem:[%s8684_s16 + $0x20] sm:$0x1] }
  0xf5   : > { %7615 = vmatmul.mubr.bf16.gmra.mxu1 %v8077_v21  ;;  %7646 = vmatprep.subr.bf16.mxu0 %v8086_v31  ;;  %v6471_v42 = vcombine.low %v9250_v56, %v9245_v6  ;;  %v6537_v21 = vld [vmem:[%s8684_s16 + $0xc] sm:$0xf]  ;;  %v6472_v28 = vcombine.low %v9257_v23, %v9264_v34  ;;  %v3138_v11 = vrot.slane %v3136_v19, 4  ;;  %v2389_v61 = vshrl.u32 %v6540_v35, 16  ;;  %v6615_v56 = vld [vmem:[%s8684_s16 + $0x54] sm:$0xe] }
  0xf6   : > { %7618 = vmatprep.mubr.bf16.mxu1 %v8080_v37  ;;  %7695 = vmatpush3.bf16.msra.mxu1 %v8087_v13  ;;  %v8084_v13 = vld [vmem:[%s8684_s16 + $0x6c] sm:$0xff]   ;;  %v2365_v8 = vshrl.u32 %v6537_v21, 16  ;;  %v2398_v49 = vshll.u32 %v6541_v26, 16  ;;  %v2381_v10 = vor.u32 %v2380_v7, %v2376_v25  ;;  %v2402_v20 = vshrl.u32 %v6541_v26, 16 }
  0xf7   : > { %7696 = vmatprep.subr.bf16.mxu1 %v8091_v45  ;;  %7567 = vmatmul.mubr.bf16.gmra.mxu0 %v6462_v59  ;;  %v8099_v37 = vld [vmem:[#allocation7 + $0x140] sm:$0xff]   ;;  %v2368_v59 = vshll.u32 %v6537_v21, 16  ;;  %v2391_v21 = vrot.slane %v2389_v61, 4  ;;  %v9305_v7 = vld [vmem:[#allocation7 + $0x1b8] sm:$0xff]  }
  0xf8   : > { %7570 = vmatprep.mubr.bf16.mxu0 %v6463_v5  ;;  %7647 = vmatpush3.bf16.msra.mxu0 %v8086_v31  ;;  %v2367_v44 = vrot.slane %v2365_v8, 4  ;;  %v2382_v36 = vrot.slane %v2381_v10, 4  ;;  %v2404_v30 = vrot.slane %v2402_v20, 4 }
  0xf9   : > { %7648 = vmatprep.subr.bf16.mxu0 %v8090_v12  ;;  %v2370_v5 = vrot.slane %v2368_v59, 5  ;;  %v2400_v59 = vrot.slane %v2398_v49, 5  ;;  %v2426_v49 = vshrl.u32 %v6544_v22, 16 }
  0xfa   : > { %7697 = vmatpush3.bf16.msra.mxu1 %v8091_v45  ;;  %v6609_v45 = vld [vmem:[%s8684_s16 + $0xc] sm:$0xe]  ;;  %v2387_v18 = vsel %vm8739_vm2, %v2382_v36, %v2386_v3 }
  0xfb   : > { %7698 = vmatprep.subr.bf16.mxu1 %v8095_v9  ;;  %v6625_v31 = vrot.slane %v6609_v45, 9  ;;  %v2371_v14 = vor.u32 %v2370_v5, %v2367_v44  ;;  %v2408_v45 = vshll.u32 %v6542_v17, 16  ;;  %v3143_v5 = vrot.slane %v6541_v26, 5 }
  0xfc   : > { %7649 = vmatpush3.bf16.msra.mxu0 %v8090_v12  ;;  %v2428_v36 = vrot.slane %v2426_v49, 4 }
  0xfd   : > { %7619 = vmatmul.mubr.bf16.gmra.mxu1 %v8081_v48  ;;  %v9280_v47 = vsel %vm9040_vm5, %v6625_v31, %v3136_v19  ;;  %v2392_v48 = vshll.u32 %v6540_v35, 16  ;;  %7650 = vmatprep.subr.bf16.mxu0 %v8094_v32  ;;  %v2372_v12 = vrot.slane %v2371_v14, 4  ;;  %v6626_v19 = vrot.slane %v6610_v29, 9  ;;  %v6543_v35 = vld [vmem:[%s8684_s16 + $0x24] sm:$0xf] }
  0xfe   : > { %7622 = vmatprep.mubr.bf16.mxu1 %v8084_v13  ;;  %7699 = vmatpush3.bf16.msra.mxu1 %v8095_v9  ;;  %v8088_v9 = vld [vmem:[%s8684_s16 + $0x84] sm:$0xff]   ;;  %v9287_v13 = vsel %vm9040_vm5, %v3138_v11, %v3139_v4  ;;  %v3146_v31 = vrot.slane %v6542_v17, 5  ;;  %v2413_v16 = vshrl.u32 %v6543_v35, 16  ;;  %v3145_v11 = vrot.slane %v3143_v5, 4 }
  0xff   : > { %7700 = vmatprep.subr.bf16.mxu1 %v8099_v37  ;;  %v6641_v55 = vcombine.low %v9280_v47, %v9287_v13  ;;  %v2394_v8 = vrot.slane %v2392_v48, 5  ;;  %7571 = vmatmul.mubr.bf16.gmra.mxu0 %v6464_v58  ;;  %v2377_v4 = vsel %vm8739_vm2, %v2372_v12, %v2376_v25  ;;  %v2405_v58 = vor.u32 %v2404_v30, %v2400_v59  ;;  %v6611_v17 = vld [vmem:[%s8684_s16 + $0x24] sm:$0xe]  ;;  %v6547_v12 = vld [vmem:[%s8684_s16 + $0x34] sm:$0xf] }
 0x100   : > { %7574 = vmatprep.mubr.bf16.mxu0 %v6465_v27  ;;  %7651 = vmatpush3.bf16.msra.mxu0 %v8094_v32  ;;  %v9309_v27 = vcombine.low %v2377_v4, %v2387_v18  ;;  %v9313_v25 = vsel %vm9040_vm5, %v6626_v19, %v3143_v5  ;;  %v2415_v26 = vrot.slane %v2413_v16, 4  ;;  %v2416_v61 = vshll.u32 %v6543_v35, 16  ;;  %v6548_v19 = vld [vmem:[%s8684_s16 + $0x38] sm:$0x1]  ;;  %v8092_v4 = vld [vmem:[%s8684_s16 + $0x9c] sm:$0xff]  }
 0x101   : > { %v2395_v44 = vor.u32 %v2394_v8, %v2391_v21  ;;  %7652 = vmatprep.subr.bf16.mxu0 %v8098_v39  ;;  %v2406_v3 = vrot.slane %v2405_v58, 4  ;;  %v2422_v14 = vshll.u32 %v6544_v22, 16  ;;  %v9320_v48 = vsel %vm9040_vm5, %v3145_v11, %v3146_v31  ;;  %v8089_v8 = vld [vmem:[%s8684_s16 + $0x90] sm:$0xff]  }
 0x102   : > { %7701 = vmatpush3.bf16.msra.mxu1 %v8099_v37  ;;  %v2410_v37 = vrot.slane %v2408_v45, 5  ;;  %v2432_v29 = vshll.u32 %v6545_v41, 16  ;;  %v6642_v21 = vcombine.low %v9313_v25, %v9320_v48  ;;  %v6627_v45 = vrot.slane %v6611_v17, 9 }
 0x103   : > { %7782 = vmatprep.subr.bf16.mxu1 %v9291_v2  ;;  %v2396_v32 = vrot.slane %v2395_v44, 4  ;;  %v2424_v20 = vrot.slane %v2422_v14, 5  ;;  %v3150_v5 = vrot.slane %v6544_v22, 5  ;;  %v3153_v31 = vrot.slane %v6545_v41, 5  ;;  %v6549_v14 = vld [vmem:[%s8684_s16 + $0x3c] sm:$0xf] }
 0x104   : > { %7653 = vmatpush3.bf16.msra.mxu0 %v8098_v39  ;;  %v2411_v10 = vsel %vm8739_vm2, %v2406_v3, %v2410_v37  ;;  %v2418_v39 = vrot.slane %v2416_v61, 5  ;;  %v2434_v30 = vrot.slane %v2432_v29, 5  ;;  %v2446_v37 = vshll.u32 %v6547_v12, 16 }
 0x105   : > { %7623 = vmatmul.mubr.bf16.gmra.mxu1 %v8085_v43  ;;  %v2401_v43 = vsel %vm8739_vm2, %v2396_v32, %v2400_v59  ;;  %7734 = vmatprep.subr.bf16.mxu0 %v9305_v7  ;;  %v2429_v18 = vor.u32 %v2428_v36, %v2424_v20  ;;  %v2450_v16 = vshrl.u32 %v6547_v12, 16  ;;  %v6612_v32 = vld [vmem:[%s8684_s16 + $0x30] sm:$0xe]  ;;  %v9343_v1 = vsel %vm9040_vm5, %v6627_v45, %v3150_v5  ;;  %v6551_v45 = vld [vmem:[%s8684_s16 + $0x44] sm:$0x1] }
 0x106   : > { %7626 = vmatprep.mubr.bf16.mxu1 %v8088_v9  ;;  %v6546_v9 = vld [vmem:[%s8684_s16 + $0x30] sm:$0xf]  ;;  %v9330_v59 = vcombine.low %v2401_v43, %v2411_v10  ;;  %v2419_v44 = vor.u32 %v2418_v39, %v2415_v26  ;;  %v3152_v33 = vrot.slane %v3150_v5, 4  ;;  %v2448_v24 = vrot.slane %v2446_v37, 5  ;;  %v8093_v10 = vld [vmem:[%s8684_s16 + $0xa8] sm:$0xff]  }
 0x107   : > { %7575 = vmatmul.mubr.bf16.gmra.mxu0 %v6466_v46  ;;  %v2437_v35 = vshrl.u32 %v6546_v9, 16  ;;  %v2440_v58 = vshll.u32 %v6546_v9, 16  ;;  %v2430_v22 = vrot.slane %v2429_v18, 4  ;;  %v2452_v57 = vrot.slane %v2450_v16, 4  ;;  %v6550_v9 = vld [vmem:[%s8684_s16 + $0x40] sm:$0xf] }
 0x108   : > { %7578 = vmatprep.mubr.bf16.mxu0 %v6467_v52  ;;  %v2420_v11 = vrot.slane %v2419_v44, 4  ;;  %v9349_v3 = vsel %vm9040_vm5, %v3152_v33, %v3153_v31  ;;  %v2456_v26 = vshll.u32 %v6548_v19, 16  ;;  %v6628_v61 = vrot.slane %v6612_v32, 9  ;;  %v6552_v16 = vld [vmem:[%s8684_s16 + $0x48] sm:$0xf] }
 0x109   : > { %v2439_v46 = vrot.slane %v2437_v35, 4  ;;  %v2442_v41 = vrot.slane %v2440_v58, 5  ;;  %v2435_v17 = vsel %vm8739_vm2, %v2430_v22, %v2434_v30  ;;  %v6643_v43 = vcombine.low %v9343_v1, %v9349_v3  ;;  %v8096_v35 = vld [vmem:[%s8684_s16 + $0xb4] sm:$0xff]  }
 0x10a   : > { %v2425_v52 = vsel %vm8739_vm2, %v2420_v11, %v2424_v20  ;;  %v2453_v29 = vor.u32 %v2452_v57, %v2448_v24  ;;  %v2458_v20 = vrot.slane %v2456_v26, 5  ;;  %v3160_v36 = vrot.slane %v6548_v19, 5  ;;  %v8105_v1 = vld [vmem:[#allocation7 + $0x1e8] sm:$0xff]  }
 0x10b   : > { %v2443_v49 = vor.u32 %v2442_v41, %v2439_v46  ;;  %v9358_v39 = vcombine.low %v2425_v52, %v2435_v17  ;;  %v2461_v31 = vshrl.u32 %v6549_v14, 16  ;;  %v2464_v30 = vshll.u32 %v6549_v14, 16  ;;  %v6614_v14 = vld [vmem:[%s8684_s16 + $0x48] sm:$0xe] }
 0x10c   : > { %v2454_v5 = vrot.slane %v2453_v29, 4  ;;  %v2474_v19 = vshrl.u32 %v6550_v9, 16  ;;  %v2480_v22 = vshll.u32 %v6551_v45, 16  ;;  %v3164_v52 = vrot.slane %v6550_v9, 5 }
 0x10d   : > { %7627 = vmatmul.mubr.bf16.gmra.mxu1 %v8089_v8  ;;  %v3157_v8 = vrot.slane %v6547_v12, 5  ;;  %v2444_v44 = vrot.slane %v2443_v49, 4  ;;  %v2470_v12 = vshll.u32 %v6550_v9, 16  ;;  %v2463_v63 = vrot.slane %v2461_v31, 4  ;;  %v8097_v31 = vld [vmem:[%s8684_s16 + $0xc0] sm:$0xff]  }
 0x10e   : > { %7630 = vmatprep.mubr.bf16.mxu1 %v8092_v4  ;;  %v6613_v4 = vld [vmem:[%s8684_s16 + $0x3c] sm:$0xe]  ;;  %v2459_v53 = vsel %vm8739_vm2, %v2454_v5, %v2458_v20  ;;  %v2476_v60 = vrot.slane %v2474_v19, 4  ;;  %v3167_v26 = vrot.slane %v6551_v45, 5  ;;  %v2482_v49 = vrot.slane %v2480_v22, 5 }
 0x10f   : > { %7579 = vmatmul.mubr.bf16.gmra.mxu0 %v6468_v62  ;;  %v9368_v18 = vsel %vm9040_vm5, %v6628_v61, %v3157_v8  ;;  %v3159_v58 = vrot.slane %v3157_v8, 4  ;;  %v2449_v37 = vsel %vm8739_vm2, %v2444_v44, %v2448_v24  ;;  %v2466_v62 = vrot.slane %v2464_v30, 5  ;;  %v6554_v24 = vld [vmem:[%s8684_s16 + $0x50] sm:$0x1]  ;;  %v6555_v20 = vld [vmem:[%s8684_s16 + $0x54] sm:$0xf] }
 0x110   : > { %7582 = vmatprep.mubr.bf16.mxu0 %v6469_v54  ;;  %v9378_v32 = vcombine.low %v2449_v37, %v2459_v53  ;;  %v2472_v33 = vrot.slane %v2470_v12, 5  ;;  %v6629_v41 = vrot.slane %v6613_v4, 9  ;;  %v2485_v61 = vshrl.u32 %v6552_v16, 16  ;;  %v6556_v5 = vld [vmem:[%s8684_s16 + $0x58] sm:$0xf] }
 0x111   : > { %v9382_v11 = vsel %vm9040_vm5, %v3159_v58, %v3160_v36  ;;  %v2467_v46 = vor.u32 %v2466_v62, %v2463_v63  ;;  %v2488_v29 = vshll.u32 %v6552_v16, 16  ;;  %v3166_v4 = vrot.slane %v3164_v52, 4 }
 0x112   : > { %v6644_v54 = vcombine.low %v9368_v18, %v9382_v11  ;;  %v2477_v57 = vor.u32 %v2476_v60, %v2472_v33  ;;  %v9392_v36 = vsel %vm9040_vm5, %v6629_v41, %v3164_v52  ;;  %v2487_v44 = vrot.slane %v2485_v61, 4 }
 0x113   : > { %v2468_v17 = vrot.slane %v2467_v46, 4  ;;  %v2490_v45 = vrot.slane %v2488_v29, 5  ;;  %v9405_v12 = vsel %vm9040_vm5, %v3166_v4, %v3167_v26  ;;  %v2504_v19 = vshll.u32 %v6554_v24, 16  ;;  %v6559_v4 = vld [vmem:[%s8684_s16 + $0x64] sm:$0xf] }
 0x114   : > { %v2478_v8 = vrot.slane %v2477_v57, 4  ;;  %v6630_v37 = vrot.slane %v6614_v14, 9  ;;  %v6645_v38 = vcombine.low %v9392_v36, %v9405_v12  ;;  %v3171_v62 = vrot.slane %v6553_v50, 5 }
 0x115   : > { %7631 = vmatmul.mubr.bf16.gmra.mxu1 %v8093_v10  ;;  %v2494_v10 = vshll.u32 %v6553_v50, 16  ;;  %v2473_v9 = vsel %vm8739_vm2, %v2468_v17, %v2472_v33  ;;  %v2491_v0 = vor.u32 %v2490_v45, %v2487_v44  ;;  %v2506_v63 = vrot.slane %v2504_v19, 5  ;;  %v6557_v33 = vld [vmem:[%s8684_s16 + $0x5c] sm:$0x1]  ;;  %v9436_v44 = vld [vmem:[%s8684_s16 + $0x68] sm:$0x1] }
 0x116   : > { %7634 = vmatprep.mubr.bf16.mxu1 %v8096_v35  ;;  %v2498_v35 = vshrl.u32 %v6553_v50, 16  ;;  %v2483_v58 = vsel %vm8739_vm2, %v2478_v8, %v2482_v49  ;;  %v3174_v16 = vrot.slane %v6554_v24, 5  ;;  %v2509_v60 = vshrl.u32 %v6555_v20, 16  ;;  %v6558_v49 = vld [vmem:[%s8684_s16 + $0x60] sm:$0xf] }
 0x117   : > { %v2496_v30 = vrot.slane %v2494_v10, 5  ;;  %7583 = vmatmul.mubr.bf16.gmra.mxu0 %v6470_v15  ;;  %v9410_v53 = vcombine.low %v2473_v9, %v2483_v58  ;;  %v2492_v46 = vrot.slane %v2491_v0, 4  ;;  %v2512_v41 = vshll.u32 %v6555_v20, 16  ;;  %v8103_v58 = vld [vmem:[#allocation7 + $0x1f0] sm:$0xff]  }
 0x118   : > { %7586 = vmatprep.mubr.bf16.mxu0 %v6471_v42  ;;  %v2500_v15 = vrot.slane %v2498_v35, 4  ;;  %v2518_v6 = vshll.u32 %v6556_v5, 16  ;;  %v9421_v42 = vsel %vm9040_vm5, %v6630_v37, %v3171_v62  ;;  %v3173_v57 = vrot.slane %v3171_v62, 4  ;;  %v6616_v35 = vld [vmem:[%s8684_s16 + $0x60] sm:$0xe] }
 0x119   : > { %v2511_v50 = vrot.slane %v2509_v60, 4  ;;  %v2522_v24 = vshrl.u32 %v6556_v5, 16  ;;  %v2497_v52 = vsel %vm8739_vm2, %v2492_v46, %v2496_v30  ;;  %v2514_v61 = vrot.slane %v2512_v41, 5  ;;  %v6562_v46 = vld [vmem:[%s8684_s16 + $0x70] sm:$0xf] }
 0x11a   : > { %v2501_v22 = vor.u32 %v2500_v15, %v2496_v30  ;;  %v2520_v14 = vrot.slane %v2518_v6, 5  ;;  %v9427_v17 = vsel %vm9040_vm5, %v3173_v57, %v3174_v16  ;;  %v2528_v13 = vshll.u32 %v6557_v33, 16 }
 0x11b   : > { %v2524_v47 = vrot.slane %v2522_v24, 4  ;;  %v6646_v10 = vcombine.low %v9421_v42, %v9427_v17  ;;  %v2515_v20 = vor.u32 %v2514_v61, %v2511_v50  ;;  %v3178_v8 = vrot.slane %v6556_v5, 5  ;;  %v9473_v50 = vld [vmem:[%s8684_s16 + $0x74] sm:$0x1] }
 0x11c   : > { %v2502_v26 = vrot.slane %v2501_v22, 4  ;;  %v2530_v45 = vrot.slane %v2528_v13, 5  ;;  %v3181_v30 = vrot.slane %v6557_v33, 5  ;;  %v2533_v0 = vshrl.u32 %v6558_v49, 16  ;;  %v6561_v33 = vld [vmem:[%s8684_s16 + $0x6c] sm:$0xf] }
 0x11d   : > { %7635 = vmatmul.mubr.bf16.gmra.mxu1 %v8097_v31  ;;  %v2525_v9 = vor.u32 %v2524_v47, %v2520_v14  ;;  %v2516_v19 = vrot.slane %v2515_v20, 4  ;;  %v3180_v37 = vrot.slane %v3178_v8, 4  ;;  %v2536_v23 = vshll.u32 %v6558_v49, 16  ;;  %v8102_v22 = vld [vmem:[#allocation7 + $0x1b0] sm:$0xff]   ;;  %v8104_v13 = vld [vmem:[#allocation7 + $0x1a8] sm:$0xff]   ;;  %v8107_v20 = vld [vmem:[#allocation7 + $0x1e0] sm:$0xff]  }
 0x11e   : > { %7702 = vmatprep.mubr.bf16.mxu1 %v6641_v55  ;;  %v6631_v55 = vrot.slane %v6615_v56, 9  ;;  %v2507_v29 = vsel %vm8739_vm2, %v2502_v26, %v2506_v63  ;;  %v2542_v34 = vshll.u32 %v6559_v4, 16  ;;  %v2535_v62 = vrot.slane %v2533_v0, 4  ;;  %v6617_v47 = vld [vmem:[%s8684_s16 + $0x6c] sm:$0xe] }
 0x11f   : > { %7587 = vmatmul.mubr.bf16.gmra.mxu0 %v6472_v28  ;;  %v9441_v31 = vcombine.low %v2497_v52, %v2507_v29  ;;  %v2526_v15 = vrot.slane %v2525_v9, 4  ;;  %v2546_v28 = vshrl.u32 %v6559_v4, 16  ;;  %v9456_v63 = vsel %vm9040_vm5, %v3180_v37, %v3181_v30 }
 0x120   : > { %7654 = vmatprep.mubr.bf16.mxu0 %v9309_v27  ;;  %v9447_v5 = vsel %vm9040_vm5, %v6631_v55, %v3178_v8  ;;  %v2521_v27 = vsel %vm8739_vm2, %v2516_v19, %v2520_v14  ;;  %v2552_v16 = vshll.u32 %v9436_v44, 16  ;;  %v2544_v60 = vrot.slane %v2542_v34, 5  ;;  %v8106_v34 = vld [vmem:[#allocation7 + $0x1a0] sm:$0xff]  }
 0x121   : > { %v2531_v25 = vsel %vm8739_vm2, %v2526_v15, %v2530_v45  ;;  %v6647_v48 = vcombine.low %v9447_v5, %v9456_v63  ;;  %v6632_v56 = vrot.slane %v6616_v35, 9  ;;  %v3188_v57 = vrot.slane %v9436_v44, 5  ;;  %v6565_v15 = vld [vmem:[%s8684_s16 + $0x7c] sm:$0xf]  ;;  %v6570_v5 = vld [vmem:[%s8684_s16 + $0x90] sm:$0xf] }
 0x122   : > { %v9469_v41 = vcombine.low %v2521_v27, %v2531_v25  ;;  %v2554_v6 = vrot.slane %v2552_v16, 5  ;;  %v2557_v24 = vshrl.u32 %v6561_v33, 16  ;;  %v2560_v26 = vshll.u32 %v6561_v33, 16 }
 0x123   : > { %v2566_v61 = vshll.u32 %v6562_v46, 16  ;;  %v2570_v14 = vshrl.u32 %v6562_v46, 16  ;;  %v6633_v19 = vrot.slane %v6617_v47, 9  ;;  %v3192_v11 = vrot.slane %v6562_v46, 5 }
 0x124   : > { %v2559_v8 = vrot.slane %v2557_v24, 4  ;;  %v2562_v9 = vrot.slane %v2560_v26, 5  ;;  %v2594_v25 = vshrl.u32 %v6565_v15, 16  ;;  %v9524_v24 = vld [vmem:[%s8684_s16 + $0x88] sm:$0xf] }
 0x125   : > { %7703 = vmatmul.mubr.bf16.vlgmr.msra.gmra.mxu1 %v6642_v21  ;;  %v2538_v21 = vrot.slane %v2536_v23, 5  ;;  %v2568_v45 = vrot.slane %v2566_v61, 5  ;;  %v9508_v36 = vsel %vm9040_vm5, %v6633_v19, %v3192_v11  ;;  %v3194_v12 = vrot.slane %v3192_v11, 4 }
 0x126   : > { %7783 = vmatpush3.bf16.msra.mxu1 %v9291_v2  ;;  %7706 = vmatprep.mubr.bf16.mxu1 %v6643_v43  ;;  %v2548_v2 = vrot.slane %v2546_v28, 4  ;;  %v3185_v43 = vrot.slane %v6559_v4, 5  ;;  %v6564_v4 = vld [vmem:[%s8684_s16 + $0x78] sm:$0xf]  ;;  %v2563_v37 = vor.u32 %v2562_v9, %v2559_v8  ;;  %v6619_v9 = vld [vmem:[%s8684_s16 + $0x84] sm:$0xe] }
 0x127   : > { %7784 = vmatprep.subr.bf16.mxu1 %v8103_v58  ;;  %v2539_v3 = vor.u32 %v2538_v21, %v2535_v62  ;;  %7655 = vmatmul.mubr.bf16.vlgmr.msra.gmra.mxu0 %v9330_v59  ;;  %v2572_v59 = vrot.slane %v2570_v14, 4  ;;  %v6566_v62 = vld [vmem:[%s8684_s16 + $0x80] sm:$0x1]  ;;  %v2581_v16 = vshrl.u32 %v6564_v4, 16  ;;  %v2584_v33 = vshll.u32 %v6564_v4, 16 }
 0x128   : > { %v2549_v52 = vor.u32 %v2548_v2, %v2544_v60  ;;  %v9479_v49 = vsel %vm9040_vm5, %v6632_v56, %v3185_v43  ;;  %v3187_v29 = vrot.slane %v3185_v43, 4  ;;  %7735 = vmatpush3.bf16.msra.mxu0 %v9305_v7  ;;  %7658 = vmatprep.mubr.bf16.mxu0 %v9358_v39  ;;  %v2564_v28 = vrot.slane %v2563_v37, 4  ;;  %v6618_v21 = vld [vmem:[%s8684_s16 + $0x78] sm:$0xe]  ;;  %v6567_v56 = vld [vmem:[%s8684_s16 + $0x84] sm:$0xf] }
 0x129   : > { %v2540_v55 = vrot.slane %v2539_v3, 4  ;;  %7736 = vmatprep.subr.bf16.mxu0 %v8102_v22  ;;  %v2573_v0 = vor.u32 %v2572_v59, %v2568_v45  ;;  %v2583_v2 = vrot.slane %v2581_v16, 4  ;;  %v6634_v61 = vrot.slane %v6618_v21, 9  ;;  %v9530_v14 = vld [vmem:[%s8684_s16 + $0x8c] sm:$0x1] }
 0x12a   : > { %7785 = vmatpush3.bf16.msra.mxu1 %v8103_v58  ;;  %v2550_v44 = vrot.slane %v2549_v52, 4  ;;  %v9488_v35 = vsel %vm9040_vm5, %v3187_v29, %v3188_v57  ;;  %v2576_v58 = vshll.u32 %v9473_v50, 16  ;;  %v2569_v46 = vsel %vm8739_vm2, %v2564_v28, %v2568_v45 }
 0x12b   : > { %7786 = vmatprep.subr.bf16.mxu1 %v8105_v1  ;;  %v2545_v30 = vsel %vm8739_vm2, %v2540_v55, %v2544_v60  ;;  %v6648_v39 = vcombine.low %v9479_v49, %v9488_v35  ;;  %v2574_v27 = vrot.slane %v2573_v0, 4  ;;  %v8109_v60 = vld [vmem:[#allocation7 + $0x1d8] sm:$0xff]   ;;  %v3199_v55 = vrot.slane %v6565_v15, 5 }
 0x12c   : > { %v2555_v7 = vsel %vm8739_vm2, %v2550_v44, %v2554_v6  ;;  %v2578_v18 = vrot.slane %v2576_v58, 5  ;;  %7737 = vmatpush3.bf16.msra.mxu0 %v8102_v22  ;;  %v2586_v6 = vrot.slane %v2584_v33, 5  ;;  %v3202_v29 = vrot.slane %v6566_v62, 5  ;;  %v6571_v0 = vld [vmem:[%s8684_s16 + $0x94] sm:$0xf] }
 0x12d   : > { %7707 = vmatmul.mubr.bf16.gmra.mxu1 %v6644_v54  ;;  %v9502_v23 = vcombine.low %v2545_v30, %v2555_v7  ;;  %v3195_v54 = vrot.slane %v9473_v50, 5  ;;  %7738 = vmatprep.subr.bf16.mxu0 %v8104_v13  ;;  %v2596_v50 = vrot.slane %v2594_v25, 4  ;;  %v2605_v8 = vshrl.u32 %v6567_v56, 16 }
 0x12e   : > { %7710 = vmatprep.mubr.bf16.mxu1 %v6645_v38  ;;  %7787 = vmatpush3.bf16.msra.mxu1 %v8105_v1  ;;  %v2590_v38 = vshll.u32 %v6565_v15, 16  ;;  %v2579_v22 = vsel %vm8739_vm2, %v2574_v27, %v2578_v18  ;;  %v8111_v1 = vld [vmem:[#allocation7 + $0x1d0] sm:$0xff]   ;;  %v2587_v26 = vor.u32 %v2586_v6, %v2583_v2  ;;  %v2608_v4 = vshll.u32 %v6567_v56, 16  ;;  %v9561_v27 = vld [vmem:[%s8684_s16 + $0x98] sm:$0x1] }
 0x12f   : > { %7788 = vmatprep.subr.bf16.mxu1 %v8107_v20  ;;  %7659 = vmatmul.mubr.bf16.gmra.mxu0 %v9378_v32  ;;  %v9517_v3 = vcombine.low %v2569_v46, %v2579_v22  ;;  %v9521_v43 = vsel %vm9040_vm5, %v3194_v12, %v3195_v54  ;;  %v2600_v32 = vshll.u32 %v6566_v62, 16  ;;  %v2614_v44 = vshll.u32 %v9524_v24, 16  ;;  %v8110_v15 = vld [vmem:[#allocation7 + $0x190] sm:$0xff]   ;;  %v8115_v22 = vld [vmem:[#allocation7 + $0x1c0] sm:$0xff]  }
 0x130   : > { %v2592_v57 = vrot.slane %v2590_v38, 5  ;;  %7662 = vmatprep.mubr.bf16.mxu0 %v9410_v53  ;;  %7739 = vmatpush3.bf16.msra.mxu0 %v8104_v13  ;;  %v6649_v52 = vcombine.low %v9508_v36, %v9521_v43  ;;  %v2588_v53 = vrot.slane %v2587_v26, 4  ;;  %v9542_v59 = vsel %vm9040_vm5, %v6634_v61, %v3199_v55  ;;  %v6620_v38 = vld [vmem:[%s8684_s16 + $0x90] sm:$0xe] }
 0x131   : > { %7740 = vmatprep.subr.bf16.mxu0 %v8106_v34  ;;  %v2602_v13 = vrot.slane %v2600_v32, 5  ;;  %v3201_v30 = vrot.slane %v3199_v55, 4  ;;  %v2607_v42 = vrot.slane %v2605_v8, 4  ;;  %v2616_v58 = vrot.slane %v2614_v44, 5  ;;  %v9579_v32 = vld [vmem:[%s8684_s16 + $0xa0] sm:$0xf] }
 0x132   : > { %7789 = vmatpush3.bf16.msra.mxu1 %v8107_v20  ;;  %v2597_v47 = vor.u32 %v2596_v50, %v2592_v57  ;;  %v8108_v20 = vld [vmem:[#allocation7 + $0x198] sm:$0xff]   ;;  %v2593_v17 = vsel %vm8739_vm2, %v2588_v53, %v2592_v57  ;;  %v2618_v19 = vshrl.u32 %v9524_v24, 16  ;;  %v2624_v7 = vshll.u32 %v9530_v14, 16  ;;  %v6573_v57 = vld [vmem:[%s8684_s16 + $0x9c] sm:$0xf] }
 0x133   : > { %7790 = vmatprep.subr.bf16.mxu1 %v8109_v60  ;;  %v6635_v37 = vrot.slane %v6619_v9, 9  ;;  %v3206_v16 = vrot.slane %v9524_v24, 5  ;;  %v3209_v33 = vrot.slane %v9530_v14, 5  ;;  %v2629_v12 = vshrl.u32 %v6570_v5, 16  ;;  %v8112_v50 = vld [vmem:[#allocation7 + $0x188] sm:$0xff]   ;;  %v8114_v53 = vld [vmem:[#allocation7 + $0x180] sm:$0xff]  }
 0x134   : > { %v2598_v45 = vrot.slane %v2597_v47, 4  ;;  %7741 = vmatpush3.bf16.msra.mxu0 %v8106_v34  ;;  %v8113_v34 = vld [vmem:[#allocation7 + $0x1c8] sm:$0xff]   ;;  %v2620_v28 = vrot.slane %v2618_v19, 4  ;;  %v2626_v62 = vrot.slane %v2624_v7, 5  ;;  %v2638_v46 = vshll.u32 %v6571_v0, 16 }
 0x135   : > { %7711 = vmatmul.mubr.bf16.gmra.mxu1 %v6646_v10  ;;  %v2610_v10 = vrot.slane %v2608_v4, 5  ;;  %7742 = vmatprep.subr.bf16.mxu0 %v8108_v20  ;;  %v3208_v2 = vrot.slane %v3206_v16, 4  ;;  %v2631_v6 = vrot.slane %v2629_v12, 4  ;;  %v2642_v56 = vshrl.u32 %v6571_v0, 16  ;;  %v6575_v8 = vld [vmem:[%s8684_s16 + $0xa4] sm:$0x1] }
 0x136   : > { %7714 = vmatprep.mubr.bf16.mxu1 %v6647_v48  ;;  %7791 = vmatpush3.bf16.msra.mxu1 %v8109_v60  ;;  %v2603_v63 = vsel %vm8739_vm2, %v2598_v45, %v2602_v13  ;;  %v9552_v48 = vsel %vm9040_vm5, %v3201_v30, %v3202_v29  ;;  %v2621_v21 = vor.u32 %v2620_v28, %v2616_v58  ;;  %v2632_v60 = vshll.u32 %v6570_v5, 16  ;;  %v9594_v13 = vld [vmem:[#allocation8 + $0x38] sm:$0xff]   ;;  %v6621_v30 = vld [vmem:[%s8684_s16 + $0x9c] sm:$0xe] }
 0x137   : > { %7792 = vmatprep.subr.bf16.mxu1 %v8111_v1  ;;  %v9556_v18 = vcombine.low %v2593_v17, %v2603_v63  ;;  %v6650_v11 = vcombine.low %v9542_v59, %v9552_v48  ;;  %v2611_v54 = vor.u32 %v2610_v10, %v2607_v42  ;;  %7663 = vmatmul.mubr.bf16.gmra.mxu0 %v9441_v31  ;;  %v2640_v26 = vrot.slane %v2638_v46, 5  ;;  %v6622_v12 = vld [vmem:[%s8684_s16 + $0xa8] sm:$0xe] }
 0x138   : > { %7666 = vmatprep.mubr.bf16.mxu0 %v9469_v41  ;;  %7743 = vmatpush3.bf16.msra.mxu0 %v8108_v20  ;;  %v9570_v31 = vsel %vm9040_vm5, %v6635_v37, %v3206_v16  ;;  %v2634_v24 = vrot.slane %v2632_v60, 5  ;;  %v3210_v61 = vsel %vm9040_vm5, %v3208_v2, %v3209_v33  ;;  %v2644_v14 = vrot.slane %v2642_v56, 4  ;;  %v6578_v33 = vld [vmem:[%s8684_s16 + $0xb0] sm:$0x1] }
 0x139   : > { %v2612_v25 = vrot.slane %v2611_v54, 4  ;;  %7744 = vmatprep.subr.bf16.mxu0 %v8110_v15  ;;  %v2648_v49 = vshll.u32 %v9561_v27, 16  ;;  %v6636_v35 = vrot.slane %v6620_v38, 9  ;;  %v6651_v47 = vcombine.low %v9570_v31, %v3210_v61  ;;  %v9614_v54 = vld [vmem:[#allocation7 + $0x238] sm:$0xff]  }
 0x13a   : > { %7793 = vmatpush3.bf16.msra.mxu1 %v8111_v1  ;;  %v2622_v1 = vrot.slane %v2621_v21, 4  ;;  %v2635_v55 = vor.u32 %v2634_v24, %v2631_v6  ;;  %v3213_v29 = vrot.slane %v6571_v0, 5  ;;  %v2645_v43 = vor.u32 %v2644_v14, %v2640_v26  ;;  %v6579_v61 = vld [vmem:[%s8684_s16 + $0xb4] sm:$0xf] }
 0x13b   : > { %7794 = vmatprep.subr.bf16.mxu1 %v8113_v34  ;;  %v2617_v41 = vsel %vm8739_vm2, %v2612_v25, %v2616_v58  ;;  %v3216_v20 = vrot.slane %v9561_v27, 5  ;;  %v2653_v45 = vshrl.u32 %v6573_v57, 16  ;;  %v2656_v17 = vshll.u32 %v6573_v57, 16 }
 0x13c   : > { %7745 = vmatpush3.bf16.msra.mxu0 %v8110_v15  ;;  %v2636_v4 = vrot.slane %v2635_v55, 4  ;;  %v9598_v44 = vsel %vm9040_vm5, %v6636_v35, %v3213_v29  ;;  %v3215_v9 = vrot.slane %v3213_v29, 4  ;;  %v2646_v42 = vrot.slane %v2645_v43, 4 }
 0x13d   : > { %7715 = vmatmul.mubr.bf16.gmra.mxu1 %v6648_v39  ;;  %v2627_v39 = vsel %vm8739_vm2, %v2622_v1, %v2626_v62  ;;  %7746 = vmatprep.subr.bf16.mxu0 %v8112_v50  ;;  %v2662_v10 = vshll.u32 %v9579_v32, 16  ;;  %v2666_v58 = vshrl.u32 %v9579_v32, 16  ;;  %v2655_v63 = vrot.slane %v2653_v45, 4 }
 0x13e   : > { %7718 = vmatprep.mubr.bf16.mxu1 %v6649_v52  ;;  %7795 = vmatpush3.bf16.msra.mxu1 %v8113_v34  ;;  %v9590_v36 = vcombine.low %v2617_v41, %v2627_v39  ;;  %v2650_v52 = vrot.slane %v2648_v49, 5  ;;  %v2641_v19 = vsel %vm8739_vm2, %v2636_v4, %v2640_v26  ;;  %v3217_v5 = vsel %vm9040_vm5, %v3215_v9, %v3216_v20  ;;  %v6623_v4 = vld [vmem:[%s8684_s16 + $0xb4] sm:$0xe] }
 0x13f   : > { %7796 = vmatprep.subr.bf16.mxu1 %v8115_v22  ;;  %7667 = vmatmul.mubr.bf16.gmra.mxu0 %v9502_v23  ;;  %v2672_v7 = vshll.u32 %v6575_v8, 16  ;;  %v6576_v23 = vld [vmem:[%s8684_s16 + $0xa8] sm:$0xf]  ;;  %v6652_v0 = vcombine.low %v9598_v44, %v3217_v5  ;;  %v2658_v15 = vrot.slane %v2656_v17, 5  ;;  %v2664_v34 = vrot.slane %v2662_v10, 5 }
 0x140   : > { %7670 = vmatprep.mubr.bf16.mxu0 %v9517_v3  ;;  %7747 = vmatpush3.bf16.msra.mxu0 %v8112_v50  ;;  %v2651_v37 = vsel %vm8739_vm2, %v2646_v42, %v2650_v52  ;;  %v6577_v3 = vld [vmem:[%s8684_s16 + $0xac] sm:$0xf]  ;;  %v2668_v27 = vrot.slane %v2666_v58, 4  ;;  %v6637_v16 = vrot.slane %v6621_v30, 9  ;;  %v3220_v25 = vrot.slane %v9579_v32, 5 }
 0x141   : > { %7748 = vmatprep.subr.bf16.mxu0 %v8114_v53  ;;  %v9620_v28 = vcombine.low %v2641_v19, %v2651_v37  ;;  %v2674_v62 = vrot.slane %v2672_v7, 5  ;;  %v2659_v38 = vor.u32 %v2658_v15, %v2655_v63  ;;  %v3223_v21 = vrot.slane %v6575_v8, 5  ;;  %v6581_v52 = vld [vmem:[%s8684_s16 + $0xbc] sm:$0x1]  ;;  %v6582_v42 = vld [vmem:[%s8684_s16 + $0xc0] sm:$0xf] }
 0x142   : > { %7797 = vmatpush3.bf16.msra.mxu1 %v8115_v22  ;;  %v2677_v60 = vshrl.u32 %v6576_v23, 16  ;;  %v2669_v46 = vor.u32 %v2668_v27, %v2664_v34  ;;  %v2680_v22 = vshll.u32 %v6576_v23, 16  ;;  %v2686_v31 = vshll.u32 %v6577_v3, 16  ;;  %v6583_v5 = vld [vmem:[%s8684_s16 + $0xc4] sm:$0xf] }
 0x143   : > { %7878 = vmatprep.subr.bf16.mxu1 %v9594_v13  ;;  %v2690_v2 = vshrl.u32 %v6577_v3, 16  ;;  %v2660_v59 = vrot.slane %v2659_v38, 4  ;;  %v3221_v48 = vsel %vm9040_vm5, %v6637_v16, %v3220_v25  ;;  %v2696_v26 = vshll.u32 %v6578_v33, 16  ;;  %v6584_v27 = vld [vmem:[%s8684_s16 + $0xc8] sm:$0x1] }
 0x144   : > { %7749 = vmatpush3.bf16.msra.mxu0 %v8114_v53  ;;  %v2679_v6 = vrot.slane %v2677_v60, 4  ;;  %v2670_v56 = vrot.slane %v2669_v46, 4  ;;  %v2682_v57 = vrot.slane %v2680_v22, 5  ;;  %v2688_v50 = vrot.slane %v2686_v31, 5  ;;  %v6624_v46 = vld [vmem:[%s8684_s16 + $0xc0] sm:$0xe] }
 0x145   : > { %7719 = vmatmul.mubr.bf16.gmra.mxu1 %v6650_v11  ;;  %v3222_v11 = vrot.slane %v3220_v25, 4  ;;  %7830 = vmatprep.subr.bf16.mxu0 %v9614_v54  ;;  %v2692_v41 = vrot.slane %v2690_v2, 4  ;;  %v2665_v1 = vsel %vm8739_vm2, %v2660_v59, %v2664_v34  ;;  %v6638_v32 = vrot.slane %v6622_v12, 9 }
 0x146   : > { %7722 = vmatprep.mubr.bf16.mxu1 %v6651_v47  ;;  %v2675_v14 = vsel %vm8739_vm2, %v2670_v56, %v2674_v62  ;;  %v2683_v35 = vor.u32 %v2682_v57, %v2679_v6  ;;  %v2698_v55 = vrot.slane %v2696_v26, 5  ;;  %v3227_v29 = vrot.slane %v6577_v3, 5  ;;  %v6722_v57 = vld [vmem:[%s8684_s16 + $0x1c] sm:$0xf] }
 0x147   : > { %7671 = vmatmul.mubr.bf16.gmra.mxu0 %v9556_v18  ;;  %v3224_v24 = vsel %vm9040_vm5, %v3222_v11, %v3223_v21  ;;  %v2693_v39 = vor.u32 %v2692_v41, %v2688_v50  ;;  %v6580_v18 = vld [vmem:[%s8684_s16 + $0xb8] sm:$0xf]  ;;  %v6597_v47 = vcombine.low %v2665_v1, %v2675_v14  ;;  %v3230_v43 = vrot.slane %v6578_v33, 5 }
 0x148   : > { %7674 = vmatprep.mubr.bf16.mxu0 %v9590_v36  ;;  %v6653_v49 = vcombine.low %v3221_v48, %v3224_v24  ;;  %v2684_v20 = vrot.slane %v2683_v35, 4  ;;  %v2701_v53 = vshrl.u32 %v6579_v61, 16  ;;  %v2704_v36 = vshll.u32 %v6579_v61, 16  ;;  %v6721_v48 = vld [vmem:[%s8684_s16 + $0x18] sm:$0xf] }
 0x149   : > { %v2694_v8 = vrot.slane %v2693_v39, 4  ;;  %v3228_v44 = vsel %vm9040_vm5, %v6638_v32, %v3227_v29  ;;  %v3229_v9 = vrot.slane %v3227_v29, 4  ;;  %v2710_v45 = vshll.u32 %v6580_v18, 16 }
 0x14a   : > { %v2714_v30 = vshrl.u32 %v6580_v18, 16  ;;  %v2689_v17 = vsel %vm8739_vm2, %v2684_v20, %v2688_v50  ;;  %v2703_v58 = vrot.slane %v2701_v53, 4  ;;  %v2706_v19 = vrot.slane %v2704_v36, 5 }
 0x14b   : > { %v2699_v10 = vsel %vm8739_vm2, %v2694_v8, %v2698_v55  ;;  %v3231_v7 = vsel %vm9040_vm5, %v3229_v9, %v3230_v43  ;;  %v2712_v23 = vrot.slane %v2710_v45, 5  ;;  %v2720_v34 = vshll.u32 %v6581_v52, 16  ;;  %v6724_v55 = vld [vmem:[%s8684_s16 + $0x24] sm:$0xf] }
 0x14c   : > { %v6598_v63 = vcombine.low %v2689_v17, %v2699_v10  ;;  %v2716_v37 = vrot.slane %v2714_v30, 4  ;;  %v2707_v15 = vor.u32 %v2706_v19, %v2703_v58  ;;  %v6639_v3 = vrot.slane %v6623_v4, 9  ;;  %v9673_v17 = vld [vmem:[%s8684_s16 + $0x2c] sm:$0x1] }
 0x14d   : > { %7723 = vmatmul.mubr.bf16.gmra.mxu1 %v6652_v0  ;;  %v6654_v0 = vcombine.low %v3228_v44, %v3231_v7  ;;  %v3234_v16 = vrot.slane %v6580_v18, 5  ;;  %v3237_v33 = vrot.slane %v6581_v52, 5  ;;  %v2725_v12 = vshrl.u32 %v6582_v42, 16  ;;  %v9668_v44 = vld [vmem:[%s8684_s16 + $0x28] sm:$0xf] }
 0x14e   : > { %7726 = vmatprep.mubr.bf16.mxu1 %v6653_v49  ;;  %v2717_v62 = vor.u32 %v2716_v37, %v2712_v23  ;;  %v2708_v38 = vrot.slane %v2707_v15, 4  ;;  %v2722_v25 = vrot.slane %v2720_v34, 5  ;;  %v2728_v21 = vshll.u32 %v6582_v42, 16  ;;  %v6723_v49 = vld [vmem:[%s8684_s16 + $0x20] sm:$0x1]  ;;  %v8116_v15 = vld [vmem:[%s8684_s16 + $0x18] sm:$0xff]  }
 0x14f   : > { %7675 = vmatmul.mubr.bf16.gmra.mxu0 %v9620_v28  ;;  %v2734_v60 = vshll.u32 %v6583_v5, 16  ;;  %v3235_v31 = vsel %vm9040_vm5, %v6639_v3, %v3234_v16  ;;  %v3236_v2 = vrot.slane %v3234_v16, 4  ;;  %v2727_v59 = vrot.slane %v2725_v12, 4 }
 0x150   : > { %7678 = vmatprep.mubr.bf16.mxu0 %v6597_v47  ;;  %v2718_v22 = vrot.slane %v2717_v62, 4  ;;  %v2713_v28 = vsel %vm8739_vm2, %v2708_v38, %v2712_v23  ;;  %v2730_v11 = vrot.slane %v2728_v21, 5  ;;  %v2738_v56 = vshrl.u32 %v6583_v5, 16  ;;  %v6727_v38 = vld [vmem:[%s8684_s16 + $0x30] sm:$0xf] }
 0x151   : > { %v2736_v6 = vrot.slane %v2734_v60, 5  ;;  %v3238_v41 = vsel %vm9040_vm5, %v3236_v2, %v3237_v33  ;;  %v2744_v1 = vshll.u32 %v6584_v27, 16  ;;  %v6640_v24 = vrot.slane %v6624_v46, 9  ;;  %v6728_v60 = vld [vmem:[%s8684_s16 + $0x34] sm:$0xf] }
 0x152   : > { %v2723_v50 = vsel %vm8739_vm2, %v2718_v22, %v2722_v25  ;;  %v6655_v32 = vcombine.low %v3235_v31, %v3238_v41  ;;  %v2731_v61 = vor.u32 %v2730_v11, %v2727_v59  ;;  %v2740_v14 = vrot.slane %v2738_v56, 4  ;;  %v6729_v59 = vld [vmem:[%s8684_s16 + $0x38] sm:$0x1]  ;;  %v6730_v56 = vld [vmem:[%s8684_s16 + $0x3c] sm:$0xf] }
 0x153   : > { %v6599_v26 = vcombine.low %v2713_v28, %v2723_v50  ;;  %v2746_v35 = vrot.slane %v2744_v1, 5  ;;  %v3241_v39 = vrot.slane %v6583_v5, 5  ;;  %v3244_v18 = vrot.slane %v6584_v27, 5 }
 0x154   : > { %v4004_v47 = vshrl.u32 %v6721_v48, 16  ;;  %v2732_v29 = vrot.slane %v2731_v61, 4  ;;  %v2741_v43 = vor.u32 %v2740_v14, %v2736_v6  ;;  %v4007_v52 = vshll.u32 %v6721_v48, 16 }
 0x155   : > { %7727 = vmatmul.mubr.bf16.gmra.mxu1 %v6654_v0  ;;  %v4013_v20 = vshll.u32 %v6722_v57, 16  ;;  %v3242_v8 = vsel %vm9040_vm5, %v6640_v24, %v3241_v39  ;;  %v3243_v53 = vrot.slane %v3241_v39, 4  ;;  %v4017_v4 = vshrl.u32 %v6722_v57, 16  ;;  %v6731_v24 = vld [vmem:[%s8684_s16 + $0x40] sm:$0xf] }
 0x156   : > { %7730 = vmatprep.mubr.bf16.mxu1 %v6655_v32  ;;  %v4006_v36 = vrot.slane %v4004_v47, 4  ;;  %v2737_v9 = vsel %vm8739_vm2, %v2732_v29, %v2736_v6  ;;  %v2742_v45 = vrot.slane %v2741_v43, 4  ;;  %v4009_v30 = vrot.slane %v4007_v52, 5 }
 0x157   : > { %7679 = vmatmul.mubr.bf16.gmra.mxu0 %v6598_v63  ;;  %v4015_v42 = vrot.slane %v4013_v20, 5  ;;  %v3245_v10 = vsel %vm9040_vm5, %v3243_v53, %v3244_v18  ;;  %v4019_v58 = vrot.slane %v4017_v4, 4  ;;  %v4023_v19 = vshll.u32 %v6723_v49, 16  ;;  %v8117_v18 = vld [vmem:[%s8684_s16 + $0x24] sm:$0xff]  }
 0x158   : > { %7682 = vmatprep.mubr.bf16.mxu0 %v6599_v26  ;;  %v4028_v5 = vshrl.u32 %v6724_v55, 16  ;;  %v2747_v63 = vsel %vm8739_vm2, %v2742_v45, %v2746_v35  ;;  %v6656_v7 = vcombine.low %v3242_v8, %v3245_v10  ;;  %v4010_v23 = vor.u32 %v4009_v30, %v4006_v36  ;;  %v9693_v35 = vld [vmem:[%s8684_s16 + $0x44] sm:$0x1]  ;;  %v8120_v45 = vld [vmem:[%s8684_s16 + $0x30] sm:$0xff]  }
 0x159   : > { %v4031_v37 = vshll.u32 %v6724_v55, 16  ;;  %v6600_v0 = vcombine.low %v2737_v9, %v2747_v63  ;;  %v4020_v34 = vor.u32 %v4019_v58, %v4015_v42  ;;  %v4025_v3 = vrot.slane %v4023_v19, 5 }
 0x15a   : > { %v4030_v27 = vrot.slane %v4028_v5, 4  ;;  %v4011_v62 = vrot.slane %v4010_v23, 4  ;;  %v4037_v33 = vshll.u32 %v9668_v44, 16  ;;  %v4041_v12 = vshrl.u32 %v9668_v44, 16  ;;  %v8122_v23 = vld [vmem:[#allocation7 + $0x230] sm:$0xff]  }
 0x15b   : > { %v4033_v16 = vrot.slane %v4031_v37, 5  ;;  %v4021_v25 = vrot.slane %v4020_v34, 4  ;;  %v4047_v21 = vshll.u32 %v9673_v17, 16  ;;  %v4052_v11 = vshrl.u32 %v6727_v38, 16  ;;  %v8123_v37 = vld [vmem:[#allocation8 + $0x30] sm:$0xff]  }
 0x15c   : > { %v4016_v46 = vsel %vm8739_vm2, %v4011_v62, %v4015_v42  ;;  %v4039_v31 = vrot.slane %v4037_v33, 5  ;;  %v4043_v2 = vrot.slane %v4041_v12, 4  ;;  %v4055_v6 = vshll.u32 %v6727_v38, 16 }
 0x15d   : > { %7731 = vmatmul.mubr.bf16.gmra.mxu1 %v6656_v7  ;;  %v4034_v22 = vor.u32 %v4033_v16, %v4030_v27  ;;  %v4026_v48 = vsel %vm8739_vm2, %v4021_v25, %v4025_v3  ;;  %v4049_v28 = vrot.slane %v4047_v21, 5  ;;  %v4061_v1 = vshll.u32 %v6728_v60, 16  ;;  %v6734_v16 = vld [vmem:[%s8684_s16 + $0x4c] sm:$0xf] }
 0x15e   : > { %v6769_v57 = vcombine.low %v4016_v46, %v4026_v48  ;;  %v4044_v41 = vor.u32 %v4043_v2, %v4039_v31  ;;  %v4054_v32 = vrot.slane %v4052_v11, 4  ;;  %v4057_v61 = vrot.slane %v4055_v6, 5 }
 0x15f   : > { %7683 = vmatmul.mubr.bf16.gmra.mxu0 %v6600_v0  ;;  %v4035_v50 = vrot.slane %v4034_v22, 4  ;;  %v4065_v14 = vshrl.u32 %v6728_v60, 16  ;;  %v4071_v49 = vshll.u32 %v6729_v59, 16  ;;  %v4063_v29 = vrot.slane %v4061_v1, 5  ;;  %v6733_v0 = vld [vmem:[%s8684_s16 + $0x48] sm:$0xf] }
 0x160   : > { %7750 = vmatprep.mubr.bf16.mxu0 %v8116_v15  ;;  %7798 = vmatprep.mubr.bf16.mxu1 %v6769_v57  ;;  %v4045_v55 = vrot.slane %v4044_v41, 4  ;;  %v4076_v43 = vshrl.u32 %v6730_v56, 16  ;;  %v4058_v8 = vor.u32 %v4057_v61, %v4054_v32  ;;  %v4079_v42 = vshll.u32 %v6730_v56, 16  ;;  %v9715_v60 = vld [vmem:[#allocation7 + $0x228] sm:$0xff]   ;;  %v6735_v59 = vld [vmem:[%s8684_s16 + $0x50] sm:$0x1] }
 0x161   : > { %v4040_v47 = vsel %vm8739_vm2, %v4035_v50, %v4039_v31  ;;  %v4067_v53 = vrot.slane %v4065_v14, 4  ;;  %v4073_v36 = vrot.slane %v4071_v49, 5  ;;  %v4085_v10 = vshll.u32 %v6731_v24, 16  ;;  %v8121_v56 = vld [vmem:[%s8684_s16 + $0x3c] sm:$0xff]   ;;  %v6736_v50 = vld [vmem:[%s8684_s16 + $0x54] sm:$0xf] }
 0x162   : > { %v4050_v4 = vsel %vm8739_vm2, %v4045_v55, %v4049_v28  ;;  %v4078_v30 = vrot.slane %v4076_v43, 4  ;;  %v4059_v63 = vrot.slane %v4058_v8, 4  ;;  %v4081_v34 = vrot.slane %v4079_v42, 5  ;;  %v9720_v28 = vld [vmem:[#allocation8 + $0x28] sm:$0xff]  }
 0x163   : > { %v6770_v58 = vcombine.low %v4040_v47, %v4050_v4  ;;  %v4068_v7 = vor.u32 %v4067_v53, %v4063_v29  ;;  %v9706_v3 = vrot.slane %v4085_v10, 5  ;;  %v4089_v27 = vshrl.u32 %v6731_v24, 16  ;;  %v9729_v41 = vld [vmem:[%s8684_s16 + $0x58] sm:$0xf] }
 0x164   : > { %v7464_v26 = vpop.f32.mrf.mxu0  ;;  %v4095_v62 = vshll.u32 %v9693_v35, 16  ;;  %v4064_v25 = vsel %vm8739_vm2, %v4059_v63, %v4063_v29  ;;  %v4082_v22 = vor.u32 %v4081_v34, %v4078_v30  ;;  %v4100_v48 = vshrl.u32 %v6733_v0, 16  ;;  %v9738_v29 = vld [vmem:[%s8684_s16 + $0x5c] sm:$0x1] }
 0x165   : > { %v7512_v39 = vpop.f32.mrf.mxu1  ;;  %7799 = vmatmul.mubr.bf16.vlgmr.msra.gmra.mxu1 %v6770_v58  ;;  %v4069_v21 = vrot.slane %v4068_v7, 4  ;;  %v4091_v31 = vrot.slane %v4089_v27, 4  ;;  %v4109_v57 = vshll.u32 %v6734_v16, 16  ;;  %v4113_v55 = vshrl.u32 %v6734_v16, 16  ;;  %v8130_v4 = vld [vmem:[#allocation7 + $0x220] sm:$0xff]  }
 0x166   : > { %v9698_v52 = vadd.f32 %v7512_v39, %v7464_v26  ;;  %v1012_v20 = vpop.f32.mrf.mxu0  ;;  %7879 = vmatpush3.bf16.msra.mxu1 %v9594_v13  ;;  %v4097_v2 = vrot.slane %v4095_v62, 5  ;;  %v4103_v13 = vshll.u32 %v6733_v0, 16  ;;  %v4083_v26 = vrot.slane %v4082_v22, 4  ;;  %v8124_v39 = vld [vmem:[%s8684_s16 + $0x48] sm:$0xff]   ;;  %v8131_v0 = vld [vmem:[#allocation8 + $0x20] sm:$0xff]  }
 0x167   : > { %v1317_v9 = vpop.f32.mrf.mxu1  ;;  %7751 = vmatmul.mubr.bf16.vlgmr.msra.gmra.mxu0 %v8117_v18  ;;  %v4074_v6 = vsel %vm8739_vm2, %v4069_v21, %v4073_v36  ;;  %v4092_v32 = vor.u32 %v4091_v31, %v9706_v3  ;;  %7880 = vmatprep.subr.bf16.mxu1 %v8123_v37  ;;  %v4102_v61 = vrot.slane %v4100_v48, 4  ;;  %v9735_v47 = vrot.slane %v4109_v57, 5  ;;  %v6739_v62 = vld [vmem:[%s8684_s16 + $0x60] sm:$0xf]  ;;  %v9755_v16 = vld [vmem:[%s8684_s16 + $0x64] sm:$0xf] }
 0x168   : > { %v9703_v19 = vadd.f32 %v1317_v9, %v1012_v20  ;;  %v7465_v5 = vpop.f32.mrf.mxu0  ;;  %7831 = vmatpush3.bf16.msra.mxu0 %v9614_v54  ;;  %7754 = vmatprep.mubr.bf16.mxu0 %v8120_v45  ;;  %v6771_v1 = vcombine.low %v4064_v25, %v4074_v6  ;;  %v4105_v18 = vrot.slane %v4103_v13, 5  ;;  %v4088_v43 = vsel %vm8739_vm2, %v4083_v26, %v9706_v3  ;;  %v9772_v13 = vld [vmem:[%s8684_s16 + $0x68] sm:$0x1]  ;;  %v6742_v26 = vld [vmem:[%s8684_s16 + $0x6c] sm:$0xf] }
 0x169   : > { %v7513_v15 = vpop.f32.mrf.mxu1  ;;  %7832 = vmatprep.subr.bf16.mxu0 %v8122_v23  ;;  %v4093_v20 = vrot.slane %v4092_v32, 4  ;;  %v4119_v53 = vshll.u32 %v6735_v59, 16  ;;  %v4124_v36 = vshrl.u32 %v6736_v50, 16  ;;  %v4115_v42 = vrot.slane %v4113_v55, 4  ;;  %v8135_v32 = vld [vmem:[#allocation8 + $0x18] sm:$0xff]  }
 0x16a   : > { %v9711_v12 = vadd.f32 %v7513_v15, %v7465_v5  ;;  %v1015_v38 = vpop.f32.mrf.mxu0  ;;  %7802 = vmatprep.mubr.bf16.mxu1 %v6771_v1  ;;  %7881 = vmatpush3.bf16.msra.mxu1 %v8123_v37  ;;  %v4106_v30 = vor.u32 %v4105_v18, %v4102_v61  ;;  %v4127_v10 = vshll.u32 %v6736_v50, 16  ;;  %v4137_v22 = vshrl.u32 %v9729_v41, 16  ;;  %v8128_v1 = vld [vmem:[%s8684_s16 + $0x60] sm:$0xff]   ;;  %v9783_v55 = vld [vmem:[%s8684_s16 + $0x70] sm:$0xf] }
 0x16b   : > { %v1320_v46 = vpop.f32.mrf.mxu1  ;;  %v4098_v58 = vsel %vm8739_vm2, %v4093_v20, %v4097_v2  ;;  %v4121_v63 = vrot.slane %v4119_v53, 5  ;;  %v4126_v7 = vrot.slane %v4124_v36, 4  ;;  %7882 = vmatprep.subr.bf16.mxu1 %v9720_v28  ;;  %v4116_v27 = vor.u32 %v4115_v42, %v9735_v47 }
 0x16c   : > { %v9722_v11 = vadd.f32 %v1320_v46, %v1015_v38  ;;  %v7468_v54 = vpop.f32.mrf.mxu0  ;;  %7833 = vmatpush3.bf16.msra.mxu0 %v8122_v23  ;;  %v4133_v23 = vshll.u32 %v9729_v41, 16  ;;  %v6772_v37 = vcombine.low %v4088_v43, %v4098_v58  ;;  %v4107_v3 = vrot.slane %v4106_v30, 4  ;;  %v9757_v38 = vld [vmem:[#allocation7 + $0x218] sm:$0xff]   ;;  %v8138_v58 = vld [vmem:[#allocation7 + $0x210] sm:$0xff]  }
 0x16d   : > { %v7516_v24 = vpop.f32.mrf.mxu1  ;;  %7834 = vmatprep.subr.bf16.mxu0 %v9715_v60  ;;  %v4129_v21 = vrot.slane %v4127_v10, 5  ;;  %v4143_v31 = vshll.u32 %v9738_v29, 16  ;;  %v4117_v6 = vrot.slane %v4116_v27, 4  ;;  %v4151_v18 = vshll.u32 %v6739_v62, 16 }
 0x16e   : > { %v9732_v14 = vadd.f32 %v7516_v24, %v7468_v54  ;;  %v1028_v49 = vpop.f32.mrf.mxu0  ;;  %v9759_v46 = vrot.slane %v4133_v23, 5  ;;  %7803 = vmatmul.mubr.bf16.gmra.mxu1 %v6772_v37  ;;  %v4112_v48 = vsel %vm8739_vm2, %v4107_v3, %v9735_v47  ;;  %v4148_v24 = vshrl.u32 %v6739_v62, 16  ;;  %v8139_v37 = vld [vmem:[#allocation8 + $0x10] sm:$0xff]  }
 0x16f   : > { %v1333_v8 = vpop.f32.mrf.mxu1  ;;  %7755 = vmatmul.mubr.bf16.gmra.mxu0 %v8121_v56  ;;  %v8125_v56 = vld [vmem:[%s8684_s16 + $0x54] sm:$0xff]   ;;  %v4130_v50 = vor.u32 %v4129_v21, %v4126_v7  ;;  %v4145_v41 = vrot.slane %v4143_v31, 5  ;;  %7883 = vmatpush3.bf16.msra.mxu1 %v9720_v28  ;;  %v4122_v61 = vsel %vm8739_vm2, %v4117_v6, %v4121_v63  ;;  %v4157_v47 = vshll.u32 %v9755_v16, 16 }
 0x170   : > { %v9743_v9 = vadd.f32 %v1333_v8, %v1028_v49  ;;  %v7469_v45 = vpop.f32.mrf.mxu0  ;;  %7758 = vmatprep.mubr.bf16.mxu0 %v8124_v39  ;;  %7835 = vmatpush3.bf16.msra.mxu0 %v9715_v60  ;;  %v4139_v60 = vrot.slane %v4137_v22, 4  ;;  %v6773_v43 = vcombine.low %v4112_v48, %v4122_v61  ;;  %v4150_v53 = vrot.slane %v4148_v24, 4  ;;  %v6745_v6 = vld [vmem:[%s8684_s16 + $0x78] sm:$0xf] }
 0x171   : > { %v7517_v5 = vpop.f32.mrf.mxu1  ;;  %7836 = vmatprep.subr.bf16.mxu0 %v8130_v4  ;;  %7884 = vmatprep.subr.bf16.mxu1 %v8131_v0  ;;  %v4131_v20 = vrot.slane %v4130_v50, 4  ;;  %v4153_v30 = vrot.slane %v4151_v18, 5  ;;  %v9788_v42 = vrot.slane %v4157_v47, 5  ;;  %v4161_v10 = vshrl.u32 %v9755_v16, 16 }
 0x172   : > { %v9750_v15 = vadd.f32 %v7517_v5, %v7469_v45  ;;  %v1031_v34 = vpop.f32.mrf.mxu0  ;;  %v4140_v28 = vor.u32 %v4139_v60, %v9759_v46  ;;  %7806 = vmatprep.mubr.bf16.mxu1 %v6773_v43  ;;  %v4172_v23 = vshrl.u32 %v6742_v26, 16  ;;  %v4175_v21 = vshll.u32 %v6742_v26, 16  ;;  %v9810_v60 = vld [vmem:[%s8684_s16 + $0x7c] sm:$0xf] }
 0x173   : > { %v1336_v25 = vpop.f32.mrf.mxu1  ;;  %v4136_v5 = vsel %vm8739_vm2, %v4131_v20, %v9759_v46  ;;  %7885 = vmatpush3.bf16.msra.mxu1 %v8131_v0  ;;  %v4154_v27 = vor.u32 %v4153_v30, %v4150_v53  ;;  %v4163_v62 = vrot.slane %v4161_v10, 4  ;;  %v4181_v48 = vshll.u32 %v9783_v55, 16  ;;  %v8129_v20 = vld [vmem:[%s8684_s16 + $0x6c] sm:$0xff]   ;;  %v8143_v53 = vld [vmem:[#allocation8 + $0x8] sm:$0xff]  }
 0x174   : > { %v9765_v59 = vadd.f32 %v1336_v25, %v1031_v34  ;;  %v7472_v54 = vpop.f32.mrf.mxu0  ;;  %7837 = vmatpush3.bf16.msra.mxu0 %v8130_v4  ;;  %v4141_v63 = vrot.slane %v4140_v28, 4  ;;  %v4167_v4 = vshll.u32 %v9772_v13, 16  ;;  %v9799_v25 = vld [vmem:[%s8684_s16 + $0x74] sm:$0x1]  ;;  %7886 = vmatprep.subr.bf16.mxu1 %v8135_v32  ;;  %v4174_v0 = vrot.slane %v4172_v23, 4  ;;  %v8132_v28 = vld [vmem:[%s8684_s16 + $0x78] sm:$0xff]  }
 0x175   : > { %v7520_v57 = vpop.f32.mrf.mxu1  ;;  %7838 = vmatprep.subr.bf16.mxu0 %v9757_v38  ;;  %v4164_v50 = vor.u32 %v4163_v62, %v9788_v42  ;;  %v4177_v24 = vrot.slane %v4175_v21, 5  ;;  %v9812_v26 = vrot.slane %v4181_v48, 5  ;;  %v4185_v61 = vshrl.u32 %v9783_v55, 16  ;;  %v9832_v62 = vld [vmem:[%s8684_s16 + $0x88] sm:$0xf]  ;;  %v8146_v21 = vld [vmem:[#allocation7 + $0x200] sm:$0xff]  }
 0x176   : > { %v9779_v49 = vadd.f32 %v7520_v57, %v7472_v54  ;;  %v1044_v39 = vpop.f32.mrf.mxu0  ;;  %v4146_v46 = vsel %vm8739_vm2, %v4141_v63, %v4145_v41  ;;  %v4169_v31 = vrot.slane %v4167_v4, 5  ;;  %v4155_v57 = vrot.slane %v4154_v27, 4  ;;  %v8142_v41 = vld [vmem:[#allocation7 + $0x208] sm:$0xff]  }
 0x177   : > { %v1349_v8 = vpop.f32.mrf.mxu1  ;;  %7759 = vmatmul.mubr.bf16.gmra.mxu0 %v8125_v56  ;;  %v6774_v54 = vcombine.low %v4136_v5, %v4146_v46  ;;  %7887 = vmatpush3.bf16.msra.mxu1 %v8135_v32  ;;  %v4165_v47 = vrot.slane %v4164_v50, 4  ;;  %v4178_v32 = vor.u32 %v4177_v24, %v4174_v0  ;;  %v4187_v30 = vrot.slane %v4185_v61, 4  ;;  %v9825_v63 = vld [vmem:[%s8684_s16 + $0x80] sm:$0x1] }
 0x178   : > { %v9786_v36 = vadd.f32 %v1349_v8, %v1044_v39  ;;  %v7473_v45 = vpop.f32.mrf.mxu0  ;;  %7762 = vmatprep.mubr.bf16.mxu0 %v8128_v1  ;;  %7839 = vmatpush3.bf16.msra.mxu0 %v9757_v38  ;;  %v4191_v38 = vshll.u32 %v9799_v25, 16  ;;  %v4160_v18 = vsel %vm8739_vm2, %v4155_v57, %v9788_v42  ;;  %v4196_v8 = vshrl.u32 %v6745_v6, 16 }
 0x179   : > { %v7521_v7 = vpop.f32.mrf.mxu1  ;;  %7840 = vmatprep.subr.bf16.mxu0 %v8138_v58  ;;  %7807 = vmatmul.mubr.bf16.gmra.mxu1 %v6774_v54  ;;  %v4170_v42 = vsel %vm8739_vm2, %v4165_v47, %v4169_v31  ;;  %v4205_v27 = vshll.u32 %v9810_v60, 16  ;;  %v4188_v0 = vor.u32 %v4187_v30, %v9812_v26  ;;  %v4209_v50 = vshrl.u32 %v9810_v60, 16 }
 0x17a   : > { %v9796_v34 = vadd.f32 %v7521_v7, %v7473_v45  ;;  %v1047_v3 = vpop.f32.mrf.mxu0  ;;  %7888 = vmatprep.subr.bf16.mxu1 %v8139_v37  ;;  %v4193_v10 = vrot.slane %v4191_v38, 5  ;;  %v6748_v7 = vld [vmem:[%s8684_s16 + $0x84] sm:$0xf]  ;;  %v4198_v23 = vrot.slane %v4196_v8, 4  ;;  %v6775_v46 = vcombine.low %v4160_v18, %v4170_v42 }
 0x17b   : > { %v1352_v22 = vpop.f32.mrf.mxu1  ;;  %7889 = vmatpush3.bf16.msra.mxu1 %v8139_v37  ;;  %v4189_v61 = vrot.slane %v4188_v0, 4  ;;  %v4220_v18 = vshrl.u32 %v6748_v7, 16  ;;  %v4223_v30 = vshll.u32 %v6748_v7, 16  ;;  %v10872_v40 = vrot.slane %v9673_v17, 5 }
 0x17c   : > { %v9806_v56 = vadd.f32 %v1352_v22, %v1047_v3  ;;  %v7476_v43 = vpop.f32.mrf.mxu0  ;;  %7841 = vmatpush3.bf16.msra.mxu0 %v8138_v58  ;;  %v4199_v3 = vshll.u32 %v6745_v6, 16  ;;  %v4179_v22 = vrot.slane %v4178_v32, 4  ;;  %v8147_v58 = vld [vmem:[#allocation8] sm:$0xff]   ;;  %v9837_v6 = vrot.slane %v4205_v27, 5  ;;  %7890 = vmatprep.subr.bf16.mxu1 %v8143_v53  ;;  %v9847_v32 = vld [vmem:[%s8684_s16 + $0x8c] sm:$0x1] }
 0x17d   : > { %v7524_v1 = vpop.f32.mrf.mxu1  ;;  %7842 = vmatprep.subr.bf16.mxu0 %v8142_v41  ;;  %7810 = vmatprep.mubr.bf16.mxu1 %v6775_v46  ;;  %v6751_v27 = vld [vmem:[%s8684_s16 + $0x90] sm:$0xf] }
 0x17e   : > { %v9822_v45 = vadd.f32 %v7524_v1, %v7476_v43  ;;  %v1060_v4 = vpop.f32.mrf.mxu0  ;;  %v4201_v57 = vrot.slane %v4199_v3, 5  ;;  %v4215_v1 = vshll.u32 %v9825_v63, 16  ;;  %v4184_v24 = vsel %vm8739_vm2, %v4179_v22, %v9812_v26 }
 0x17f   : > { %v1365_v5 = vpop.f32.mrf.mxu1  ;;  %7763 = vmatmul.mubr.bf16.gmra.mxu0 %v8129_v20  ;;  %v4211_v20 = vrot.slane %v4209_v50, 4  ;;  %v4222_v3 = vrot.slane %v4220_v18, 4  ;;  %7891 = vmatpush3.bf16.msra.mxu1 %v8143_v53  ;;  %v4225_v22 = vrot.slane %v4223_v30, 5  ;;  %v8136_v50 = vld [vmem:[%s8684_s16 + $0x90] sm:$0xff]   ;;  %v9869_v18 = vld [vmem:[%s8684_s16 + $0x98] sm:$0x1] }
 0x180   : > { %v9835_v48 = vadd.f32 %v1365_v5, %v1060_v4  ;;  %v7477_v31 = vpop.f32.mrf.mxu0  ;;  %7766 = vmatprep.mubr.bf16.mxu0 %v8132_v28  ;;  %v4202_v43 = vor.u32 %v4201_v57, %v4198_v23  ;;  %v4217_v8 = vrot.slane %v4215_v1, 5  ;;  %7843 = vmatpush3.bf16.msra.mxu0 %v8142_v41  ;;  %v4194_v5 = vsel %vm8739_vm2, %v4189_v61, %v4193_v10  ;;  %v8133_v4 = vld [vmem:[%s8684_s16 + $0x84] sm:$0xff]   ;;  %v9863_v53 = vld [vmem:[%s8684_s16 + $0x94] sm:$0xf] }
 0x181   : > { %v7525_v54 = vpop.f32.mrf.mxu1  ;;  %v4229_v28 = vshll.u32 %v9832_v62, 16  ;;  %7844 = vmatprep.subr.bf16.mxu0 %v8146_v21  ;;  %v6776_v23 = vcombine.low %v4184_v24, %v4194_v5  ;;  %v4212_v7 = vor.u32 %v4211_v20, %v9837_v6  ;;  %7892 = vmatprep.subr.bf16.mxu1 %v8147_v58  ;;  %v4226_v61 = vor.u32 %v4225_v22, %v4222_v3 }
 0x182   : > { %v9844_v37 = vadd.f32 %v7525_v54, %v7477_v31  ;;  %v1063_v47 = vpop.f32.mrf.mxu0  ;;  %v4203_v46 = vrot.slane %v4202_v43, 4  ;;  %v4233_v54 = vshrl.u32 %v9832_v62, 16  ;;  %v4239_v31 = vshll.u32 %v9847_v32, 16  ;;  %v6754_v43 = vld [vmem:[%s8684_s16 + $0x9c] sm:$0xf] }
 0x183   : > { %v1368_v38 = vpop.f32.mrf.mxu1  ;;  %v4231_v0 = vrot.slane %v4229_v28, 5  ;;  %7811 = vmatmul.mubr.bf16.gmra.mxu1 %v6776_v23  ;;  %v4213_v24 = vrot.slane %v4212_v7, 4  ;;  %v4247_v28 = vshll.u32 %v6751_v27, 16  ;;  %v4227_v3 = vrot.slane %v4226_v61, 4  ;;  %v8137_v61 = vld [vmem:[%s8684_s16 + $0x9c] sm:$0xff]  }
 0x184   : > { %v9851_v26 = vadd.f32 %v1368_v38, %v1063_v47  ;;  %v7480_v41 = vpop.f32.mrf.mxu0  ;;  %v4208_v1 = vsel %vm8739_vm2, %v4203_v46, %v9837_v6  ;;  %v4244_v47 = vshrl.u32 %v6751_v27, 16  ;;  %7845 = vmatpush3.bf16.msra.mxu0 %v8146_v21  ;;  %v4235_v20 = vrot.slane %v4233_v54, 4  ;;  %7893 = vmatpush3.bf16.msra.mxu1 %v8147_v58 }
 0x185   : > { %v7528_v42 = vpop.f32.mrf.mxu1  ;;  %v4241_v30 = vrot.slane %v4239_v31, 5  ;;  %v4218_v6 = vsel %vm8739_vm2, %v4213_v24, %v4217_v8  ;;  %v4253_v21 = vshll.u32 %v9863_v53, 16  ;;  %v4249_v27 = vrot.slane %v4247_v28, 5 }
 0x186   : > { %v9857_v10 = vadd.f32 %v7528_v42, %v7480_v41  ;;  %v1076_v38 = vpop.f32.mrf.mxu0  ;;  %v9875_v41 = vld [vmem:[%s8684_s16 + $0xa0] sm:$0xf]  ;;  %v4246_v46 = vrot.slane %v4244_v47, 4  ;;  %v6777_v7 = vcombine.low %v4208_v1, %v4218_v6  ;;  %v4236_v22 = vor.u32 %v4235_v20, %v4231_v0 }
 0x187   : > { %v1381_v57 = vpop.f32.mrf.mxu1  ;;  %7767 = vmatmul.mubr.bf16.gmra.mxu0 %v8133_v4  ;;  %v4232_v58 = vsel %vm8739_vm2, %v4227_v3, %v4231_v0  ;;  %v4255_v8 = vrot.slane %v4253_v21, 5  ;;  %v4257_v4 = vshrl.u32 %v9863_v53, 16  ;;  %v4263_v24 = vshll.u32 %v9869_v18, 16 }
 0x188   : > { %10850 = vst [vmem:[#allocation25_spill] sm:$0xff] %v9857_v10  ;;  %v9872_v5 = vadd.f32 %v1381_v57, %v1076_v38  ;;  %v7481_v23 = vpop.f32.mrf.mxu0  ;;  %7770 = vmatprep.mubr.bf16.mxu0 %v8136_v50  ;;  %v9888_v38 = vld [vmem:[%s8684_s16 + $0xa4] sm:$0x1]  ;;  %7814 = vmatprep.mubr.bf16.mxu1 %v6777_v7  ;;  %v4237_v1 = vrot.slane %v4236_v22, 4  ;;  %v4250_v50 = vor.u32 %v4249_v27, %v4246_v46  ;;  %v4271_v6 = vshll.u32 %v6754_v43, 16 }
 0x189   : > { %v7529_v42 = vpop.f32.mrf.mxu1  ;;  %10853 = vst [vmem:[#allocation28_spill] sm:$0xff] %v9888_v38  ;;  %v4259_v28 = vrot.slane %v4257_v4, 4  ;;  %v4265_v0 = vrot.slane %v4263_v24, 5  ;;  %v4277_v3 = vshll.u32 %v9875_v41, 16  ;;  %v4281_v22 = vshrl.u32 %v9875_v41, 16 }
 0x18a   : > { %10851 = vst [vmem:[#allocation26_spill] sm:$0xff] %v9872_v5  ;;  %v9880_v54 = vadd.f32 %v7529_v42, %v7481_v23  ;;  %v1079_v57 = vpop.f32.mrf.mxu0  ;;  %v4268_v42 = vshrl.u32 %v6754_v43, 16  ;;  %v6757_v23 = vld [vmem:[%s8684_s16 + $0xa8] sm:$0xf]  ;;  %v4242_v21 = vsel %vm8739_vm2, %v4237_v1, %v4241_v30  ;;  %v4251_v39 = vrot.slane %v4250_v50, 4 }
 0x18b   : > { %v1384_v31 = vpop.f32.mrf.mxu1  ;;  %v6778_v46 = vcombine.low %v4232_v58, %v4242_v21  ;;  %v4260_v27 = vor.u32 %v4259_v28, %v4255_v8  ;;  %v4273_v4 = vrot.slane %v4271_v6, 5  ;;  %v4279_v24 = vrot.slane %v4277_v3, 5  ;;  %v9899_v43 = vld [vmem:[%s8684_s16 + $0xac] sm:$0xf] }
 0x18c   : > { %10852 = vst [vmem:[#allocation27_spill] sm:$0xff] %v9880_v54  ;;  %v9890_v47 = vadd.f32 %v1384_v31, %v1079_v57  ;;  %v4270_v7 = vrot.slane %v4268_v42, 4  ;;  %v8140_v57 = vld [vmem:[%s8684_s16 + $0xa8] sm:$0xff]   ;;  %v7484_v2 = vpop.f32.mrf.mxu0  ;;  %v4256_v33 = vsel %vm8739_vm2, %v4251_v39, %v4255_v8  ;;  %v4283_v30 = vrot.slane %v4281_v22, 4  ;;  %v9907_v42 = vld [vmem:[%s8684_s16 + $0xb0] sm:$0x1] }
 0x18d   : > { %v7532_v20 = vpop.f32.mrf.mxu1  ;;  %v4287_v1 = vshll.u32 %v9888_v38, 16  ;;  %10856 = vst [vmem:[#allocation31_spill] sm:$0xff] %v9907_v42  ;;  %7815 = vmatmul.mubr.bf16.gmra.mxu1 %v6778_v46  ;;  %v4261_v58 = vrot.slane %v4260_v27, 4  ;;  %v4292_v3 = vshrl.u32 %v6757_v23, 16  ;;  %v4295_v21 = vshll.u32 %v6757_v23, 16 }
 0x18e   : > { %10854 = vst [vmem:[#allocation29_spill] sm:$0xff] %v9890_v47  ;;  %v9903_v47 = vadd.f32 %v7532_v20, %v7484_v2  ;;  %v4274_v28 = vor.u32 %v4273_v4, %v4270_v7  ;;  %v1092_v6 = vpop.f32.mrf.mxu0  ;;  %v6760_v54 = vld [vmem:[%s8684_s16 + $0xb4] sm:$0xf]  ;;  %v4284_v5 = vor.u32 %v4283_v30, %v4279_v24  ;;  %v4301_v20 = vshll.u32 %v9899_v43, 16  ;;  %v9917_v23 = vld [vmem:[%s8684_s16 + $0xb8] sm:$0xf] }
 0x18f   : > { %v1397_v31 = vpop.f32.mrf.mxu1  ;;  %7771 = vmatmul.mubr.bf16.gmra.mxu0 %v8137_v61  ;;  %v4289_v39 = vrot.slane %v4287_v1, 5  ;;  %v4266_v22 = vsel %vm8739_vm2, %v4261_v58, %v4265_v0  ;;  %v4294_v46 = vrot.slane %v4292_v3, 4  ;;  %v4297_v27 = vrot.slane %v4295_v21, 5  ;;  %v8141_v4 = vld [vmem:[%s8684_s16 + $0xb4] sm:$0xff]   ;;  %10858 = vst [vmem:[#allocation33_spill] sm:$0xff] %v9917_v23 }
 0x190   : > { %10855 = vst [vmem:[#allocation30_spill] sm:$0xff] %v9903_v47  ;;  %v9910_v2 = vadd.f32 %v1397_v31, %v1092_v6  ;;  %7774 = vmatprep.mubr.bf16.mxu0 %v8140_v57  ;;  %v4275_v61 = vrot.slane %v4274_v28, 4  ;;  %v7485_v7 = vpop.f32.mrf.mxu0  ;;  %v6779_v30 = vcombine.low %v4256_v33, %v4266_v22  ;;  %v4285_v1 = vrot.slane %v4284_v5, 4  ;;  %v9927_v21 = vld [vmem:[%s8684_s16 + $0xbc] sm:$0x1] }
 0x191   : > { %v7533_v50 = vpop.f32.mrf.mxu1  ;;  %v4303_v6 = vrot.slane %v4301_v20, 5  ;;  %v4298_v58 = vor.u32 %v4297_v27, %v4294_v46  ;;  %v4305_v28 = vshrl.u32 %v9899_v43, 16  ;;  %v4311_v3 = vshll.u32 %v9907_v42, 16  ;;  %10860 = vst [vmem:[#allocation35_spill] sm:$0xff] %v9927_v21 }
 0x192   : > { %10857 = vst [vmem:[#allocation32_spill] sm:$0xff] %v9910_v2  ;;  %v9919_v31 = vadd.f32 %v7533_v50, %v7485_v7  ;;  %v8144_v2 = vld [vmem:[%s8684_s16 + $0xc0] sm:$0xff]   ;;  %v4280_v47 = vsel %vm8739_vm2, %v4275_v61, %v4279_v24  ;;  %v1095_v0 = vpop.f32.mrf.mxu0  ;;  %7818 = vmatprep.mubr.bf16.mxu1 %v6779_v30  ;;  %v4290_v33 = vsel %vm8739_vm2, %v4285_v1, %v4289_v39  ;;  %v4316_v50 = vshrl.u32 %v6760_v54, 16 }
 0x193   : > { %v1400_v8 = vpop.f32.mrf.mxu1  ;;  %v4319_v20 = vshll.u32 %v6760_v54, 16  ;;  %v6763_v7 = vld [vmem:[%s8684_s16 + $0xc0] sm:$0xf]  ;;  %v4299_v24 = vrot.slane %v4298_v58, 4  ;;  %v4307_v61 = vrot.slane %v4305_v28, 4  ;;  %v4313_v46 = vrot.slane %v4311_v3, 5 }
 0x194   : > { %10859 = vst [vmem:[#allocation34_spill] sm:$0xff] %v9919_v31  ;;  %v9931_v5 = vadd.f32 %v1400_v8, %v1095_v0  ;;  %v6780_v31 = vcombine.low %v4280_v47, %v4290_v33  ;;  %v4318_v42 = vrot.slane %v4316_v50, 4  ;;  %v4325_v30 = vshll.u32 %v9917_v23, 16 }
 0x195   : > { %v7536_v57 = vpop.f32.mrf.mxu1  ;;  %v4321_v38 = vrot.slane %v4319_v20, 5  ;;  %v4304_v54 = vsel %vm8739_vm2, %v4299_v24, %v4303_v6  ;;  %v4308_v8 = vor.u32 %v4307_v61, %v4303_v6  ;;  %v4329_v47 = vshrl.u32 %v9917_v23, 16 }
 0x196   : > { %10861 = vst [vmem:[#allocation36_spill] sm:$0xff] %v9931_v5  ;;  %v7488_v27 = vpop.f32.mrf.mxu0  ;;  %7819 = vmatmul.mubr.bf16.gmra.mxu1 %v6780_v31  ;;  %v4335_v1 = vshll.u32 %v9927_v21, 16  ;;  %v4327_v28 = vrot.slane %v4325_v30, 5  ;;  %v9947_v31 = vld [vmem:[%s8684_s16 + $0xc8] sm:$0x1]  ;;  %v4340_v50 = vshrl.u32 %v6763_v7, 16 }
 0x197   : > { %v1413_v22 = vpop.f32.mrf.mxu1  ;;  %v9934_v10 = vadd.f32 %v7536_v57, %v7488_v27  ;;  %7775 = vmatmul.mubr.bf16.gmra.mxu0 %v8141_v4  ;;  %v9942_v57 = vld [vmem:[%s8684_s16 + $0xc4] sm:$0xf]  ;;  %v4322_v58 = vor.u32 %v4321_v38, %v4318_v42  ;;  %10865 = vst [vmem:[#allocation40_spill] sm:$0xff] %v9947_v31  ;;  %v4309_v6 = vrot.slane %v4308_v8, 4  ;;  %v4331_v4 = vrot.slane %v4329_v47, 4  ;;  %v8145_v30 = vld [vmem:[%s8684_s16 + $0xcc] sm:$0xff]  }
 0x198   : > { %v1108_v0 = vpop.f32.mrf.mxu0  ;;  %10863 = vst [vmem:[#allocation38_spill] sm:$0xff] %v9942_v57  ;;  %7778 = vmatprep.mubr.bf16.mxu0 %v8144_v2  ;;  %v4337_v20 = vrot.slane %v4335_v1, 5  ;;  %v4343_v61 = vshll.u32 %v6763_v7, 16  ;;  %v6766_v27 = vld [vmem:[%s8684_s16 + $0xcc] sm:$0xf]  ;;  %v4342_v38 = vrot.slane %v4340_v50, 4 }
 0x199   : > { %10862 = vst [vmem:[#allocation37_spill] sm:$0xff] %v9934_v10  ;;  %v7537_v39 = vpop.f32.mrf.mxu1  ;;  %v9944_v3 = vadd.f32 %v1413_v22, %v1108_v0  ;;  %v4323_v10 = vrot.slane %v4322_v58, 4  ;;  %v4349_v42 = vshll.u32 %v9942_v57, 16  ;;  %v4314_v2 = vsel %vm8739_vm2, %v4309_v6, %v4313_v46  ;;  %v9966_v6 = vld [vmem:[%s8684_s16 + $0xd4] sm:$0x1] }
 0x19a   : > { %v7489_v24 = vpop.f32.mrf.mxu0  ;;  %v4332_v0 = vor.u32 %v4331_v4, %v4327_v28  ;;  %v4345_v47 = vrot.slane %v4343_v61, 5  ;;  %v4353_v1 = vshrl.u32 %v9942_v57, 16  ;;  %v6781_v7 = vcombine.low %v4304_v54, %v4314_v2 }
 0x19b   : > { %10864 = vst [vmem:[#allocation39_spill] sm:$0xff] %v9944_v3  ;;  %v1416_v33 = vpop.f32.mrf.mxu1  ;;  %v9950_v5 = vadd.f32 %v7537_v39, %v7489_v24  ;;  %v9958_v3 = vld [vmem:[%s8684_s16 + $0xd0] sm:$0xf]  ;;  %v4328_v39 = vsel %vm8739_vm2, %v4323_v10, %v4327_v28  ;;  %v4351_v50 = vrot.slane %v4349_v42, 5  ;;  %v4359_v46 = vshll.u32 %v9947_v31, 16 }
 0x19c   : > { %v1111_v8 = vpop.f32.mrf.mxu0  ;;  %10867 = vst [vmem:[#allocation42_spill] sm:$0xff] %v9958_v3  ;;  %v4346_v21 = vor.u32 %v4345_v47, %v4342_v38  ;;  %v4355_v23 = vrot.slane %v4353_v1, 4  ;;  %7822 = vmatprep.mubr.bf16.mxu1 %v6781_v7  ;;  %v4364_v4 = vshrl.u32 %v6766_v27, 16  ;;  %v4367_v61 = vshll.u32 %v6766_v27, 16  ;;  %v6794_v31 = vld [vmem:[%s8684_s16 + $0x24] sm:$0xe] }
 0x19d   : > { %10866 = vst [vmem:[#allocation41_spill] sm:$0xff] %v9950_v5  ;;  %v7540_v22 = vpop.f32.mrf.mxu1  ;;  %v9962_v58 = vadd.f32 %v1416_v33, %v1111_v8  ;;  %v4333_v5 = vrot.slane %v4332_v0, 4  ;;  %v4373_v54 = vshll.u32 %v9958_v3, 16  ;;  %v4377_v10 = vshrl.u32 %v9958_v3, 16  ;;  %v6793_v8 = vld [vmem:[%s8684_s16 + $0x18] sm:$0xe] }
 0x19e   : > { %v4347_v42 = vrot.slane %v4346_v21, 4  ;;  %v4356_v38 = vor.u32 %v4355_v23, %v4351_v50  ;;  %v4361_v2 = vrot.slane %v4359_v46, 5  ;;  %v4366_v27 = vrot.slane %v4364_v4, 4  ;;  %v6795_v4 = vld [vmem:[%s8684_s16 + $0x30] sm:$0xe] }
 0x19f   : > { %10868 = vst [vmem:[#allocation43_spill] sm:$0xff] %v9962_v58  ;;  %v1429_v24 = vpop.f32.mrf.mxu1  ;;  %v4338_v33 = vsel %vm8739_vm2, %v4333_v5, %v4337_v20  ;;  %v7492_v0 = vpop.f32.mrf.mxu0  ;;  %7779 = vmatmul.mubr.bf16.gmra.mxu0 %v8145_v30  ;;  %v4369_v7 = vrot.slane %v4367_v61, 5  ;;  %v4375_v21 = vrot.slane %v4373_v54, 5  ;;  %v4379_v23 = vrot.slane %v4377_v10, 4 }
 0x1a0   : > { %v6782_v47 = vcombine.low %v4328_v39, %v4338_v33  ;;  %v9973_v1 = vadd.f32 %v7540_v22, %v7492_v0  ;;  %v4352_v3 = vsel %vm8739_vm2, %v4347_v42, %v4351_v50  ;;  %v4357_v57 = vrot.slane %v4356_v38, 4  ;;  %v8164_v50 = vld [vmem:[%s8684_s16 + $0x1c] sm:$0xf]  ;;  %v8165_v38 = vld [vmem:[%s8684_s16 + $0x20] sm:$0x1] }
 0x1a1   : > { %v7541_v28 = vpop.f32.mrf.mxu1  ;;  %v1124_v5 = vpop.f32.mrf.mxu0  ;;  %v4370_v20 = vor.u32 %v4369_v7, %v4366_v27  ;;  %v4383_v30 = vshll.u32 %v9966_v6, 16  ;;  %v6809_v39 = vrot.slane %v6793_v8, 9  ;;  %v4380_v33 = vor.u32 %v4379_v23, %v4375_v21 }
 0x1a2   : > { %10869 = vst [vmem:[#allocation44_spill] sm:$0xff] %v9973_v1  ;;  %7823 = vmatmul.mubr.bf16.gmra.mxu1 %v6782_v47  ;;  %v9979_v22 = vadd.f32 %v1429_v24, %v1124_v5  ;;  %v4362_v61 = vsel %vm8739_vm2, %v4357_v57, %v4361_v2  ;;  %v4775_v42 = vrot.slane %v8164_v50, 5  ;;  %v4778_v54 = vrot.slane %v8165_v38, 5 }
 0x1a3   : > { %v1432_v58 = vpop.f32.mrf.mxu1  ;;  %v7493_v0 = vpop.f32.mrf.mxu0  ;;  %v6783_v10 = vcombine.low %v4352_v3, %v4362_v61  ;;  %v4371_v1 = vrot.slane %v4370_v20, 4  ;;  %v4385_v47 = vrot.slane %v4383_v30, 5  ;;  %v4381_v7 = vrot.slane %v4380_v33, 4 }
 0x1a4   : > { %v9986_v27 = vadd.f32 %v7541_v28, %v7493_v0  ;;  %v4776_v5 = vsel %vm9040_vm5, %v6809_v39, %v4775_v42  ;;  %v4777_v57 = vrot.slane %v4775_v42, 4  ;;  %v6810_v2 = vrot.slane %v6794_v31, 9  ;;  %v8148_v0 = vld [vmem:[%s8697_s19] sm:$0xff]  }
 0x1a5   : > { %v7608_v46 = vpop.f32.mrf.mxu1  ;;  %v1127_v8 = vpop.f32.mrf.mxu0  ;;  %7826 = vmatprep.mubr.bf16.mxu1 %v6783_v10  ;;  %v4376_v23 = vsel %vm8739_vm2, %v4371_v1, %v4375_v21  ;;  %v10870_v20 = vrot.slane %v9668_v44, 5  ;;  %v6811_v61 = vrot.slane %v6795_v4, 9  ;;  %v4386_v33 = vsel %vm8739_vm2, %v4381_v7, %v4385_v47  ;;  %v8166_v1 = vld [vmem:[%s8684_s16 + $0x34] sm:$0xf]  ;;  %v6796_v42 = vld [vmem:[%s8684_s16 + $0x3c] sm:$0xe] }
 0x1a6   : > { %v9992_v3 = vadd.f32 %v1432_v58, %v1127_v8  ;;  %v4779_v39 = vsel %vm9040_vm5, %v4777_v57, %v4778_v54  ;;  %v4789_v21 = vrot.slane %v8166_v1, 5  ;;  %v6784_v38 = vcombine.low %v4376_v23, %v4386_v33  ;;  %v6797_v7 = vld [vmem:[%s8684_s16 + $0x48] sm:$0xe]  ;;  %v8168_v33 = vld [vmem:[%s8684_s16 + $0x40] sm:$0xf] }
 0x1a7   : > { %v2157_v24 = vpop.f32.mrf.mxu1  ;;  %v4784_v28 = vrot.slane %v10870_v20, 4  ;;  %v7560_v31 = vpop.f32.mrf.mxu0  ;;  %v10871_v50 = vmov %v10870_v20  ;;  %v6825_v10 = vcombine.low %v4776_v5, %v4779_v39  ;;  %v8167_v20 = vld [vmem:[%s8684_s16 + $0x38] sm:$0x1]  ;;  %v4796_v39 = vrot.slane %v8168_v33, 5  ;;  %v8169_v1 = vld [vmem:[%s8684_s16 + $0x4c] sm:$0xf] }
 0x1a8   : > { %v4783_v58 = vsel %vm9040_vm5, %v6810_v2, %v10871_v50  ;;  %v1899_v4 = vadd.f32 %v7560_v31, %v9698_v52  ;;  %v4790_v57 = vsel %vm9040_vm5, %v6811_v61, %v4789_v21  ;;  %v4791_v2 = vrot.slane %v4789_v21, 4  ;;  %v6798_v31 = vld [vmem:[%s8684_s16 + $0x54] sm:$0xe]  ;;  %v8150_v33 = vld [vmem:[%s8697_s19 + $0x10] sm:$0xff]  }
 0x1a9   : > { %v7609_v30 = vpop.f32.mrf.mxu1  ;;  %v4786_v54 = vsel %vm9040_vm5, %v4784_v28, %v10872_v40  ;;  %v1770_v8 = vpop.f32.mrf.mxu0  ;;  %v4792_v5 = vrot.slane %v8167_v20, 5  ;;  %7846 = vmatprep.mubr.bf16.mxu0 %v6825_v10  ;;  %v6812_v28 = vrot.slane %v6796_v42, 9  ;;  %v4803_v21 = vrot.slane %v8169_v1, 5  ;;  %v6799_v40 = vld [vmem:[%s8684_s16 + $0x60] sm:$0xe] }
 0x1aa   : > { %v6826_v44 = vcombine.low %v4783_v58, %v4786_v54  ;;  %7827 = vmatmul.mubr.bf16.gmra.mxu1 %v6784_v38  ;;  %v10016_v17 = vadd.f32 %v7608_v46, %v1899_v4  ;;  %v1897_v52 = vadd.f32 %v1770_v8, %v9703_v19  ;;  %v6813_v58 = vrot.slane %v6797_v7, 9  ;;  %v8170_v46 = vld [vmem:[%s8684_s16 + $0x50] sm:$0x1]  ;;  %v8149_v20 = vld [vmem:[%s8697_s19 + $0x8] sm:$0xff]  }
 0x1ab   : > { %v2160_v47 = vpop.f32.mrf.mxu1  ;;  %7894 = vmatprep.mubr.bf16.mxu1 %v8148_v0  ;;  %v7561_v61 = vpop.f32.mrf.mxu0  ;;  %v4793_v50 = vsel %vm9040_vm5, %v4791_v2, %v4792_v5  ;;  %v4806_v38 = vrot.slane %v8170_v46, 5  ;;  %v4797_v0 = vsel %vm9040_vm5, %v6812_v28, %v4796_v39  ;;  %v4805_v8 = vrot.slane %v4803_v21, 4 }
 0x1ac   : > { %7847 = vmatmul.mubr.bf16.vlgmr.msra.gmra.mxu0 %v6826_v44  ;;  %v10025_v10 = vadd.f32 %v2157_v24, %v1897_v52  ;;  %v1900_v19 = vadd.f32 %v7561_v61, %v9711_v12  ;;  %v6827_v42 = vcombine.low %v4790_v57, %v4793_v50  ;;  %v4798_v44 = vrot.slane %v4796_v39, 4  ;;  %v8171_v52 = vld [vmem:[%s8684_s16 + $0x58] sm:$0xf] }
 0x1ad   : > { %v7612_v23 = vpop.f32.mrf.mxu1  ;;  %v1773_v54 = vpop.f32.mrf.mxu0  ;;  %v4804_v7 = vsel %vm9040_vm5, %v6813_v58, %v4803_v21  ;;  %v6814_v2 = vrot.slane %v6798_v31, 9  ;;  %v4813_v24 = vrot.slane %v9738_v29, 5  ;;  %v4810_v28 = vrot.slane %v8171_v52, 5  ;;  %v6800_v58 = vld [vmem:[%s8684_s16 + $0x6c] sm:$0xe] }
 0x1ae   : > { %v10035_v12 = vadd.f32 %v7609_v30, %v1900_v19  ;;  %v1898_v57 = vadd.f32 %v1773_v54, %v9722_v11  ;;  %7850 = vmatprep.mubr.bf16.mxu0 %v6827_v42  ;;  %v10873_v39 = vrot.slane %v9693_v35, 5  ;;  %v4807_v31 = vsel %vm9040_vm5, %v4805_v8, %v4806_v38 }
 0x1af   : > { %v2173_v4 = vpop.f32.mrf.mxu1  ;;  %v7564_v61 = vpop.f32.mrf.mxu0  ;;  %v6815_v29 = vrot.slane %v6799_v40, 9  ;;  %v4817_v30 = vrot.slane %v9755_v16, 5  ;;  %v6829_v19 = vcombine.low %v4804_v7, %v4807_v31  ;;  %v4811_v35 = vsel %vm9040_vm5, %v6814_v2, %v4810_v28 }
 0x1b0   : > { %v4800_v50 = vsel %vm9040_vm5, %v4798_v44, %v10873_v39  ;;  %v10048_v1 = vadd.f32 %v2160_v47, %v1898_v57  ;;  %v1903_v11 = vadd.f32 %v7564_v61, %v9732_v14  ;;  %v4812_v54 = vrot.slane %v4810_v28, 4  ;;  %v8151_v28 = vld [vmem:[%s8697_s19 + $0x18] sm:$0xff]   ;;  %v6801_v39 = vld [vmem:[%s8684_s16 + $0x78] sm:$0xe] }
 0x1b1   : > { %v7613_v5 = vpop.f32.mrf.mxu1  ;;  %v6828_v21 = vcombine.low %v4797_v0, %v4800_v50  ;;  %v1786_v42 = vpop.f32.mrf.mxu0  ;;  %v4819_v44 = vrot.slane %v4817_v30, 4  ;;  %v4820_v52 = vrot.slane %v9772_v13, 5  ;;  %v6816_v40 = vrot.slane %v6800_v58, 9  ;;  %v8152_v50 = vld [vmem:[%s8697_s19 + $0x20] sm:$0xff]  }
 0x1b2   : > { %7895 = vmatmul.mubr.bf16.vlgmr.msra.gmra.mxu1 %v8149_v20  ;;  %v10054_v38 = vadd.f32 %v7612_v23, %v1903_v11  ;;  %v1901_v16 = vadd.f32 %v1786_v42, %v9743_v9  ;;  %v4824_v14 = vrot.slane %v9783_v55, 5  ;;  %v4827_v0 = vrot.slane %v9799_v25, 5 }
 0x1b3   : > { %v2176_v46 = vpop.f32.mrf.mxu1  ;;  %7898 = vmatprep.mubr.bf16.mxu1 %v8150_v33  ;;  %v7565_v7 = vpop.f32.mrf.mxu0  ;;  %v4814_v8 = vsel %vm9040_vm5, %v4812_v54, %v4813_v24  ;;  %v4818_v55 = vsel %vm9040_vm5, %v6815_v29, %v4817_v30  ;;  %v4821_v20 = vsel %vm9040_vm5, %v4819_v44, %v4820_v52 }
 0x1b4   : > { %7851 = vmatmul.mubr.bf16.gmra.mxu0 %v6828_v21  ;;  %v10061_v13 = vadd.f32 %v2173_v4, %v1901_v16  ;;  %v1904_v23 = vadd.f32 %v7565_v7, %v9750_v15  ;;  %v6830_v9 = vcombine.low %v4811_v35, %v4814_v8  ;;  %v4825_v57 = vsel %vm9040_vm5, %v6816_v40, %v4824_v14  ;;  %v6802_v40 = vld [vmem:[%s8684_s16 + $0x84] sm:$0xe] }
 0x1b5   : > { %v7616_v47 = vpop.f32.mrf.mxu1  ;;  %7854 = vmatprep.mubr.bf16.mxu0 %v6829_v19  ;;  %v1789_v25 = vpop.f32.mrf.mxu0  ;;  %v4826_v24 = vrot.slane %v4824_v14, 4  ;;  %v4831_v4 = vrot.slane %v9810_v60, 5  ;;  %v6831_v21 = vcombine.low %v4818_v55, %v4821_v20  ;;  %v8153_v7 = vld [vmem:[%s8697_s19 + $0x28] sm:$0xff]  }
 0x1b6   : > { %v10072_v33 = vadd.f32 %v7613_v5, %v1904_v23  ;;  %v1902_v15 = vadd.f32 %v1789_v25, %v9765_v59  ;;  %v6817_v5 = vrot.slane %v6801_v39, 9  ;;  %v4834_v59 = vrot.slane %v9825_v63, 5 }
 0x1b7   : > { %v2189_v2 = vpop.f32.mrf.mxu1  ;;  %v7568_v31 = vpop.f32.mrf.mxu0  ;;  %v4828_v29 = vsel %vm9040_vm5, %v4826_v24, %v4827_v0  ;;  %v4833_v42 = vrot.slane %v4831_v4, 4  ;;  %v4838_v63 = vrot.slane %v9832_v62, 5  ;;  %v4845_v0 = vrot.slane %v9863_v53, 5 }
 0x1b8   : > { %v10079_v30 = vadd.f32 %v2176_v46, %v1902_v15  ;;  %v1907_v58 = vadd.f32 %v7568_v31, %v9779_v49  ;;  %v6832_v19 = vcombine.low %v4825_v57, %v4828_v29  ;;  %v4832_v14 = vsel %vm9040_vm5, %v6817_v5, %v4831_v4 }
 0x1b9   : > { %v7617_v61 = vpop.f32.mrf.mxu1  ;;  %v1802_v60 = vpop.f32.mrf.mxu0  ;;  %v6818_v25 = vrot.slane %v6802_v40, 9  ;;  %v4841_v62 = vrot.slane %v9847_v32, 5 }
 0x1ba   : > { %7899 = vmatmul.mubr.bf16.gmra.mxu1 %v8151_v28  ;;  %v10083_v35 = vadd.f32 %v7616_v47, %v1907_v58  ;;  %v1905_v54 = vadd.f32 %v1802_v60, %v9786_v36  ;;  %v4835_v36 = vsel %vm9040_vm5, %v4833_v42, %v4834_v59  ;;  %v4840_v28 = vrot.slane %v4838_v63, 4  ;;  %v8155_v59 = vld [vmem:[%s8697_s19 + $0x38] sm:$0xff]  }
 0x1bb   : > { %v2192_v11 = vpop.f32.mrf.mxu1  ;;  %7902 = vmatprep.mubr.bf16.mxu1 %v8152_v50  ;;  %v7569_v49 = vpop.f32.mrf.mxu0  ;;  %v6833_v4 = vcombine.low %v4832_v14, %v4835_v36  ;;  %v4859_v42 = vrot.slane %v9899_v43, 5  ;;  %v10875_v36 = vld [vmem:[#allocation25_spill] sm:$0xff] }
 0x1bc   : > { %7855 = vmatmul.mubr.bf16.gmra.mxu0 %v6830_v9  ;;  %v10086_v46 = vadd.f32 %v2189_v2, %v1905_v54  ;;  %v1908_v52 = vadd.f32 %v7569_v49, %v9796_v34  ;;  %v6803_v9 = vld [vmem:[%s8684_s16 + $0x90] sm:$0xe]  ;;  %v8154_v2 = vld [vmem:[%s8697_s19 + $0x30] sm:$0xff]  }
 0x1bd   : > { %v7620_v44 = vpop.f32.mrf.mxu1  ;;  %7858 = vmatprep.mubr.bf16.mxu0 %v6831_v21  ;;  %v1805_v47 = vpop.f32.mrf.mxu0  ;;  %v6819_v15 = vrot.slane %v6803_v9, 9  ;;  %v4852_v21 = vrot.slane %v9875_v41, 5  ;;  %v6805_v49 = vld [vmem:[%s8684_s16 + $0xa8] sm:$0xe] }
 0x1be   : > { %v10097_v8 = vadd.f32 %v7617_v61, %v1908_v52  ;;  %v1906_v23 = vadd.f32 %v1805_v47, %v9806_v56  ;;  %v4847_v61 = vrot.slane %v4845_v0, 4  ;;  %v4848_v56 = vrot.slane %v9869_v18, 5  ;;  %v8156_v52 = vld [vmem:[%s8697_s19 + $0x40] sm:$0xff]  }
 0x1bf   : > { %v2205_v16 = vpop.f32.mrf.mxu1  ;;  %v7572_v55 = vpop.f32.mrf.mxu0  ;;  %v4842_v18 = vsel %vm9040_vm5, %v4840_v28, %v4841_v62  ;;  %v4854_v43 = vrot.slane %v4852_v21, 4  ;;  %v10877_v62 = vld [vmem:[#allocation26_spill] sm:$0xff]  ;;  %v10878_v28 = vld [vmem:[#allocation33_spill] sm:$0xff] }
 0x1c0   : > { %v10103_v20 = vadd.f32 %v2192_v11, %v1906_v23  ;;  %v1911_v57 = vadd.f32 %v7572_v55, %v9822_v45  ;;  %v4839_v45 = vsel %vm9040_vm5, %v6818_v25, %v4838_v63  ;;  %v4849_v5 = vsel %vm9040_vm5, %v4847_v61, %v4848_v56  ;;  %v10874_v63 = vld [vmem:[#allocation28_spill] sm:$0xff]  ;;  %v10876_v55 = vld [vmem:[#allocation31_spill] sm:$0xff] }
 0x1c1   : > { %v7621_v34 = vpop.f32.mrf.mxu1  ;;  %v1818_v53 = vpop.f32.mrf.mxu0  ;;  %v6834_v40 = vcombine.low %v4839_v45, %v4842_v18  ;;  %v4855_v47 = vrot.slane %v10874_v63, 5  ;;  %v10879_v61 = vld [vmem:[#allocation27_spill] sm:$0xff] }
 0x1c2   : > { %7903 = vmatmul.mubr.bf16.gmra.mxu1 %v8153_v7  ;;  %v10107_v39 = vadd.f32 %v7620_v44, %v1911_v57  ;;  %v1909_v50 = vadd.f32 %v1818_v53, %v9835_v48  ;;  %v6804_v48 = vld [vmem:[%s8684_s16 + $0x9c] sm:$0xe]  ;;  %v4866_v53 = vrot.slane %v10878_v28, 5  ;;  %v6806_v45 = vld [vmem:[%s8684_s16 + $0xb4] sm:$0xe] }
 0x1c3   : > { %v2208_v24 = vpop.f32.mrf.mxu1  ;;  %7906 = vmatprep.mubr.bf16.mxu1 %v8154_v2  ;;  %v7573_v32 = vpop.f32.mrf.mxu0  ;;  %v6820_v41 = vrot.slane %v6804_v48, 9  ;;  %v4861_v2 = vrot.slane %v4859_v42, 4  ;;  %v10880_v48 = vld [vmem:[#allocation38_spill] sm:$0xff] }
 0x1c4   : > { %7859 = vmatmul.mubr.bf16.gmra.mxu0 %v6832_v19  ;;  %v10112_v29 = vadd.f32 %v2205_v16, %v1909_v50  ;;  %v1912_v58 = vadd.f32 %v7573_v32, %v9844_v37  ;;  %v4846_v19 = vsel %vm9040_vm5, %v6819_v15, %v4845_v0  ;;  %v4868_v63 = vrot.slane %v4866_v53, 4 }
 0x1c5   : > { %v7624_v31 = vpop.f32.mrf.mxu1  ;;  %7862 = vmatprep.mubr.bf16.mxu0 %v6833_v4  ;;  %v1821_v60 = vpop.f32.mrf.mxu0  ;;  %v6835_v23 = vcombine.low %v4846_v19, %v4849_v5  ;;  %v4853_v50 = vsel %vm9040_vm5, %v6820_v41, %v4852_v21  ;;  %v8157_v19 = vld [vmem:[%s8697_s19 + $0x48] sm:$0xff]   ;;  %v6822_v41 = vrot.slane %v6806_v45, 9 }
 0x1c6   : > { %v10125_v54 = vadd.f32 %v7621_v34, %v1912_v58  ;;  %v1910_v37 = vadd.f32 %v1821_v60, %v9851_v26  ;;  %v6821_v34 = vrot.slane %v6805_v49, 9  ;;  %v4862_v26 = vrot.slane %v10876_v55, 5  ;;  %v6807_v49 = vld [vmem:[%s8684_s16 + $0xc0] sm:$0xe]  ;;  %v10884_v55 = vld [vmem:[#allocation40_spill] sm:$0xff] }
 0x1c7   : > { %v2221_v11 = vpop.f32.mrf.mxu1  ;;  %v7576_v16 = vpop.f32.mrf.mxu0  ;;  %v4873_v60 = vrot.slane %v10880_v48, 5 }
 0x1c8   : > { %v10131_v14 = vadd.f32 %v2208_v24, %v1910_v37  ;;  %v1915_v0 = vadd.f32 %v7576_v16, %v10875_v36  ;;  %v4860_v18 = vsel %vm9040_vm5, %v6821_v34, %v4859_v42  ;;  %v10882_v42 = vld [vmem:[#allocation30_spill] sm:$0xff] }
 0x1c9   : > { %v7625_v44 = vpop.f32.mrf.mxu1  ;;  %v1834_v9 = vpop.f32.mrf.mxu0 }
 0x1ca   : > { %7907 = vmatmul.mubr.bf16.gmra.mxu1 %v8155_v59  ;;  %v10135_v25 = vadd.f32 %v7624_v31, %v1915_v0  ;;  %v1913_v57 = vadd.f32 %v1834_v9, %v10877_v62  ;;  %v4856_v31 = vsel %vm9040_vm5, %v4854_v43, %v4855_v47  ;;  %v10881_v59 = vld [vmem:[#allocation29_spill] sm:$0xff]  ;;  %v10883_v43 = vld [vmem:[#allocation35_spill] sm:$0xff] }
 0x1cb   : > { %v2224_v7 = vpop.f32.mrf.mxu1  ;;  %7910 = vmatprep.mubr.bf16.mxu1 %v8156_v52  ;;  %v7577_v24 = vpop.f32.mrf.mxu0  ;;  %v8158_v52 = vld [vmem:[%s8697_s19 + $0x50] sm:$0xff]   ;;  %v4869_v9 = vrot.slane %v10883_v43, 5 }
 0x1cc   : > { %7863 = vmatmul.mubr.bf16.gmra.mxu0 %v6834_v40  ;;  %v10139_v15 = vadd.f32 %v2221_v11, %v1913_v57  ;;  %v1916_v56 = vadd.f32 %v7577_v24, %v10879_v61  ;;  %v4863_v11 = vsel %vm9040_vm5, %v4861_v2, %v4862_v26  ;;  %v6836_v40 = vcombine.low %v4853_v50, %v4856_v31  ;;  %v10885_v57 = vld [vmem:[#allocation32_spill] sm:$0xff]  ;;  %v10886_v50 = vld [vmem:[#allocation34_spill] sm:$0xff] }
 0x1cd   : > { %v7628_v4 = vpop.f32.mrf.mxu1  ;;  %7866 = vmatprep.mubr.bf16.mxu0 %v6835_v23  ;;  %v1837_v58 = vpop.f32.mrf.mxu0  ;;  %v6837_v23 = vcombine.low %v4860_v18, %v4863_v11  ;;  %v4875_v2 = vrot.slane %v4873_v60, 4  ;;  %v4876_v26 = vrot.slane %v10884_v55, 5  ;;  %v4867_v61 = vsel %vm9040_vm5, %v6822_v41, %v4866_v53  ;;  %v10887_v18 = vld [vmem:[#allocation42_spill] sm:$0xff]  ;;  %v8159_v53 = vld [vmem:[%s8697_s19 + $0x58] sm:$0xff]  }
 0x1ce   : > { %v10153_v5 = vadd.f32 %v7625_v44, %v1916_v56  ;;  %v1914_v37 = vadd.f32 %v1837_v58, %v10881_v59  ;;  %v6823_v44 = vrot.slane %v6807_v49, 9  ;;  %v6808_v58 = vld [vmem:[%s8684_s16 + $0xcc] sm:$0xe]  ;;  %v4880_v11 = vrot.slane %v10887_v18, 5 }
 0x1cf   : > { %v2237_v32 = vpop.f32.mrf.mxu1  ;;  %v7580_v16 = vpop.f32.mrf.mxu0  ;;  %v4877_v59 = vsel %vm9040_vm5, %v4875_v2, %v4876_v26  ;;  %v10890_v2 = vld [vmem:[#allocation39_spill] sm:$0xff] }
 0x1d0   : > { %v10158_v47 = vadd.f32 %v2224_v7, %v1914_v37  ;;  %v1919_v36 = vadd.f32 %v7580_v16, %v10882_v42  ;;  %v10888_v37 = vld [vmem:[#allocation36_spill] sm:$0xff]  ;;  %v4883_v42 = vrot.slane %v9966_v6, 5 }
 0x1d1   : > { %v7629_v21 = vpop.f32.mrf.mxu1  ;;  %v1850_v34 = vpop.f32.mrf.mxu0  ;;  %v8160_v16 = vld [vmem:[%s8697_s19 + $0x60] sm:$0xff]  }
 0x1d2   : > { %7911 = vmatmul.mubr.bf16.gmra.mxu1 %v8157_v19  ;;  %v10163_v62 = vadd.f32 %v7628_v4, %v1919_v36  ;;  %v1917_v24 = vadd.f32 %v1850_v34, %v10885_v57  ;;  %v4870_v4 = vsel %vm9040_vm5, %v4868_v63, %v4869_v9  ;;  %v4874_v19 = vsel %vm9040_vm5, %v6823_v44, %v4873_v60 }
 0x1d3   : > { %v2240_v0 = vpop.f32.mrf.mxu1  ;;  %7914 = vmatprep.mubr.bf16.mxu1 %v8158_v52  ;;  %v7581_v28 = vpop.f32.mrf.mxu0  ;;  %v6838_v41 = vcombine.low %v4867_v61, %v4870_v4  ;;  %v6824_v63 = vrot.slane %v6808_v58, 9  ;;  %v6839_v9 = vcombine.low %v4874_v19, %v4877_v59  ;;  %v4882_v34 = vrot.slane %v4880_v11, 4  ;;  %v10892_v58 = vld [vmem:[#allocation43_spill] sm:$0xff]  ;;  %v8162_v19 = vld [vmem:[%s8697_s19 + $0x70] sm:$0xff]  }
 0x1d4   : > { %7867 = vmatmul.mubr.bf16.gmra.mxu0 %v6836_v40  ;;  %v10168_v56 = vadd.f32 %v2237_v32, %v1917_v24  ;;  %v1920_v31 = vadd.f32 %v7581_v28, %v10886_v50 }
 0x1d5   : > { %v7632_v7 = vpop.f32.mrf.mxu1  ;;  %7870 = vmatprep.mubr.bf16.mxu0 %v6837_v23  ;;  %v1853_v48 = vpop.f32.mrf.mxu0  ;;  %v10889_v23 = vld [vmem:[#allocation37_spill] sm:$0xff]  ;;  %v4881_v28 = vsel %vm9040_vm5, %v6824_v63, %v4880_v11  ;;  %v4884_v61 = vsel %vm9040_vm5, %v4882_v34, %v4883_v42 }
 0x1d6   : > { %v10180_v32 = vadd.f32 %v7629_v21, %v1920_v31  ;;  %v1918_v49 = vadd.f32 %v1853_v48, %v10888_v37  ;;  %v8161_v31 = vld [vmem:[%s8697_s19 + $0x68] sm:$0xff]   ;;  %v6840_v59 = vcombine.low %v4881_v28, %v4884_v61  ;;  %v10893_v37 = vld [vmem:[#allocation44_spill] sm:$0xff] }
 0x1d7   : > { %v2253_v45 = vpop.f32.mrf.mxu1  ;;  %v7584_v40 = vpop.f32.mrf.mxu0 }
 0x1d8   : > { %v10185_v36 = vadd.f32 %v2240_v0, %v1918_v49  ;;  %v1923_v43 = vadd.f32 %v7584_v40, %v10889_v23  ;;  %v10891_v0 = vld [vmem:[#allocation41_spill] sm:$0xff] }
 0x1d9   : > { %v7633_v52 = vpop.f32.mrf.mxu1  ;;  %v1866_v44 = vpop.f32.mrf.mxu0 }
 0x1da   : > { %7915 = vmatmul.mubr.bf16.gmra.mxu1 %v8159_v53  ;;  %v10188_v21 = vadd.f32 %v7632_v7, %v1923_v43  ;;  %v1921_v55 = vadd.f32 %v1866_v44, %v10890_v2 }
 0x1db   : > { %v2256_v60 = vpop.f32.mrf.mxu1  ;;  %7918 = vmatprep.mubr.bf16.mxu1 %v8160_v16  ;;  %v7585_v57 = vpop.f32.mrf.mxu0 }
 0x1dc   : > { %7871 = vmatmul.mubr.bf16.gmra.mxu0 %v6838_v41  ;;  %v10191_v6 = vadd.f32 %v2253_v45, %v1921_v55  ;;  %v1924_v24 = vadd.f32 %v7585_v57, %v10891_v0 }
 0x1dd   : > { %v7636_v26 = vpop.f32.mrf.mxu1  ;;  %7874 = vmatprep.mubr.bf16.mxu0 %v6839_v9  ;;  %v1869_v50 = vpop.f32.mrf.mxu0 }
 0x1de   : > { %v10199_v4 = vadd.f32 %v7633_v52, %v1924_v24  ;;  %v1922_v18 = vadd.f32 %v1869_v50, %v10892_v58 }
 0x1df   : > { %v2269_v7 = vpop.f32.mrf.mxu1  ;;  %v7588_v45 = vpop.f32.mrf.mxu0 }
 0x1e0   : > { %v10203_v53 = vadd.f32 %v2256_v60, %v1922_v18  ;;  %v1927_v49 = vadd.f32 %v7588_v45, %v10893_v37  ;;  %v8163_v60 = vld [vmem:[%s8697_s19 + $0x78] sm:$0xff]  }
 0x1e1   : > { %v7637_v48 = vpop.f32.mrf.mxu1  ;;  %v1882_v16 = vpop.f32.mrf.mxu0 }
 0x1e2   : > { %7919 = vmatmul.mubr.bf16.gmra.mxu1 %v8161_v31  ;;  %v10206_v51 = vadd.f32 %v7636_v26, %v1927_v49  ;;  %v1925_v40 = vadd.f32 %v1882_v16, %v9979_v22 }
 0x1e3   : > { %v2272_v11 = vpop.f32.mrf.mxu1  ;;  %7922 = vmatprep.mubr.bf16.mxu1 %v8162_v19  ;;  %v7589_v41 = vpop.f32.mrf.mxu0 }
 0x1e4   : > { %7875 = vmatmul.mubr.bf16.gmra.mxu0 %v6840_v59  ;;  %v10209_v63 = vadd.f32 %v2269_v7, %v1925_v40  ;;  %v1928_v42 = vadd.f32 %v7589_v41, %v9986_v27 }
 0x1e5   : > { %v7704_v52 = vpop.f32.mrf.mxu1  ;;  %v1885_v43 = vpop.f32.mrf.mxu0 }
 0x1e6   : > { %v10213_v9 = vadd.f32 %v7637_v48, %v1928_v42  ;;  %v1926_v34 = vadd.f32 %v1885_v43, %v9992_v3 }
 0x1e7   : > { %v3409_v23 = vpop.f32.mrf.mxu1  ;;  %v7656_v2 = vpop.f32.mrf.mxu0 }
 0x1e8   : > { %v10216_v55 = vadd.f32 %v2272_v11, %v1926_v34  ;;  %v3040_v22 = vadd.f32 %v7656_v2, %v10016_v17 }
 0x1e9   : > { %v7705_v44 = vpop.f32.mrf.mxu1  ;;  %v2911_v57 = vpop.f32.mrf.mxu0 }
 0x1ea   : > { %7923 = vmatmul.mubr.bf16.gmra.mxu1 %v8163_v60  ;;  %v10219_v0 = vadd.f32 %v7704_v52, %v3040_v22  ;;  %v3038_v27 = vadd.f32 %v2911_v57, %v10025_v10 }
 0x1eb   : > { %v3412_v26 = vpop.f32.mrf.mxu1  ;;  %v7657_v28 = vpop.f32.mrf.mxu0 }
 0x1ec   : > { %v10222_v61 = vadd.f32 %v3409_v23, %v3038_v27  ;;  %v3041_v7 = vadd.f32 %v7657_v28, %v10035_v12 }
 0x1ed   : > { %v7708_v24 = vpop.f32.mrf.mxu1  ;;  %v2914_v50 = vpop.f32.mrf.mxu0 }
 0x1ee   : > { %v10225_v31 = vadd.f32 %v7705_v44, %v3041_v7  ;;  %v3039_v58 = vadd.f32 %v2914_v50, %v10048_v1 }
 0x1ef   : > { %v3425_v3 = vpop.f32.mrf.mxu1  ;;  %v7660_v18 = vpop.f32.mrf.mxu0 }
 0x1f0   : > { %v10228_v48 = vadd.f32 %v3412_v26, %v3039_v58  ;;  %v3044_v19 = vadd.f32 %v7660_v18, %v10054_v38 }
 0x1f1   : > { %v7709_v17 = vpop.f32.mrf.mxu1  ;;  %v2927_v10 = vpop.f32.mrf.mxu0 }
 0x1f2   : > { %v10231_v59 = vadd.f32 %v7708_v24, %v3044_v19  ;;  %v3042_v37 = vadd.f32 %v2927_v10, %v10061_v13 }
 0x1f3   : > { %v3428_v45 = vpop.f32.mrf.mxu1  ;;  %v7661_v12 = vpop.f32.mrf.mxu0 }
 0x1f4   : > { %v10234_v11 = vadd.f32 %v3425_v3, %v3042_v37  ;;  %v3045_v16 = vadd.f32 %v7661_v12, %v10072_v33 }
 0x1f5   : > { %v7712_v49 = vpop.f32.mrf.mxu1  ;;  %v2930_v1 = vpop.f32.mrf.mxu0 }
 0x1f6   : > { %v10237_v52 = vadd.f32 %v7709_v17, %v3045_v16  ;;  %v3043_v41 = vadd.f32 %v2930_v1, %v10079_v30 }
 0x1f7   : > { %v3441_v40 = vpop.f32.mrf.mxu1  ;;  %v7664_v38 = vpop.f32.mrf.mxu0 }
 0x1f8   : > { %v10240_v23 = vadd.f32 %v3428_v45, %v3043_v41  ;;  %v3048_v43 = vadd.f32 %v7664_v38, %v10083_v35 }
 0x1f9   : > { %v7713_v42 = vpop.f32.mrf.mxu1  ;;  %v2943_v13 = vpop.f32.mrf.mxu0 }
 0x1fa   : > { %v10243_v34 = vadd.f32 %v7712_v49, %v3048_v43  ;;  %v3046_v44 = vadd.f32 %v2943_v13, %v10086_v46 }
 0x1fb   : > { %v3444_v60 = vpop.f32.mrf.mxu1  ;;  %v7665_v33 = vpop.f32.mrf.mxu0 }
 0x1fc   : > { %v10246_v22 = vadd.f32 %v3441_v40, %v3046_v44  ;;  %v3049_v26 = vadd.f32 %v7665_v33, %v10097_v8 }
 0x1fd   : > { %v7716_v2 = vpop.f32.mrf.mxu1  ;;  %v2946_v30 = vpop.f32.mrf.mxu0 }
 0x1fe   : > { %v10249_v27 = vadd.f32 %v7713_v42, %v3049_v26  ;;  %v3047_v24 = vadd.f32 %v2946_v30, %v10103_v20 }
 0x1ff   : > { %v3457_v57 = vpop.f32.mrf.mxu1  ;;  %v7668_v35 = vpop.f32.mrf.mxu0 }
 0x200   : > { %v10252_v7 = vadd.f32 %v3444_v60, %v3047_v24  ;;  %v3052_v3 = vadd.f32 %v7668_v35, %v10107_v39 }
 0x201   : > { %v7717_v28 = vpop.f32.mrf.mxu1  ;;  %v2959_v46 = vpop.f32.mrf.mxu0 }
 0x202   : > { %v10255_v58 = vadd.f32 %v7716_v2, %v3052_v3  ;;  %v3050_v17 = vadd.f32 %v2959_v46, %v10112_v29 }
 0x203   : > { %v3460_v50 = vpop.f32.mrf.mxu1  ;;  %v7669_v8 = vpop.f32.mrf.mxu0 }
 0x204   : > { %v10258_v19 = vadd.f32 %v3457_v57, %v3050_v17  ;;  %v3053_v45 = vadd.f32 %v7669_v8, %v10125_v54 }
 0x205   : > { %v7720_v18 = vpop.f32.mrf.mxu1  ;;  %v2962_v20 = vpop.f32.mrf.mxu0 }
 0x206   : > { %v10261_v37 = vadd.f32 %v7717_v28, %v3053_v45  ;;  %v3051_v49 = vadd.f32 %v2962_v20, %v10131_v14 }
 0x207   : > { %v3473_v10 = vpop.f32.mrf.mxu1  ;;  %v7672_v39 = vpop.f32.mrf.mxu0 }
 0x208   : > { %v10264_v16 = vadd.f32 %v3460_v50, %v3051_v49  ;;  %v3056_v40 = vadd.f32 %v7672_v39, %v10135_v25 }
 0x209   : > { %v7721_v12 = vpop.f32.mrf.mxu1  ;;  %v2975_v29 = vpop.f32.mrf.mxu0 }
 0x20a   : > { %v10267_v41 = vadd.f32 %v7720_v18, %v3056_v40  ;;  %v3054_v42 = vadd.f32 %v2975_v29, %v10139_v15 }
 0x20b   : > { %v3476_v1 = vpop.f32.mrf.mxu1  ;;  %v7673_v54 = vpop.f32.mrf.mxu0 }
 0x20c   : > { %v10270_v43 = vadd.f32 %v3473_v10, %v3054_v42  ;;  %v3057_v60 = vadd.f32 %v7673_v54, %v10153_v5 }
 0x20d   : > { %v7724_v38 = vpop.f32.mrf.mxu1  ;;  %v2978_v14 = vpop.f32.mrf.mxu0 }
 0x20e   : > { %v10273_v44 = vadd.f32 %v7721_v12, %v3057_v60  ;;  %v3055_v2 = vadd.f32 %v2978_v14, %v10158_v47 }
 0x20f   : > { %v3489_v13 = vpop.f32.mrf.mxu1  ;;  %v7676_v25 = vpop.f32.mrf.mxu0 }
 0x210   : > { %v10276_v26 = vadd.f32 %v3476_v1, %v3055_v2  ;;  %v3060_v57 = vadd.f32 %v7676_v25, %v10163_v62 }
 0x211   : > { %v7725_v33 = vpop.f32.mrf.mxu1  ;;  %v2991_v15 = vpop.f32.mrf.mxu0 }
 0x212   : > { %v10279_v24 = vadd.f32 %v7724_v38, %v3060_v57  ;;  %v3058_v28 = vadd.f32 %v2991_v15, %v10168_v56 }
 0x213   : > { %v3492_v30 = vpop.f32.mrf.mxu1  ;;  %v7677_v5 = vpop.f32.mrf.mxu0 }
 0x214   : > { %v10282_v3 = vadd.f32 %v3489_v13, %v3058_v28  ;;  %v3061_v50 = vadd.f32 %v7677_v5, %v10180_v32 }
 0x215   : > { %v7728_v35 = vpop.f32.mrf.mxu1  ;;  %v2994_v47 = vpop.f32.mrf.mxu0 }
 0x216   : > { %v10285_v17 = vadd.f32 %v7725_v33, %v3061_v50  ;;  %v3059_v18 = vadd.f32 %v2994_v47, %v10185_v36 }
 0x217   : > { %v3505_v46 = vpop.f32.mrf.mxu1  ;;  %v7680_v62 = vpop.f32.mrf.mxu0 }
 0x218   : > { %v10288_v45 = vadd.f32 %v3492_v30, %v3059_v18  ;;  %v3064_v10 = vadd.f32 %v7680_v62, %v10188_v21 }
 0x219   : > { %v7729_v8 = vpop.f32.mrf.mxu1  ;;  %v3007_v56 = vpop.f32.mrf.mxu0 }
 0x21a   : > { %v10291_v49 = vadd.f32 %v7728_v35, %v3064_v10  ;;  %v3062_v12 = vadd.f32 %v3007_v56, %v10191_v6 }
 0x21b   : > { %v3508_v20 = vpop.f32.mrf.mxu1  ;;  %v7681_v39 = vpop.f32.mrf.mxu0 }
 0x21c   : > { %v10294_v32 = vadd.f32 %v3505_v46, %v3062_v12  ;;  %v3065_v40 = vadd.f32 %v7681_v39, %v10199_v4 }
 0x21d   : > { %v7732_v1 = vpop.f32.mrf.mxu1  ;;  %v3010_v29 = vpop.f32.mrf.mxu0 }
 0x21e   : > { %v10297_v36 = vadd.f32 %v7729_v8, %v3065_v40  ;;  %v3063_v42 = vadd.f32 %v3010_v29, %v10203_v53 }
 0x21f   : > { %v3521_v38 = vpop.f32.mrf.mxu1  ;;  %v7684_v54 = vpop.f32.mrf.mxu0 }
 0x220   : > { %10894 = vst [vmem:[#allocation28_spill] sm:$0xff] %v10297_v36  ;;  %v10300_v21 = vadd.f32 %v3508_v20, %v3063_v42  ;;  %v3068_v60 = vadd.f32 %v7684_v54, %v10206_v51 }
 0x221   : > { %v7733_v13 = vpop.f32.mrf.mxu1  ;;  %v3023_v14 = vpop.f32.mrf.mxu0 }
 0x222   : > { %10895 = vst [vmem:[#allocation25_spill] sm:$0xff] %v10300_v21  ;;  %v10303_v6 = vadd.f32 %v7732_v1, %v3068_v60  ;;  %v3066_v2 = vadd.f32 %v3023_v14, %v10209_v63 }
 0x223   : > { %v7685_v33 = vpop.f32.mrf.mxu0  ;;  %v3524_v4 = vpop.f32.mrf.mxu1 }
 0x224   : > { %v10306_v25 = vadd.f32 %v3521_v38, %v3066_v2  ;;  %v3069_v57 = vadd.f32 %v7685_v33, %v10213_v9 }
 0x225   : > { %v3026_v30 = vpop.f32.mrf.mxu0  ;;  %v10312_v35 = vpop.f32.mrf.mxu1 }
 0x226   : > { %v10309_v53 = vadd.f32 %v7733_v13, %v3069_v57  ;;  %v3067_v15 = vadd.f32 %v3026_v30, %v10216_v55 }
 0x227   : > { %v7752_v28 = vpop.f32.mrf.mxu0  ;;  %v10319_v50 = vpop.f32.mrf.mxu1 }
 0x228   : > { %10896 = vst [vmem:[#allocation31_spill] sm:$0xff] %v10309_v53  ;;  %v10314_v51 = vadd.f32 %v3524_v4, %v3067_v15  ;;  %v10317_v5 = vadd.f32 %v7752_v28, %v10219_v0 }
 0x229   : > { %v3796_v63 = vpop.f32.mrf.mxu0  ;;  %v10326_v47 = vpop.f32.mrf.mxu1 }
 0x22a   : > { %10897 = vst [vmem:[#allocation26_spill] sm:$0xff] %v10314_v51  ;;  %v10322_v46 = vadd.f32 %v3796_v63, %v10222_v61 }
 0x22b   : > { %v10324_v9 = vpop.f32.mrf.mxu0  ;;  %v10330_v55 = vpop.f32.mrf.mxu1 }
 0x22d   : > { %v10328_v18 = vpop.f32.mrf.mxu0 }
 0x22e   : > { %v10335_v0 = vpop.f32.mrf.mxu1 }
 0x22f   : > { %v7756_v8 = vpop.f32.mrf.mxu0 }
 0x230   : > { %v10333_v62 = vadd.f32 %v7756_v8, %v10231_v59  ;;  %v10340_v61 = vpop.f32.mrf.mxu1 }
 0x231   : > { %v3812_v10 = vpop.f32.mrf.mxu0 }
 0x232   : > { %v10338_v20 = vadd.f32 %v3812_v10, %v10234_v11  ;;  %v10342_v12 = vpop.f32.mrf.mxu1 }
 0x233   : > { %v7757_v56 = vpop.f32.mrf.mxu0 }
 0x234   : > { %v10344_v40 = vpop.f32.mrf.mxu1 }
 0x235   : > { %v3815_v39 = vpop.f32.mrf.mxu0 }
 0x237   : > { %v7760_v1 = vpop.f32.mrf.mxu0 }
 0x238   : > { %v10347_v29 = vadd.f32 %v7760_v1, %v10243_v34 }
 0x239   : > { %v3828_v59 = vpop.f32.mrf.mxu0  ;;  %v10352_v38 = vpop.f32.mrf.mxu1 }
 0x23a   : > { %v10350_v42 = vadd.f32 %v3828_v59, %v10246_v22 }
 0x23b   : > { %v7761_v11 = vpop.f32.mrf.mxu0  ;;  %v10354_v54 = vpop.f32.mrf.mxu1 }
 0x23d   : > { %v3831_v60 = vpop.f32.mrf.mxu0  ;;  %v10356_v13 = vpop.f32.mrf.mxu1 }
 0x23f   : > { %v7764_v14 = vpop.f32.mrf.mxu0  ;;  %v10361_v33 = vpop.f32.mrf.mxu1 }
 0x240   : > { %v10359_v2 = vadd.f32 %v7764_v14, %v10255_v58 }
 0x241   : > { %v3844_v34 = vpop.f32.mrf.mxu0 }
 0x242   : > { %v10364_v4 = vadd.f32 %v3844_v34, %v10258_v19 }
 0x243   : > { %v7765_v22 = vpop.f32.mrf.mxu0  ;;  %v10366_v57 = vpop.f32.mrf.mxu1 }
 0x245   : > { %v3847_v30 = vpop.f32.mrf.mxu0  ;;  %v10368_v15 = vpop.f32.mrf.mxu1 }
 0x247   : > { %v7768_v28 = vpop.f32.mrf.mxu0  ;;  %v10373_v8 = vpop.f32.mrf.mxu1 }
 0x248   : > { %v10371_v63 = vadd.f32 %v7768_v28, %v10267_v41 }
 0x249   : > { %v3860_v58 = vpop.f32.mrf.mxu0  ;;  %v10378_v1 = vpop.f32.mrf.mxu1 }
 0x24a   : > { %10898 = vst [vmem:[#allocation33_spill] sm:$0xff] %v10371_v63  ;;  %v10376_v10 = vadd.f32 %v3860_v58, %v10270_v43  ;;  %10900 = vst [vmem:[#allocation38_spill] sm:$0xff] %v10378_v1 }
 0x24b   : > { %v7769_v19 = vpop.f32.mrf.mxu0 }
 0x24c   : > { %10899 = vst [vmem:[#allocation27_spill] sm:$0xff] %v10376_v10 }
 0x24d   : > { %v3863_v59 = vpop.f32.mrf.mxu0  ;;  %v10380_v14 = vpop.f32.mrf.mxu1 }
 0x24e   : > { %10901 = vst [vmem:[#allocation29_spill] sm:$0xff] %v10380_v14 }
 0x24f   : > { %v7772_v34 = vpop.f32.mrf.mxu0  ;;  %v10385_v53 = vpop.f32.mrf.mxu1 }
 0x250   : > { %v10383_v51 = vadd.f32 %v7772_v34, %v10279_v24  ;;  %10903 = vst [vmem:[#allocation35_spill] sm:$0xff] %v10385_v53 }
 0x251   : > { %v3876_v41 = vpop.f32.mrf.mxu0  ;;  %v10390_v21 = vpop.f32.mrf.mxu1 }
 0x252   : > { %10902 = vst [vmem:[#allocation30_spill] sm:$0xff] %v10383_v51  ;;  %v10388_v28 = vadd.f32 %v3876_v41, %v10282_v3  ;;  %10905 = vst [vmem:[#allocation32_spill] sm:$0xff] %v10390_v21 }
 0x253   : > { %v7773_v43 = vpop.f32.mrf.mxu0  ;;  %v10392_v58 = vpop.f32.mrf.mxu1 }
 0x254   : > { %10904 = vst [vmem:[#allocation40_spill] sm:$0xff] %v10388_v28  ;;  %10906 = vst [vmem:[#allocation34_spill] sm:$0xff] %v10392_v58 }
 0x255   : > { %v3879_v36 = vpop.f32.mrf.mxu0 }
 0x256   : > { %v10394_v10 = vpop.f32.mrf.mxu1 }
 0x257   : > { %10907 = vst [vmem:[#allocation42_spill] sm:$0xff] %v10394_v10  ;;  %v7776_v63 = vpop.f32.mrf.mxu0 }
 0x258   : > { %v10397_v14 = vadd.f32 %v7776_v63, %v10291_v49  ;;  %v4630_v24 = vpop.f32.mrf.mxu1 }
 0x259   : > { %v3892_v34 = vpop.f32.mrf.mxu0 }
 0x25a   : > { %10908 = vst [vmem:[#allocation36_spill] sm:$0xff] %v10397_v14  ;;  %v10400_v51 = vadd.f32 %v3892_v34, %v10294_v32  ;;  %v7821_v53 = vpop.f32.mrf.mxu1  ;;  %v3924_v14 = vadd.f32 %v10328_v18, %v10228_v48 }
 0x25b   : > { %v10402_v3 = vpop.f32.mrf.mxu0 }
 0x25c   : > { %10909 = vst [vmem:[#allocation37_spill] sm:$0xff] %v10400_v51  ;;  %v4633_v28 = vpop.f32.mrf.mxu1  ;;  %v3926_v51 = vadd.f32 %v10324_v9, %v10225_v31  ;;  %v4677_v31 = vadd.f32 %v10319_v50, %v10322_v46  ;;  %v3938_v9 = vadd.f32 %v7765_v22, %v10261_v37  ;;  %v10458_v37 = vadd.f32 %v10352_v38, %v10347_v29 }
 0x25d   : > { %v10404_v41 = vpop.f32.mrf.mxu0  ;;  %v3942_v50 = vadd.f32 %v7769_v19, %v10273_v44  ;;  %v3940_v46 = vadd.f32 %v3863_v59, %v10276_v26  ;;  %v10480_v44 = vadd.f32 %v10368_v15, %v10364_v4  ;;  %v10923_v19 = vld [vmem:[#allocation40_spill] sm:$0xff] }
 0x25e   : > { %v4680_v48 = vadd.f32 %v10326_v47, %v3926_v51  ;;  %v10483_v26 = vadd.f32 %v10373_v8, %v3938_v9  ;;  %v10922_v15 = vld [vmem:[#allocation42_spill] sm:$0xff]  ;;  %v10511_v59 = vadd.f32 %v4630_v24, %v10923_v19 }
 0x25f   : > { %v7780_v21 = vpop.f32.mrf.mxu0 }
 0x260   : > { %v10407_v58 = vadd.f32 %v7780_v21, %v10303_v6  ;;  %v3930_v6 = vadd.f32 %v7757_v56, %v10237_v52  ;;  %v4678_v52 = vadd.f32 %v10330_v55, %v3924_v14  ;;  %v10464_v55 = vadd.f32 %v10354_v54, %v10350_v42  ;;  %v10915_v54 = vld [vmem:[#allocation33_spill] sm:$0xff] }
 0x261   : > { %v3908_v10 = vpop.f32.mrf.mxu0  ;;  %v3944_v56 = vadd.f32 %v3879_v36, %v10288_v45  ;;  %v10920_v36 = vld [vmem:[#allocation34_spill] sm:$0xff] }
 0x262   : > { %10910 = vst [vmem:[#allocation39_spill] sm:$0xff] %v10407_v58  ;;  %v10409_v1 = vpop.f32.mrf.mxu1  ;;  %v10412_v49 = vadd.f32 %v3908_v10, %v10306_v25  ;;  %v3928_v25 = vadd.f32 %v3815_v39, %v10240_v23  ;;  %v4679_v10 = vadd.f32 %v10312_v35, %v10317_v5  ;;  %v10443_v23 = vadd.f32 %v10335_v0, %v10333_v62  ;;  %v10914_v39 = vld [vmem:[#allocation38_spill] sm:$0xff] }
 0x263   : > { %v10414_v63 = vpop.f32.mrf.mxu0  ;;  %v3936_v35 = vadd.f32 %v3847_v30, %v10264_v16  ;;  %v10474_v0 = vadd.f32 %v10366_v57, %v10359_v2  ;;  %v10917_v2 = vld [vmem:[#allocation27_spill] sm:$0xff]  ;;  %v10504_v22 = vadd.f32 %v10920_v36, %v3940_v46  ;;  %v10921_v30 = vld [vmem:[#allocation30_spill] sm:$0xff]  ;;  %v10927_v46 = vld [vmem:[#allocation37_spill] sm:$0xff] }
 0x264   : > { %10911 = vst [vmem:[#allocation41_spill] sm:$0xff] %v10412_v49  ;;  %10912 = vst [vmem:[#allocation43_spill] sm:$0xff] %v10414_v63  ;;  %v10416_v32 = vpop.f32.mrf.mxu1  ;;  %v3934_v49 = vadd.f32 %v7761_v11, %v10249_v27  ;;  %v4681_v27 = vadd.f32 %v10340_v61, %v10338_v20  ;;  %v10454_v51 = vadd.f32 %v10344_v40, %v3928_v25  ;;  %v10924_v25 = vld [vmem:[#allocation28_spill] sm:$0xff] }
 0x265   : > { %v10424_v21 = vpop.f32.mrf.mxu0  ;;  %v3946_v61 = vadd.f32 %v7773_v43, %v10285_v17  ;;  %v10488_v40 = vadd.f32 %v10914_v39, %v3936_v35  ;;  %v10919_v17 = vld [vmem:[#allocation32_spill] sm:$0xff]  ;;  %v10508_v8 = vadd.f32 %v10922_v15, %v10921_v30 }
 0x266   : > { %v10418_v34 = vpop.f32.mrf.mxu1  ;;  %v10467_v16 = vadd.f32 %v10356_v13, %v3934_v49  ;;  %v10501_v45 = vadd.f32 %v10919_v17, %v3942_v50  ;;  %v10926_v50 = vld [vmem:[#allocation36_spill] sm:$0xff] }
 0x267   : > { %10913 = vst [vmem:[#allocation44_spill] sm:$0xff] %v10418_v34  ;;  %v3932_v34 = vadd.f32 %v3831_v60, %v10252_v7  ;;  %v10448_v7 = vadd.f32 %v10342_v12, %v3930_v6  ;;  %v10916_v60 = vld [vmem:[#allocation29_spill] sm:$0xff]  ;;  %v10515_v6 = vadd.f32 %v4633_v28, %v3944_v56  ;;  %v10527_v28 = vadd.f32 %v10409_v1, %v10926_v50  ;;  %v10930_v56 = vld [vmem:[#allocation26_spill] sm:$0xff] }
 0x268   : > { %v10427_v58 = vpop.f32.mrf.mxu1  ;;  %v10494_v13 = vadd.f32 %v10916_v60, %v10915_v54 }
 0x269   : > { %v10470_v62 = vadd.f32 %v10361_v33, %v3932_v34  ;;  %v10918_v33 = vld [vmem:[#allocation35_spill] sm:$0xff]  ;;  %v10513_v34 = vadd.f32 %v7821_v53, %v3946_v61 }
 0x26a   : > { %v10434_v63 = vpop.f32.mrf.mxu1  ;;  %v10498_v4 = vadd.f32 %v10918_v33, %v10917_v2  ;;  %v10932_v50 = vld [vmem:[#allocation39_spill] sm:$0xff] }
 0x26c   : > { %v7848_v18 = vpop.f32.mrf.mxu0  ;;  %v10451_v5 = vpop.f32.mrf.mxu1 }
 0x26d   : > { %v5177_v42 = vadd.f32 %v7848_v18, %v4679_v10  ;;  %v3950_v10 = vadd.f32 %v10402_v3, %v10924_v25  ;;  %v10531_v3 = vadd.f32 %v10416_v32, %v10927_v46  ;;  %v10556_v46 = vadd.f32 %v10434_v63, %v10932_v50 }
 0x26e   : > { %v5048_v47 = vpop.f32.mrf.mxu0  ;;  %v10476_v20 = vpop.f32.mrf.mxu1  ;;  %v10931_v33 = vld [vmem:[#allocation44_spill] sm:$0xff] }
 0x26f   : > { %v5175_v38 = vadd.f32 %v5048_v47, %v4677_v31  ;;  %v10925_v31 = vld [vmem:[#allocation25_spill] sm:$0xff]  ;;  %v10929_v47 = vld [vmem:[#allocation43_spill] sm:$0xff]  ;;  %v5406_v54 = vmul.f32 %v5177_v42, %v5177_v42  ;;  %v10541_v17 = vadd.f32 %v10931_v33, %v3950_v10 }
 0x270   : > { %v7849_v12 = vpop.f32.mrf.mxu0  ;;  %v10490_v29 = vpop.f32.mrf.mxu1 }
 0x271   : > { %v5178_v11 = vadd.f32 %v7849_v12, %v4680_v48  ;;  %v3948_v48 = vadd.f32 %v10404_v41, %v10925_v31  ;;  %v5404_v18 = vmul.f32 %v5175_v38, %v5175_v38  ;;  %v10928_v41 = vld [vmem:[#allocation31_spill] sm:$0xff]  ;;  %v10537_v12 = vadd.f32 %v10424_v21, %v10930_v56 }
 0x272   : > { %v5051_v57 = vpop.f32.mrf.mxu0  ;;  %v7896_v14 = vpop.f32.mrf.mxu1  ;;  %v3954_v61 = vadd.f32 %v10929_v47, %v10928_v41 }
 0x273   : > { %v7024_v43 = vpack.c.bf16 %v5178_v11, %v5177_v42  ;;  %v5176_v49 = vadd.f32 %v5051_v57, %v4678_v52  ;;  %v10544_v32 = vadd.f32 %v10427_v58, %v3948_v48  ;;  %v5407_v36 = vmul.f32 %v5178_v11, %v5178_v11 }
 0x274   : > { %v7852_v9 = vpop.f32.mrf.mxu0  ;;  %v5702_v35 = vpop.f32.mrf.mxu1  ;;  %v10563_v47 = vadd.f32 %v10476_v20, %v3954_v61 }
 0x275   : > { %7176 = vst [vmem:[%s10522_s30 + $0x8] sm:$0xff] %v7024_v43   ;;  %v7019_v24 = vpack.c.bf16 %v5176_v49, %v5175_v38  ;;  %v5367_v52 = vadd.f32 %v5176_v49, %v5175_v38  ;;  %v5405_v53 = vmul.f32 %v5176_v49, %v5176_v49  ;;  %v5181_v19 = vadd.f32 %v7852_v9, %v10443_v23 }
 0x276   : > { %v5064_v39 = vpop.f32.mrf.mxu0  ;;  %v7897_v60 = vpop.f32.mrf.mxu1  ;;  %v6026_v25 = vmul.f32 %v5702_v35, %v5702_v35  ;;  %v6028_v23 = vmul.f32 %v7896_v14, %v7896_v14 }
 0x277   : > { %7020 = vst [vmem:[%s10522_s30] sm:$0xff] %v7019_v24   ;;  %v5368_v38 = vadd.f32 %v5367_v52, %v5177_v42  ;;  %v5436_v2 = vadd.f32 %v5405_v53, %v5404_v18  ;;  %v5179_v1 = vadd.f32 %v5064_v39, %v4681_v27  ;;  %v7104_v57 = vpack.c.bf16 %v7897_v60, %v7896_v14 }
 0x278   : > { %v7853_v30 = vpop.f32.mrf.mxu0  ;;  %v5705_v21 = vpop.f32.mrf.mxu1  ;;  %v5410_v33 = vmul.f32 %v5181_v19, %v5181_v19 }
 0x279   : > { %v5437_v15 = vadd.f32 %v5436_v2, %v5406_v54  ;;  %v5369_v43 = vadd.f32 %v5368_v38, %v5178_v11  ;;  %v5182_v49 = vadd.f32 %v7853_v30, %v10448_v7  ;;  %7191 = vst [vmem:[%s10549_s2 + $0x8] sm:$0xff] %v7104_v57   ;;  %v7099_v27 = vpack.c.bf16 %v5705_v21, %v5702_v35 }
 0x27a   : > { %v5989_v42 = vadd.f32 %v5705_v21, %v5702_v35  ;;  %v6027_v58 = vmul.f32 %v5705_v21, %v5705_v21  ;;  %v5067_v10 = vpop.f32.mrf.mxu0  ;;  %v7900_v31 = vpop.f32.mrf.mxu1  ;;  %v5408_v18 = vmul.f32 %v5179_v1, %v5179_v1  ;;  %v10933_v35 = vld [vmem:[#allocation41_spill] sm:$0xff] }
 0x27b   : > { %v5370_v48 = vadd.f32 %v5369_v43, %v5179_v1  ;;  %v5438_v24 = vadd.f32 %v5437_v15, %v5407_v36  ;;  %v7034_v52 = vpack.c.bf16 %v5182_v49, %v5181_v19  ;;  %7100 = vst [vmem:[%s10549_s2] sm:$0xff] %v7099_v27   ;;  %v5180_v9 = vadd.f32 %v5067_v10, %v10454_v51 }
 0x27c   : > { %v5990_v11 = vadd.f32 %v7896_v14, %v5989_v42  ;;  %v6058_v7 = vadd.f32 %v6027_v58, %v6026_v25  ;;  %v7856_v53 = vpop.f32.mrf.mxu0  ;;  %v10560_v41 = vadd.f32 %v10451_v5, %v10933_v35  ;;  %v5718_v39 = vpop.f32.mrf.mxu1  ;;  %v6029_v14 = vmul.f32 %v7897_v60, %v7897_v60 }
 0x27d   : > { %v5439_v56 = vadd.f32 %v5438_v24, %v5408_v18  ;;  %7178 = vst [vmem:[%s10522_s30 + $0x18] sm:$0xff] %v7034_v52   ;;  %v7029_v51 = vpack.c.bf16 %v5180_v9, %v5179_v1  ;;  %v5371_v63 = vadd.f32 %v5370_v48, %v5180_v9  ;;  %v5409_v57 = vmul.f32 %v5180_v9, %v5180_v9 }
 0x27e   : > { %v6059_v54 = vadd.f32 %v6058_v7, %v6028_v23  ;;  %v5991_v38 = vadd.f32 %v7897_v60, %v5990_v11  ;;  %v5080_v2 = vpop.f32.mrf.mxu0  ;;  %v7901_v36 = vpop.f32.mrf.mxu1  ;;  %v5185_v5 = vadd.f32 %v7856_v53, %v10458_v37  ;;  %v6030_v15 = vmul.f32 %v5718_v39, %v5718_v39 }
 0x27f   : > { %v7114_v61 = vpack.c.bf16 %v7901_v36, %v7900_v31  ;;  %7177 = vst [vmem:[%s10522_s30 + $0x10] sm:$0xff] %v7029_v51   ;;  %v5372_v43 = vadd.f32 %v5371_v63, %v5181_v19  ;;  %v5440_v25 = vadd.f32 %v5439_v56, %v5409_v57  ;;  %v5183_v60 = vadd.f32 %v5080_v2, %v10464_v55 }
 0x280   : > { %v5992_v30 = vadd.f32 %v5991_v38, %v5718_v39  ;;  %v6060_v20 = vadd.f32 %v6059_v54, %v6029_v14  ;;  %v7857_v21 = vpop.f32.mrf.mxu0  ;;  %v5721_v27 = vpop.f32.mrf.mxu1  ;;  %v5411_v18 = vmul.f32 %v5182_v49, %v5182_v49  ;;  %v6032_v19 = vmul.f32 %v7900_v31, %v7900_v31 }
 0x281   : > { %v5186_v1 = vadd.f32 %v7857_v21, %v10467_v16  ;;  %7193 = vst [vmem:[%s10549_s2 + $0x18] sm:$0xff] %v7114_v61   ;;  %v7109_v58 = vpack.c.bf16 %v5721_v27, %v5718_v39  ;;  %v6031_v48 = vmul.f32 %v5721_v27, %v5721_v27  ;;  %v5441_v24 = vadd.f32 %v5440_v25, %v5410_v33 }
 0x282   : > { %v6061_v42 = vadd.f32 %v6060_v20, %v6030_v15  ;;  %v5993_v10 = vadd.f32 %v5992_v30, %v5721_v27  ;;  %v5083_v37 = vpop.f32.mrf.mxu0  ;;  %v7904_v52 = vpop.f32.mrf.mxu1  ;;  %v5373_v23 = vadd.f32 %v5372_v43, %v5182_v49  ;;  %v5414_v16 = vmul.f32 %v5185_v5, %v5185_v5 }
 0x283   : > { %v7044_v11 = vpack.c.bf16 %v5186_v1, %v5185_v5  ;;  %7192 = vst [vmem:[%s10549_s2 + $0x10] sm:$0xff] %v7109_v58   ;;  %v5184_v55 = vadd.f32 %v5083_v37, %v10470_v62  ;;  %v5412_v35 = vmul.f32 %v5183_v60, %v5183_v60  ;;  %v5442_v56 = vadd.f32 %v5441_v24, %v5411_v18 }
 0x284   : > { %v5994_v7 = vadd.f32 %v7900_v31, %v5993_v10  ;;  %v6062_v9 = vadd.f32 %v6061_v42, %v6031_v48  ;;  %v7860_v53 = vpop.f32.mrf.mxu0  ;;  %v5374_v50 = vadd.f32 %v5373_v23, %v5183_v60  ;;  %v5734_v39 = vpop.f32.mrf.mxu1  ;;  %v6033_v14 = vmul.f32 %v7901_v36, %v7901_v36 }
 0x285   : > { %7180 = vst [vmem:[%s10522_s30 + $0x28] sm:$0xff] %v7044_v11   ;;  %v7039_v51 = vpack.c.bf16 %v5184_v55, %v5183_v60  ;;  %v5443_v2 = vadd.f32 %v5442_v56, %v5412_v35  ;;  %v5413_v63 = vmul.f32 %v5184_v55, %v5184_v55  ;;  %v5189_v62 = vadd.f32 %v7860_v53, %v10474_v0 }
 0x286   : > { %v6063_v54 = vadd.f32 %v6062_v9, %v6032_v19  ;;  %v5995_v38 = vadd.f32 %v7901_v36, %v5994_v7  ;;  %v5096_v49 = vpop.f32.mrf.mxu0  ;;  %v7905_v33 = vpop.f32.mrf.mxu1  ;;  %v5375_v31 = vadd.f32 %v5374_v50, %v5184_v55  ;;  %v6034_v30 = vmul.f32 %v5734_v39, %v5734_v39 }
 0x287   : > { %v7124_v20 = vpack.c.bf16 %v7905_v33, %v7904_v52  ;;  %7179 = vst [vmem:[%s10522_s30 + $0x20] sm:$0xff] %v7039_v51   ;;  %v5444_v43 = vadd.f32 %v5443_v2, %v5413_v63  ;;  %v5187_v36 = vadd.f32 %v5096_v49, %v10480_v44  ;;  %v5415_v48 = vmul.f32 %v5186_v1, %v5186_v1 }
 0x288   : > { %v5996_v57 = vadd.f32 %v5995_v38, %v5734_v39  ;;  %v6064_v15 = vadd.f32 %v6063_v54, %v6033_v14  ;;  %v7861_v61 = vpop.f32.mrf.mxu0  ;;  %v5376_v21 = vadd.f32 %v5375_v31, %v5185_v5  ;;  %v5737_v25 = vpop.f32.mrf.mxu1  ;;  %v10581_v5 = vadd.f32 %v10490_v29, %v10537_v12 }
 0x289   : > { %v5190_v27 = vadd.f32 %v7861_v61, %v10483_v26  ;;  %7195 = vst [vmem:[%s10549_s2 + $0x28] sm:$0xff] %v7124_v20   ;;  %v7119_v42 = vpack.c.bf16 %v5737_v25, %v5734_v39  ;;  %v6035_v10 = vmul.f32 %v5737_v25, %v5737_v25  ;;  %v5445_v37 = vadd.f32 %v5444_v43, %v5414_v16 }
 0x28a   : > { %v6065_v60 = vadd.f32 %v6064_v15, %v6034_v30  ;;  %v5997_v58 = vadd.f32 %v5996_v57, %v5737_v25  ;;  %v5099_v0 = vpop.f32.mrf.mxu0  ;;  %v7908_v18 = vpop.f32.mrf.mxu1  ;;  %v5377_v24 = vadd.f32 %v5376_v21, %v5186_v1  ;;  %v6036_v11 = vmul.f32 %v7904_v52, %v7904_v52 }
 0x28b   : > { %v7054_v23 = vpack.c.bf16 %v5190_v27, %v5189_v62  ;;  %7194 = vst [vmem:[%s10549_s2 + $0x20] sm:$0xff] %v7119_v42   ;;  %v5416_v9 = vmul.f32 %v5187_v36, %v5187_v36  ;;  %v5446_v55 = vadd.f32 %v5445_v37, %v5415_v48  ;;  %v5188_v50 = vadd.f32 %v5099_v0, %v10488_v40 }
 0x28c   : > { %v5998_v44 = vadd.f32 %v7904_v52, %v5997_v58  ;;  %v6066_v26 = vadd.f32 %v6065_v60, %v6035_v10  ;;  %v7864_v19 = vpop.f32.mrf.mxu0  ;;  %v5378_v7 = vadd.f32 %v5377_v24, %v5187_v36  ;;  %v5750_v53 = vpop.f32.mrf.mxu1  ;;  %v6037_v16 = vmul.f32 %v7905_v33, %v7905_v33 }
 0x28d   : > { %7182 = vst [vmem:[%s10522_s30 + $0x38] sm:$0xff] %v7054_v23   ;;  %v5418_v35 = vmul.f32 %v5189_v62, %v5189_v62  ;;  %v5447_v29 = vadd.f32 %v5446_v55, %v5416_v9  ;;  %v7049_v14 = vpack.c.bf16 %v5188_v50, %v5187_v36  ;;  %v5417_v54 = vmul.f32 %v5188_v50, %v5188_v50 }
 0x28e   : > { %v6067_v1 = vadd.f32 %v6066_v26, %v6036_v11  ;;  %v5999_v56 = vadd.f32 %v7905_v33, %v5998_v44  ;;  %v5112_v39 = vpop.f32.mrf.mxu0  ;;  %v7909_v12 = vpop.f32.mrf.mxu1  ;;  %v5379_v52 = vadd.f32 %v5378_v7, %v5188_v50  ;;  %v6038_v51 = vmul.f32 %v5750_v53, %v5750_v53 }
 0x28f   : > { %v7134_v2 = vpack.c.bf16 %v7909_v12, %v7908_v18  ;;  %v5419_v63 = vmul.f32 %v5190_v27, %v5190_v27  ;;  %7181 = vst [vmem:[%s10522_s30 + $0x30] sm:$0xff] %v7049_v14   ;;  %v5448_v57 = vadd.f32 %v5447_v29, %v5417_v54  ;;  %v5191_v33 = vadd.f32 %v5112_v39, %v10498_v4 }
 0x290   : > { %v6000_v38 = vadd.f32 %v5999_v56, %v5750_v53  ;;  %v6068_v49 = vadd.f32 %v6067_v1, %v6037_v16  ;;  %v7865_v31 = vpop.f32.mrf.mxu0  ;;  %v5380_v40 = vadd.f32 %v5379_v52, %v5189_v62  ;;  %v5753_v30 = vpop.f32.mrf.mxu1  ;;  %v5193_v36 = vadd.f32 %v7864_v19, %v10494_v13 }
 0x291   : > { %7197 = vst [vmem:[%s10549_s2 + $0x38] sm:$0xff] %v7134_v2   ;;  %v7129_v20 = vpack.c.bf16 %v5753_v30, %v5750_v53  ;;  %v6039_v21 = vmul.f32 %v5753_v30, %v5753_v30  ;;  %v5449_v25 = vadd.f32 %v5448_v57, %v5418_v35  ;;  %v5194_v58 = vadd.f32 %v7865_v31, %v10501_v45 }
 0x292   : > { %v6069_v15 = vadd.f32 %v6068_v49, %v6038_v51  ;;  %v6001_v61 = vadd.f32 %v6000_v38, %v5753_v30  ;;  %v5115_v43 = vpop.f32.mrf.mxu0  ;;  %v7912_v60 = vpop.f32.mrf.mxu1  ;;  %v5381_v42 = vadd.f32 %v5380_v40, %v5190_v27  ;;  %v6040_v10 = vmul.f32 %v7908_v18, %v7908_v18 }
 0x293   : > { %7196 = vst [vmem:[%s10549_s2 + $0x30] sm:$0xff] %v7129_v20   ;;  %v5192_v4 = vadd.f32 %v5115_v43, %v10504_v22  ;;  %v5420_v24 = vmul.f32 %v5191_v33, %v5191_v33  ;;  %v5450_v23 = vadd.f32 %v5449_v25, %v5419_v63  ;;  %v7064_v44 = vpack.c.bf16 %v5194_v58, %v5193_v36 }
 0x294   : > { %v6002_v62 = vadd.f32 %v7908_v18, %v6001_v61  ;;  %v6070_v0 = vadd.f32 %v6069_v15, %v6039_v21  ;;  %v7868_v48 = vpop.f32.mrf.mxu0  ;;  %v5382_v37 = vadd.f32 %v5381_v42, %v5191_v33  ;;  %v5766_v11 = vpop.f32.mrf.mxu1  ;;  %v6041_v26 = vmul.f32 %v7909_v12, %v7909_v12 }
 0x295   : > { %v7059_v27 = vpack.c.bf16 %v5192_v4, %v5191_v33  ;;  %v5422_v45 = vmul.f32 %v5193_v36, %v5193_v36  ;;  %v5451_v9 = vadd.f32 %v5450_v23, %v5420_v24  ;;  %7184 = vst [vmem:[%s10522_s30 + $0x48] sm:$0xff] %v7064_v44   ;;  %v5421_v53 = vmul.f32 %v5192_v4, %v5192_v4 }
 0x296   : > { %v6071_v13 = vadd.f32 %v6070_v0, %v6040_v10  ;;  %v6003_v19 = vadd.f32 %v7909_v12, %v6002_v62  ;;  %v5128_v7 = vpop.f32.mrf.mxu0  ;;  %v7913_v18 = vpop.f32.mrf.mxu1  ;;  %v5383_v55 = vadd.f32 %v5382_v37, %v5192_v4  ;;  %v6042_v50 = vmul.f32 %v5766_v11, %v5766_v11 }
 0x297   : > { %v7144_v1 = vpack.c.bf16 %v7913_v18, %v7912_v60  ;;  %7183 = vst [vmem:[%s10522_s30 + $0x40] sm:$0xff] %v7059_v27   ;;  %v5423_v56 = vmul.f32 %v5194_v58, %v5194_v58  ;;  %v5452_v29 = vadd.f32 %v5451_v9, %v5421_v53  ;;  %v5195_v14 = vadd.f32 %v5128_v7, %v10511_v59 }
 0x298   : > { %v6004_v22 = vadd.f32 %v6003_v19, %v5766_v11  ;;  %v6072_v16 = vadd.f32 %v6071_v13, %v6041_v26  ;;  %v7869_v35 = vpop.f32.mrf.mxu0  ;;  %v5384_v39 = vadd.f32 %v5383_v55, %v5193_v36  ;;  %v5769_v12 = vpop.f32.mrf.mxu1  ;;  %v5197_v31 = vadd.f32 %v7868_v48, %v10508_v8 }
 0x299   : > { %7199 = vst [vmem:[%s10549_s2 + $0x48] sm:$0xff] %v7144_v1   ;;  %v7139_v54 = vpack.c.bf16 %v5769_v12, %v5766_v11  ;;  %v6043_v51 = vmul.f32 %v5769_v12, %v5769_v12  ;;  %v5453_v2 = vadd.f32 %v5452_v29, %v5422_v45  ;;  %v5198_v57 = vadd.f32 %v7869_v35, %v10513_v34 }
 0x29a   : > { %v6073_v52 = vadd.f32 %v6072_v16, %v6042_v50  ;;  %v6005_v38 = vadd.f32 %v6004_v22, %v5769_v12  ;;  %v5131_v49 = vpop.f32.mrf.mxu0  ;;  %v7916_v63 = vpop.f32.mrf.mxu1  ;;  %v5385_v40 = vadd.f32 %v5384_v39, %v5194_v58  ;;  %v6044_v30 = vmul.f32 %v7912_v60, %v7912_v60 }
 0x29b   : > { %7198 = vst [vmem:[%s10549_s2 + $0x40] sm:$0xff] %v7139_v54   ;;  %v5196_v59 = vadd.f32 %v5131_v49, %v10515_v6  ;;  %v5424_v21 = vmul.f32 %v5195_v14, %v5195_v14  ;;  %v5454_v43 = vadd.f32 %v5453_v2, %v5423_v56  ;;  %v7074_v36 = vpack.c.bf16 %v5198_v57, %v5197_v31 }
 0x29c   : > { %v6006_v33 = vadd.f32 %v7912_v60, %v6005_v38  ;;  %v6074_v15 = vadd.f32 %v6073_v52, %v6043_v51  ;;  %v7872_v20 = vpop.f32.mrf.mxu0  ;;  %v5386_v61 = vadd.f32 %v5385_v40, %v5195_v14  ;;  %v5782_v25 = vpop.f32.mrf.mxu1  ;;  %v6045_v42 = vmul.f32 %v7913_v18, %v7913_v18 }
 0x29d   : > { %v7069_v58 = vpack.c.bf16 %v5196_v59, %v5195_v14  ;;  %v5426_v34 = vmul.f32 %v5197_v31, %v5197_v31  ;;  %v5455_v0 = vadd.f32 %v5454_v43, %v5424_v21  ;;  %7186 = vst [vmem:[%s10522_s30 + $0x58] sm:$0xff] %v7074_v36   ;;  %v5425_v48 = vmul.f32 %v5196_v59, %v5196_v59 }
 0x29e   : > { %v6075_v8 = vadd.f32 %v6074_v15, %v6044_v30  ;;  %v6007_v10 = vadd.f32 %v7913_v18, %v6006_v33  ;;  %v5144_v62 = vpop.f32.mrf.mxu0  ;;  %v7917_v60 = vpop.f32.mrf.mxu1  ;;  %v5387_v4 = vadd.f32 %v5386_v61, %v5196_v59  ;;  %v6046_v37 = vmul.f32 %v5782_v25, %v5782_v25 }
 0x29f   : > { %v7154_v23 = vpack.c.bf16 %v7917_v60, %v7916_v63  ;;  %7185 = vst [vmem:[%s10522_s30 + $0x50] sm:$0xff] %v7069_v58   ;;  %v5427_v44 = vmul.f32 %v5198_v57, %v5198_v57  ;;  %v5456_v13 = vadd.f32 %v5455_v0, %v5425_v48  ;;  %v5199_v27 = vadd.f32 %v5144_v62, %v10531_v3 }
 0x2a0   : > { %v6008_v6 = vadd.f32 %v6007_v10, %v5782_v25  ;;  %v6076_v24 = vadd.f32 %v6075_v8, %v6045_v42  ;;  %v7873_v11 = vpop.f32.mrf.mxu0  ;;  %v5388_v26 = vadd.f32 %v5387_v4, %v5197_v31  ;;  %v5785_v19 = vpop.f32.mrf.mxu1  ;;  %v5201_v22 = vadd.f32 %v7872_v20, %v10527_v28 }
 0x2a1   : > { %7201 = vst [vmem:[%s10549_s2 + $0x58] sm:$0xff] %v7154_v23   ;;  %v7149_v45 = vpack.c.bf16 %v5785_v19, %v5782_v25  ;;  %v6047_v18 = vmul.f32 %v5785_v19, %v5785_v19  ;;  %v5457_v53 = vadd.f32 %v5456_v13, %v5426_v34  ;;  %v5202_v1 = vadd.f32 %v7873_v11, %v10541_v17 }
 0x2a2   : > { %v6077_v7 = vadd.f32 %v6076_v24, %v6046_v37  ;;  %v6009_v9 = vadd.f32 %v6008_v6, %v5785_v19  ;;  %v5147_v55 = vpop.f32.mrf.mxu0  ;;  %v7920_v50 = vpop.f32.mrf.mxu1  ;;  %v5389_v16 = vadd.f32 %v5388_v26, %v5198_v57  ;;  %v6048_v35 = vmul.f32 %v7916_v63, %v7916_v63 }
 0x2a3   : > { %7200 = vst [vmem:[%s10549_s2 + $0x50] sm:$0xff] %v7149_v45   ;;  %v5200_v3 = vadd.f32 %v5147_v55, %v10544_v32  ;;  %v5428_v14 = vmul.f32 %v5199_v27, %v5199_v27  ;;  %v5458_v52 = vadd.f32 %v5457_v53, %v5427_v44  ;;  %v7084_v38 = vpack.c.bf16 %v5202_v1, %v5201_v22 }
 0x2a4   : > { %v6010_v56 = vadd.f32 %v7916_v63, %v6009_v9  ;;  %v6078_v39 = vadd.f32 %v6077_v7, %v6047_v18  ;;  %v7876_v29 = vpop.f32.mrf.mxu0  ;;  %v5390_v12 = vadd.f32 %v5389_v16, %v5199_v27  ;;  %v5798_v54 = vpop.f32.mrf.mxu1  ;;  %v6049_v51 = vmul.f32 %v7917_v60, %v7917_v60 }
 0x2a5   : > { %v7079_v2 = vpack.c.bf16 %v5200_v3, %v5199_v27  ;;  %v5430_v17 = vmul.f32 %v5201_v22, %v5201_v22  ;;  %v5459_v40 = vadd.f32 %v5458_v52, %v5428_v14  ;;  %7188 = vst [vmem:[%s10522_s30 + $0x68] sm:$0xff] %v7084_v38   ;;  %v5429_v30 = vmul.f32 %v5200_v3, %v5200_v3 }
 0x2a6   : > { %v6079_v28 = vadd.f32 %v6078_v39, %v6048_v35  ;;  %v6011_v49 = vadd.f32 %v7917_v60, %v6010_v56  ;;  %v5160_v31 = vpop.f32.mrf.mxu0  ;;  %v7921_v63 = vpop.f32.mrf.mxu1  ;;  %v5391_v57 = vadd.f32 %v5390_v12, %v5200_v3  ;;  %v6050_v33 = vmul.f32 %v5798_v54, %v5798_v54 }
 0x2a7   : > { %v7164_v59 = vpack.c.bf16 %v7921_v63, %v7920_v50  ;;  %7187 = vst [vmem:[%s10522_s30 + $0x60] sm:$0xff] %v7079_v2   ;;  %v5431_v61 = vmul.f32 %v5202_v1, %v5202_v1  ;;  %v5460_v43 = vadd.f32 %v5459_v40, %v5429_v30  ;;  %v5203_v36 = vadd.f32 %v5160_v31, %v10560_v41 }
 0x2a8   : > { %v6012_v32 = vadd.f32 %v6011_v49, %v5798_v54  ;;  %v6080_v15 = vadd.f32 %v6079_v28, %v6049_v51  ;;  %v7877_v20 = vpop.f32.mrf.mxu0  ;;  %v5392_v21 = vadd.f32 %v5391_v57, %v5201_v22  ;;  %v5801_v25 = vpop.f32.mrf.mxu1  ;;  %v5205_v0 = vadd.f32 %v7876_v29, %v10556_v46 }
 0x2a9   : > { %7203 = vst [vmem:[%s10549_s2 + $0x68] sm:$0xff] %v7164_v59   ;;  %v7159_v8 = vpack.c.bf16 %v5801_v25, %v5798_v54  ;;  %v6051_v58 = vmul.f32 %v5801_v25, %v5801_v25  ;;  %v5461_v34 = vadd.f32 %v5460_v43, %v5430_v17  ;;  %v10617_v48 = vadd.f32 %v7877_v20, %v10563_v47 }
 0x2aa   : > { %v6081_v42 = vadd.f32 %v6080_v15, %v6050_v33  ;;  %v6013_v10 = vadd.f32 %v6012_v32, %v5801_v25  ;;  %v5163_v62 = vpop.f32.mrf.mxu0  ;;  %v10614_v60 = vpop.f32.mrf.mxu1  ;;  %v5393_v4 = vadd.f32 %v5392_v21, %v5202_v1  ;;  %v6052_v6 = vmul.f32 %v7920_v50, %v7920_v50 }
 0x2ab   : > { %7202 = vst [vmem:[%s10549_s2 + $0x60] sm:$0xff] %v7159_v8   ;;  %v5204_v24 = vadd.f32 %v5163_v62, %v10581_v5  ;;  %v5432_v11 = vmul.f32 %v5203_v36, %v5203_v36  ;;  %v5462_v46 = vadd.f32 %v5461_v34, %v5431_v61  ;;  %v7094_v26 = vpack.c.bf16 %v10617_v48, %v5205_v0 }
 0x2ac   : > { %v6014_v41 = vadd.f32 %v7920_v50, %v6013_v10  ;;  %v6082_v37 = vadd.f32 %v6081_v42, %v6051_v58  ;;  %v5394_v23 = vadd.f32 %v5393_v4, %v5203_v36  ;;  %v5814_v44 = vpop.f32.mrf.mxu1  ;;  %v6053_v13 = vmul.f32 %v7921_v63, %v7921_v63 }
 0x2ad   : > { %v7089_v27 = vpack.c.bf16 %v5204_v24, %v5203_v36  ;;  %v5463_v5 = vadd.f32 %v5462_v46, %v5432_v11  ;;  %7190 = vst [vmem:[%s10522_s30 + $0x78] sm:$0xff] %v7094_v26   ;;  %v5433_v9 = vmul.f32 %v5204_v24, %v5204_v24  ;;  %v6054_v55 = vmul.f32 %v5814_v44, %v5814_v44 }
 0x2ae   : > { %v6083_v47 = vadd.f32 %v6082_v37, %v6052_v6  ;;  %v6015_v19 = vadd.f32 %v7921_v63, %v6014_v41  ;;  %v10634_v7 = vpop.f32.mrf.mxu1  ;;  %v5395_v45 = vadd.f32 %v5394_v23, %v5204_v24  ;;  %v5434_v50 = vmul.f32 %v5205_v0, %v5205_v0 }
 0x2af   : > { %v7174_v22 = vpack.c.bf16 %v10634_v7, %v10614_v60  ;;  %7189 = vst [vmem:[%s10522_s30 + $0x70] sm:$0xff] %v7089_v27   ;;  %v5464_v1 = vadd.f32 %v5463_v5, %v5433_v9 }
 0x2b0   : > { %v6016_v18 = vadd.f32 %v6015_v19, %v5814_v44  ;;  %v6084_v53 = vadd.f32 %v6083_v47, %v6053_v13  ;;  %v5396_v16 = vadd.f32 %v5395_v45, %v5205_v0  ;;  %v5817_v35 = vpop.f32.mrf.mxu1 }
 0x2b1   : > { %8293 = shalt.err (!%p8290_p4)
}
 0x2b2   : > { %s8294_s16 = scalar_lea.hbm %s10629_s22, 2048  ;;  %s8298_s19 = scalar_lea.hbm %s10804_s4, 4096 }
 0x2b3   : > { %p8295_p5 = scmp.ne.s32.totalorder %s10629_s22, %s8294_s16  ;;  %p8299_p11 = scmp.lt.s32.totalorder %s10629_s22, %s10804_s4 }
 0x2b4   : > { %p8300_p6 = scmp.lt.s32.totalorder %s8298_s19, %s8294_s16 }
 0x2b5   : > { %p8296_p7 = pnand %p8295_p5, %p10934_p10 }
 0x2b6   : > { %p8301_p12 = por %p8300_p6, %p8299_p11 }
 0x2b7   : > { %p8297_p8 = pneg %p8296_p7 }
 0x2b9   : > { %p8302_p0 = pnand %p8301_p12, %p8297_p8 }
 0x2bb   : > { %8305 = shalt.err (!%p8302_p0)
}
 0x2bc   : > { %s8451_s11 = smov 64   ;;  %s8452_s14 = smov 4   ;;  %v6085_v56 = vadd.f32 %v6084_v53, %v6054_v55  ;;  %7205 = vst [vmem:[%s10549_s2 + $0x78] sm:$0xff] %v7174_v22   ;;  %v7169_v39 = vpack.c.bf16 %v5817_v35, %v5814_v44  ;;  %v6017_v3 = vadd.f32 %v6016_v18, %v5817_v35  ;;  %v6055_v29 = vmul.f32 %v5817_v35, %v5817_v35 }
 0x2bd   : > { %7941 = dma.vmem_to_hbm [thread:$0]  (%p10934_p10), %s10631_s10, 2048, %s10629_s22, %s6098_s18, %s8451_s11, %s8451_s11, %s8452_s14   ;;  %v5435_v12 = vmul.f32 %v10617_v48, %v10617_v48  ;;  %v5397_v14 = vadd.f32 %v5396_v16, %v10617_v48  ;;  %v5465_v52 = vadd.f32 %v5464_v1, %v5434_v50  ;;  %v6056_v54 = vmul.f32 %v10614_v60, %v10614_v60 }
 0x2be   : > { %s10672_s29 = scalar_lea.hbm %s10805_s5, %s7014_s17  ;;  %7204 = vst [vmem:[%s10549_s2 + $0x70] sm:$0xff] %v7169_v39   ;;  %v6018_v38 = vadd.f32 %v10614_v60, %v6017_v3  ;;  %v6086_v51 = vadd.f32 %v6085_v56, %v6055_v29  ;;  %s10687_s17 = scalar_lea.sflag [#allocation12], %s331_s0 }
 0x2bf   : > { %v5398_v28 = vrot.slane %v5397_v14, 4  ;;  %v5466_v49 = vadd.f32 %v5465_v52, %v5435_v12  ;;  %s8306_s10 = scalar_lea.vmem %s10676_s3, 2048  ;;  %s8453_s22 = smov [#allocation11]  }
 0x2c0   : > { %p8307_p3 = scmp.ne.s32.totalorder %s10676_s3, %s8306_s10  ;;  %s8310_s18 = sshll.u32 %s8453_s22, 4  ;;  %s8311_s18 = int_to_ptr.vmem [resolvable:$false] %s8310_s18 }
 0x2c1   : > { %s8312_s16 = scalar_lea.vmem %s8311_s18, 4096  ;;  %p8313_p13 = scmp.lt.s32.totalorder %s10676_s3, %s8311_s18 }
 0x2c2   : > { %p8308_p2 = pnand %p8307_p3, %p10934_p10  ;;  %p8314_p1 = scmp.lt.s32.totalorder %s8312_s16, %s8306_s10 }
 0x2c4   : > { %p8309_p9 = pneg %p8308_p2  ;;  %p8315_p4 = por %p8314_p1, %p8313_p13 }
 0x2c6   : > { %p8316_p5 = pnand %p8315_p4, %p8309_p9 }
 0x2c8   : > { %8319 = shalt.err (!%p8316_p5)
}
 0x2c9   : > { %s8320_s0 = scalar_lea.hbm %s10672_s29, 2048  ;;  %s8324_s13 = scalar_lea.hbm %s10805_s5, 4096 }
 0x2ca   : > { %p8321_p7 = scmp.ne.s32.totalorder %s10672_s29, %s8320_s0  ;;  %p8325_p6 = scmp.lt.s32.totalorder %s10672_s29, %s10805_s5 }
 0x2cb   : > { %p8326_p12 = scmp.lt.s32.totalorder %s8324_s13, %s8320_s0 }
 0x2cc   : > { %p8322_p8 = pnand %p8321_p7, %p10934_p10 }
 0x2cd   : > { %p8327_p0 = por %p8326_p12, %p8325_p6 }
 0x2ce   : > { %p8323_p11 = pneg %p8322_p8 }
 0x2d0   : > { %p8328_p3 = pnand %p8327_p0, %p8323_p11 }
 0x2d2   : > { %8331 = shalt.err (!%p8328_p3)
}
 0x2d3   : > { %7942 = dma.vmem_to_hbm [thread:$0]  (%p10934_p10), %s10676_s3, 2048, %s10672_s29, %s10687_s17, %s8451_s11, %s8451_s11, %s8452_s14   ;;  %v6057_v2 = vmul.f32 %v10634_v7, %v10634_v7  ;;  %v6019_v31 = vadd.f32 %v10634_v7, %v6018_v38  ;;  %v6087_v17 = vadd.f32 %v6086_v51, %v6056_v54  ;;  %v5399_v40 = vadd.f32 %v5398_v28, %v5397_v14 }
 0x2d4   : > { %v5467_v63 = vrot.slane %v5466_v49, 4  ;;  %s6391_s15 = sshll.u32 %s8680_s26, 1  ;;  %s6945_s3 = sshll.u32 %s8517_s28, 5  ;;  %vm5473_vm6 = vcmask 1040384  }
 0x2d5   : > { %v6020_v57 = vrot.slane %v6019_v31, 4  ;;  %v6088_v30 = vadd.f32 %v6087_v17, %v6057_v2  ;;  %v5400_v32 = vrot.slane %v5399_v40, 2  ;;  %s386_s11 = scalar_lea.vmem [#allocation13], %s6391_s15  ;;  %s10718_s20 = scalar_lea.vmem [#allocation14], %s6391_s15 }
 0x2d6   : > { %v5468_v33 = vadd.f32 %v5467_v63, %v5466_v49  ;;  %s6158_s14 = sshll.u32 %s386_s11, 4  ;;  %s6171_s21 = sshll.u32 %s10718_s20, 4  ;;  %s10726_s14 = int_to_ptr.vmem [resolvable:$true] %s6158_s14  ;;  %s10734_s21 = int_to_ptr.vmem [resolvable:$true] %s6171_s21 }
 0x2d7   : > { %v6021_v15 = vadd.f32 %v6020_v57, %v6019_v31  ;;  %v6089_v59 = vrot.slane %v6088_v30, 4  ;;  %v5401_v20 = vadd.f32 %v5400_v32, %v5399_v40  ;;  %s10724_s22 = scalar_lea.hbm %s10806_s6, %s6945_s3  ;;  %s10732_s16 = scalar_lea.hbm %s10807_s7, %s6945_s3 }
 0x2d8   : > { %v5469_v61 = vrot.slane %v5468_v33, 2  ;;  %s8332_s0 = scalar_lea.vmem %s10726_s14, 32  ;;  %s8454_s2 = smov [#allocation13]  }
 0x2d9   : > { %v6022_v21 = vrot.slane %v6021_v15, 2  ;;  %v6090_v43 = vadd.f32 %v6089_v59, %v6088_v30  ;;  %v5402_v25 = vrot.slane %v5401_v20, 1  ;;  %p8333_p2 = scmp.ne.s32.totalorder %s10726_s14, %s8332_s0  ;;  %s8336_s9 = sshll.u32 %s8454_s2, 4  ;;  %s8337_s9 = int_to_ptr.vmem [resolvable:$false] %s8336_s9 }
 0x2da   : > { %v5470_v36 = vadd.f32 %v5469_v61, %v5468_v33  ;;  %s8338_s13 = scalar_lea.vmem %s8337_s9, 64  ;;  %p8339_p1 = scmp.lt.s32.totalorder %s10726_s14, %s8337_s9 }
 0x2db   : > { %v6023_v42 = vadd.f32 %v6022_v21, %v6021_v15  ;;  %v6091_v8 = vrot.slane %v6090_v43, 2  ;;  %v5403_v34 = vadd.f32 %v5402_v25, %v5401_v20  ;;  %p8334_p9 = pnand %p8333_p2, %p10934_p10  ;;  %p8340_p4 = scmp.lt.s32.totalorder %s8338_s13, %s8332_s0 }
 0x2dc   : > { %v5471_v10 = vrot.slane %v5470_v36, 1 }
 0x2dd   : > { %v6024_v58 = vrot.slane %v6023_v42, 1  ;;  %v6092_v62 = vadd.f32 %v6091_v8, %v6090_v43  ;;  %p8335_p13 = pneg %p8334_p9  ;;  %p8341_p5 = por %p8340_p4, %p8339_p1 }
 0x2de   : > { %v5472_v0 = vadd.f32 %v5471_v10, %v5470_v36 }
 0x2df   : > { %v6093_v60 = vrot.slane %v6092_v62, 1  ;;  %v6025_v48 = vadd.f32 %v6024_v58, %v6023_v42  ;;  %p8342_p7 = pnand %p8341_p5, %p8335_p13 }
 0x2e0   : > { %v5474_v4 = vsel %vm5473_vm6, %v5403_v34, %v5472_v0 }
 0x2e1   : > { %5475 = vst [vmem:[%s386_s11] sm:$0x3] %v5474_v4  ;;  %v6094_v6 = vadd.f32 %v6093_v60, %v6092_v62 }
 0x2e2   : > { %8345 = shalt.err (!%p8342_p7)
}
 0x2e3   : > { %s8346_s19 = scalar_lea.hbm %s10724_s22, 32  ;;  %s8350_s3 = scalar_lea.hbm %s10806_s6, 64 }
 0x2e4   : > { %p8347_p8 = scmp.ne.s32.totalorder %s10724_s22, %s8346_s19  ;;  %p8351_p12 = scmp.lt.s32.totalorder %s10724_s22, %s10806_s6 }
 0x2e5   : > { %p8352_p0 = scmp.lt.s32.totalorder %s8350_s3, %s8346_s19 }
 0x2e6   : > { %p8348_p11 = pnand %p8347_p8, %p10934_p10 }
 0x2e7   : > { %p8353_p3 = por %p8352_p0, %p8351_p12 }
 0x2e8   : > { %p8349_p6 = pneg %p8348_p11 }
 0x2ea   : > { %p8354_p2 = pnand %p8353_p3, %p8349_p6 }
 0x2ec   : > { %8357 = shalt.err (!%p8354_p2)
}
 0x2ed   : > { %7943 = dma.vmem_to_hbm [thread:$0]  (%p10934_p10), %s10726_s14, 32, %s10724_s22, %s10687_s17   ;;  %v6095_v41 = vsel %vm5473_vm6, %v6025_v48, %v6094_v6 }
 0x2ee   : > { %6096 = vst [vmem:[%s10718_s20] sm:$0x3] %v6095_v41  ;;  %s6113_s10 = scalar_lea.sflag [#allocation15], %s8680_s26  ;;  %s8358_s28 = scalar_lea.vmem %s10734_s21, 32 }
 0x2ef   : > { %p8359_p9 = scmp.ne.s32.totalorder %s10734_s21, %s8358_s28  ;;  %s8455_s18 = smov [#allocation14]  }
 0x2f0   : > { %s8362_s0 = sshll.u32 %s8455_s18, 4  ;;  %s8363_s0 = int_to_ptr.vmem [resolvable:$false] %s8362_s0 }
 0x2f1   : > { %p8360_p13 = pnand %p8359_p9, %p10934_p10  ;;  %s8364_s2 = scalar_lea.vmem %s8363_s0, 64 }
 0x2f2   : > { %p8365_p4 = scmp.lt.s32.totalorder %s10734_s21, %s8363_s0  ;;  %p8366_p5 = scmp.lt.s32.totalorder %s8364_s2, %s8358_s28 }
 0x2f3   : > { %p8361_p1 = pneg %p8360_p13 }
 0x2f4   : > { %p8367_p7 = por %p8366_p5, %p8365_p4 }
 0x2f6   : > { %p8368_p8 = pnand %p8367_p7, %p8361_p1 }
 0x2f8   : > { %8371 = shalt.err (!%p8368_p8)
}
 0x2f9   : > { %s8372_s17 = scalar_lea.hbm %s10732_s16, 32  ;;  %s8376_s20 = scalar_lea.hbm %s10807_s7, 64 }
 0x2fa   : > { %p8373_p11 = scmp.ne.s32.totalorder %s10732_s16, %s8372_s17  ;;  %p8377_p0 = scmp.lt.s32.totalorder %s10732_s16, %s10807_s7 }
 0x2fb   : > { %p8378_p3 = scmp.lt.s32.totalorder %s8376_s20, %s8372_s17 }
 0x2fc   : > { %p8374_p6 = pnand %p8373_p11, %p10934_p10 }
 0x2fd   : > { %p8379_p2 = por %p8378_p3, %p8377_p0 }
 0x2fe   : > { %p8375_p12 = pneg %p8374_p6 }
 0x300   : > { %p8380_p9 = pnand %p8379_p2, %p8375_p12 }
 0x302   : > { %8383 = shalt.err (!%p8380_p9)
}
 0x303   : > { %7944 = dma.vmem_to_hbm [thread:$0]  (%p10934_p10), %s10734_s21, 32, %s10732_s16, %s6113_s10  }
 0x304 PF: > { %s6183_s13 = sand.u32 1, %s8430_s24   ;;  %p10935_p13 = scmp.ne.s32.totalorder %s10829_s8, 0 }
 0x305   : > { %p10936_p1 = scmp.ge.s32.totalorder %s8442_s27, 2  ;;  %s6184_s19 = scalar_lea.sflag [#allocation4], %s6183_s13 }
 0x307   : > { %p7964_p4 = pnand %p10936_p1, %p10935_p13 }
 0x309   : > { %p7965_p5 = pneg %p7964_p4 }
 0x30b   : > { %8417 = dma.done.wait (%p7965_p5), %s6184_s19, 2048  }
 0x30c   : > { %8419 = vsyncadd (%p7965_p5), %s6184_s19, 4294965248  ;;  %s10937_s30 = sadd.s32 4294967294, %s8442_s27  }
 0x30d   : > { %s6192_s15 = sand.u32 1, %s10937_s30  }
 0x30e   : > { %s6193_s3 = scalar_lea.sflag [#allocation12], %s6192_s15 }
 0x30f   : > { %8421 = dma.done.wait (%p7965_p5), %s6193_s3, 2080  }
 0x310   : > { %8423 = vsyncadd (%p7965_p5), %s6193_s3, 4294965216  ;;  %s6211_s12 = scalar_lea.sflag [#allocation15], %s6183_s13 }
 0x311   : > { %8425 = dma.done.wait (%p7965_p5), %s6211_s12, 32  }
 0x312   : > { %8427 = vsyncadd (%p7965_p5), %s6211_s12, 4294967264  ;;  %s10938_s21 = sld [smem:[#allocation23_spill]]  ;;  %p31_p10 = scmp.ge.s32.totalorder %s8576_s23, 4  }
 0x313   : > { %s10939_s26 = sld [smem:[#allocation24_spill]]  ;;  %s10940_s24 = smov %s8434_s25 }
 0x314   : > { %s10942_s27 = smov %s8576_s23  ;;  %33 = sbr.rel (!%p31_p10) target bundleno = 16 (0x10), region = 161 }
 0x318   : > { %s10941_s25 = smov %s10938_s21 }
 0x319   :  { %6216 = vsyncpa [#allocation3], 1 }
 0x31a   :  { %6218 = vsyncpa [#allocation3 + $0x1], 1 }
 0x31b   :  { %6219 = vsyncpa [#allocation6], 1 }
 0x31c   :  { %6221 = vsyncpa [#allocation6 + $0x1], 1 }
 0x31d   :  { %6222 = vsyncpa [#allocation9], 1 }
 0x31e   :  { %6223 = vsyncpa [#allocation4], 1 }
 0x31f   :  { %6225 = vsyncpa [#allocation4 + $0x1], 1 }
 0x320   :  { %6226 = vsyncpa [#allocation12], 1 }
 0x321   :  { %6228 = vsyncpa [#allocation12 + $0x1], 1 }
 0x322   :  { %6229 = vsyncpa [#allocation15], 1 }
 0x323   :  { %6231 = vsyncpa [#allocation15 + $0x1], 1 }

</bundles_post_ra>
